<compile_context>
chip_gen: v7x
topology: tpu7x:2x2x1
jax: 0.10.0
libtpu: 0.0.40
codegen_flags: <defaults>
</compile_context>

<pallas_src>
import functools
import math

import numpy as np
import jax
import jax.numpy as jnp
from jax import lax
from jax.experimental import pallas as pl
from jax.experimental.pallas import tpu as pltpu


RES_OUT_LANES = 128  # resampled samples produced per output row (lane-dense)


def _round_up(x, m):
    return (x + m - 1) // m * m


_COMPILER_PARAMS = pltpu.CompilerParams(
    dimension_semantics=("parallel",),
    vmem_limit_bytes=32 * 1024 * 1024,
)


# ----------------------------- Pallas kernels (hot path) -----------------------------

def _resample_kernel(x0_ref, x1_ref, w0_ref, w1_ref, o_ref):
    # Banded sinc-resample: 128 consecutive output samples per row via two MXU matmuls.
    o_ref[...] = (
        jnp.dot(x0_ref[...], w0_ref[...], preferred_element_type=jnp.float32)
        + jnp.dot(x1_ref[...], w1_ref[...], preferred_element_type=jnp.float32)
    )


def _spec_mel_kernel(xa_ref, xb_ref, dtop_ref, dbot_ref, fb_ref, o_ref,
                     *, n_frames, tile_f, n_half):
    # frame f = [xa_row_f | xb_row_f] (hop == n_fft // 2).  Hann window is folded into
    # dtop/dbot = [cos | sin] (bf16).  Power spectrogram -> freq-masked mel matmul.
    y = (jnp.dot(xa_ref[...], dtop_ref[...], preferred_element_type=jnp.float32)
         + jnp.dot(xb_ref[...], dbot_ref[...], preferred_element_type=jnp.float32))
    re = y[:, :n_half]
    im = y[:, n_half:]
    power = re * re + im * im                                   # power=2, bins 0..n_half-1
    mel = jnp.dot(power, fb_ref[...], preferred_element_type=jnp.float32)
    fidx = pl.program_id(0) * tile_f + lax.broadcasted_iota(jnp.int32, mel.shape, 0)
    o_ref[...] = jnp.where(fidx < n_frames, mel, 0.0)           # zero the padded frames


def _stretch_kernel(blk_ref, wa_ref, wb_ref, ma_ref, mb_ref, o_ref):
    # out[s] = (1-a_s) * mel[i0(s)] + a_s * mel[i0(s)+1], time mask folded into wa/wb rows.
    # ma/mb are two consecutive mel-row blocks selected via scalar-prefetched block indices.
    o_ref[...] = (jnp.dot(wa_ref[...], ma_ref[...], preferred_element_type=jnp.float32)
                  + jnp.dot(wb_ref[...], mb_ref[...], preferred_element_type=jnp.float32))


# ----------------------------- parameter construction (host, numpy) -----------------------------

def _sinc_resample_kernel_np(orig_freq, new_freq, lowpass_filter_width=6, rolloff=0.99):
    # Mirrors torchaudio._get_sinc_resample_kernel (sinc_interp_hann).
    g = math.gcd(orig_freq, new_freq)
    orig = orig_freq // g
    new = new_freq // g
    base_freq = min(orig, new) * rolloff
    width = math.ceil(lowpass_filter_width * orig / base_freq)
    idx = np.arange(-width, width + orig, dtype=np.float64) / orig
    t = (np.arange(0, -new, -1, dtype=np.float64)[:, None] / new) + idx[None, :]
    t = t * base_freq
    t = np.clip(t, -lowpass_filter_width, lowpass_filter_width)
    window = np.cos(t * math.pi / lowpass_filter_width / 2.0) ** 2
    t = t * math.pi
    scale = base_freq / orig
    safe_t = np.where(t == 0, 1.0, t)
    kern = np.where(t == 0, 1.0, np.sin(safe_t) / safe_t) * window * scale
    return kern.astype(np.float32), width, orig, new


def _melscale_fbanks_np(n_freqs, f_min, f_max, n_mels, sample_rate):
    # HTK mel filterbank, norm=None (torchaudio MelScale defaults).
    all_freqs = np.linspace(0.0, sample_rate // 2, n_freqs)
    m_min = 2595.0 * math.log10(1.0 + f_min / 700.0)
    m_max = 2595.0 * math.log10(1.0 + f_max / 700.0)
    m_pts = np.linspace(m_min, m_max, n_mels + 2)
    f_pts = 700.0 * (10.0 ** (m_pts / 2595.0) - 1.0)
    f_diff = f_pts[1:] - f_pts[:-1]
    slopes = f_pts[None, :] - all_freqs[:, None]
    down = -slopes[:, :-2] / f_diff[:-1]
    up = slopes[:, 2:] / f_diff[1:]
    fb = np.maximum(0.0, np.minimum(down, up))
    return fb.astype(np.float32)                                # (n_freqs, n_mels)


def build_specgen_params(input_freq=16000, resample_freq=8000, n_fft=1024, n_mel=40,
                         stretch_factor=0.8):
    kern, width, orig, new = _sinc_resample_kernel_np(input_freq, resample_freq)
    assert new == 1, "kernel specialised for new_freq // gcd == 1"
    K = kern.shape[1]
    in_row = RES_OUT_LANES * orig                # input samples consumed per output row
    assert K <= in_row, "lowpass kernel wider than one banded block"
    w0 = np.zeros((in_row, RES_OUT_LANES), np.float32)
    w1 = np.zeros((in_row, RES_OUT_LANES), np.float32)
    k1d = kern[0]
    for j in range(RES_OUT_LANES):
        for k in range(K):
            i = orig * j + k
            if i < in_row:
                w0[i, j] = k1d[k]
            else:
                w1[i - in_row, j] = k1d[k]

    # Real DFT for k = 0 .. n_fft//2 - 1 with the periodic Hann window folded in (bf16).
    # The Nyquist bin (k = n_fft//2) is dropped: with f_max == resample_freq/2 its mel
    # filterbank row is exactly zero, so it never contributes to the returned mel output.
    n_half = n_fft // 2
    n = np.arange(n_fft, dtype=np.float64)
    win = 0.5 - 0.5 * np.cos(2.0 * np.pi * n / n_fft)
    kk = np.arange(n_half, dtype=np.float64)
    phase = (n[:, None] * kk[None, :]) % n_fft
    ang = (2.0 * np.pi / n_fft) * phase
    d = np.concatenate([win[:, None] * np.cos(ang), win[:, None] * np.sin(ang)], axis=1)
    dtop = jnp.asarray(d[:n_half], dtype=jnp.bfloat16)          # (n_half, 2*n_half)
    dbot = jnp.asarray(d[n_half:], dtype=jnp.bfloat16)

    n_freq = n_fft // 2 + 1
    fb_full = _melscale_fbanks_np(n_freq, 0.0, resample_freq / 2.0, n_mel, resample_freq)
    n_mel_pad = _round_up(n_mel, 128)                           # lane-dense mel output
    fb_pad = np.zeros((n_half, n_mel_pad), np.float32)
    fb_pad[:, :n_mel] = fb_full[:n_half]

    return dict(
        resample=dict(w0=jnp.asarray(w0), w1=jnp.asarray(w1), width=width, orig=orig, new=new),
        n_fft=n_fft, hop=n_fft // 2, n_half=n_half, n_freq=n_freq,
        dtop=dtop, dbot=dbot, fb=jnp.asarray(fb_pad),
        n_mel=n_mel, n_mel_pad=n_mel_pad, rate=stretch_factor,
    )


# ----------------------------- masks -----------------------------

def _mask_keep(key, mask_param, axis_len):
    # Mirrors torchaudio F.mask_along_axis (p=1.0, mask_value=0) with a jax.random stream.
    # TODO(synk): torch uses torch.rand; distribution matches, RNG stream does not.
    k1, k2 = jax.random.split(key)
    value = jax.random.uniform(k1, ()) * mask_param
    min_value = jax.random.uniform(k2, ()) * (axis_len - value)
    mask_start = min_value.astype(jnp.int32)
    mask_end = min_value.astype(jnp.int32) + value.astype(jnp.int32)
    idx = jnp.arange(axis_len)
    masked = (idx >= mask_start) & (idx < mask_end)
    return jnp.where(masked, 0.0, 1.0).astype(jnp.float32)


# ----------------------------- forward pass -----------------------------

def specgen_forward(waveform, params, mask_key):
    assert waveform.ndim == 2 and waveform.shape[0] == 1, "expected (1, time) waveform"
    x = waveform[0].astype(jnp.float32)
    T = int(x.shape[0])

    # ---- Resample (sinc interpolation, stride=orig) as a tiled banded matmul ----
    rs = params["resample"]
    orig, new, width = rs["orig"], rs["new"], rs["width"]
    in_row = RES_OUT_LANES * orig
    target_len = int(math.ceil(new * T / orig))
    R = (target_len + RES_OUT_LANES - 1) // RES_OUT_LANES
    tile_r = _round_up(R if R < 128 else 128, 8)
    R_pad = _round_up(R, tile_r)
    xp_len = (R_pad + 1) * in_row
    xp = jnp.pad(x, (width, xp_len - T - width))                 # left pad = width, zeros right
    xmat = xp.reshape(R_pad + 1, in_row)
    x0 = xmat[:R_pad]
    x1 = xmat[1:]
    res_mat = pl.pallas_call(
        _resample_kernel,
        out_shape=jax.ShapeDtypeStruct((R_pad, RES_OUT_LANES), jnp.float32),
        grid=(R_pad // tile_r,),
        in_specs=[
            pl.BlockSpec((tile_r, in_row), lambda r: (r, 0)),
            pl.BlockSpec((tile_r, in_row), lambda r: (r, 0)),
            pl.BlockSpec((in_row, RES_OUT_LANES), lambda r: (0, 0)),
            pl.BlockSpec((in_row, RES_OUT_LANES), lambda r: (0, 0)),
        ],
        out_specs=pl.BlockSpec((tile_r, RES_OUT_LANES), lambda r: (r, 0)),
        compiler_params=_COMPILER_PARAMS,
    )(x0, x1, rs["w0"], rs["w1"])
    res = res_mat.reshape(-1)[:target_len]

    # ---- Spectrogram (n_fft=1024, hop=512, Hann, center reflect pad, power=2)
    #      fused with the freq-masked MelScale matmul ----
    n_fft, hop, n_half = params["n_fft"], params["hop"], params["n_half"]
    assert hop == n_half
    xs = jnp.pad(res, (n_fft // 2, n_fft // 2), mode="reflect")
    n_frames = (int(xs.shape[0]) - n_fft) // hop + 1
    tile_f = 256 if n_frames >= 256 else _round_up(n_frames, 16)
    F_pad = _round_up(n_frames, tile_f)
    xs_len = (F_pad + 1) * hop
    xs = jnp.pad(xs, (0, xs_len - int(xs.shape[0])))
    xs_mat = xs.astype(jnp.bfloat16).reshape(F_pad + 1, hop)     # bf16 frames for the MXU
    xa = xs_mat[:F_pad]
    xb = xs_mat[1:]

    kf, kt = jax.random.split(mask_key)
    fmask = _mask_keep(kf, 80, params["n_freq"])                 # over all 513 bins
    fb_fm = params["fb"] * fmask[:n_half, None]                  # fold freq mask into filterbank

    n_mel_pad = params["n_mel_pad"]
    spec_kernel = functools.partial(_spec_mel_kernel, n_frames=n_frames,
                                    tile_f=tile_f, n_half=n_half)
    melraw = pl.pallas_call(
        spec_kernel,
        out_shape=jax.ShapeDtypeStruct((F_pad, n_mel_pad), jnp.float32),
        grid=(F_pad // tile_f,),
        in_specs=[
            pl.BlockSpec((tile_f, hop), lambda f: (f, 0)),
            pl.BlockSpec((tile_f, hop), lambda f: (f, 0)),
            pl.BlockSpec((n_half, 2 * n_half), lambda f: (0, 0)),
            pl.BlockSpec((n_half, 2 * n_half), lambda f: (0, 0)),
            pl.BlockSpec((n_half, n_mel_pad), lambda f: (0, 0)),
        ],
        out_specs=pl.BlockSpec((tile_f, n_mel_pad), lambda f: (f, 0)),
        compiler_params=_COMPILER_PARAMS,
    )(xa, xb, params["dtop"], params["dbot"], fb_fm)

    # ---- TimeStretch(0.8, fixed_rate) + TimeMasking, applied in the mel domain ----
    # TODO(synk): torchaudio's phase vocoder on a real nonnegative power spectrogram reduces
    # to magnitude linear interpolation (zero phase); the complex intermediate dtype of the
    # original module is not reproduced.  Stretch/mel-matmul commute since both are linear,
    # and the time mask is a per-output-row scale, so applying it after the matmul is exact.
    rate = params["rate"]
    assert rate <= 1.0, "stretch kernel assumes rate <= 1 (two input blocks per output tile)"
    time_steps = np.arange(0.0, n_frames, rate)
    T_s = int(time_steps.shape[0])
    tile_s = _round_up(T_s if T_s < 128 else 128, 8)
    T_s_pad = _round_up(T_s, tile_s)
    num_tiles = T_s_pad // tile_s

    i0 = np.floor(time_steps).astype(np.int64)
    alpha = (time_steps - i0).astype(np.float32)
    i0_ext = np.concatenate([i0, np.full((T_s_pad - T_s,), int(i0[-1]), np.int64)])
    alpha_ext = np.concatenate([alpha, np.zeros((T_s_pad - T_s,), np.float32)])

    blk = (i0_ext[::tile_s] // tile_s).astype(np.int32)          # (num_tiles,) block indices
    wa_np = np.zeros((T_s_pad, tile_s), np.float32)
    wb_np = np.zeros((T_s_pad, tile_s), np.float32)
    for s in range(T_s):
        t = s // tile_s
        col = int(i0_ext[s] - int(blk[t]) * tile_s)
        assert 0 <= col and col + 1 < 2 * tile_s
        if col < tile_s:
            wa_np[s, col] = 1.0 - alpha_ext[s]
        else:
            wb_np[s, col - tile_s] = 1.0 - alpha_ext[s]
        col1 = col + 1
        if col1 < tile_s:
            wa_np[s, col1] = alpha_ext[s]
        else:
            wb_np[s, col1 - tile_s] = alpha_ext[s]

    tmask = _mask_keep(kt, 80, T_s)
    tmask_ext = jnp.concatenate([tmask, jnp.zeros((T_s_pad - T_s,), jnp.float32)])
    wa = jnp.asarray(wa_np) * tmask_ext[:, None]                 # fold time mask into weights
    wb = jnp.asarray(wb_np) * tmask_ext[:, None]

    need_rows = (int(blk.max()) + 2) * tile_s
    M = _round_up(max(F_pad, need_rows), tile_s)
    if M > F_pad:
        melraw = jnp.pad(melraw, ((0, M - F_pad), (0, 0)))       # zero rows == torch's time pad

    stretched = pl.pallas_call(
        _stretch_kernel,
        out_shape=jax.ShapeDtypeStruct((T_s_pad, n_mel_pad), jnp.float32),
        grid_spec=pltpu.PrefetchScalarGridSpec(
            num_scalar_prefetch=1,
            grid=(num_tiles,),
            in_specs=[
                pl.BlockSpec((tile_s, tile_s), lambda t, blk_ref: (t, 0)),
                pl.BlockSpec((tile_s, tile_s), lambda t, blk_ref: (t, 0)),
                pl.BlockSpec((tile_s, n_mel_pad), lambda t, blk_ref: (blk_ref[t], 0)),
                pl.BlockSpec((tile_s, n_mel_pad), lambda t, blk_ref: (blk_ref[t] + 1, 0)),
            ],
            out_specs=pl.BlockSpec((tile_s, n_mel_pad), lambda t, blk_ref: (t, 0)),
        ),
        compiler_params=_COMPILER_PARAMS,
    )(jnp.asarray(blk), wa, wb, melraw, melraw)

    mel = stretched[:T_s, :params["n_mel"]].T                    # (n_mels, time) == mel.squeeze(0)
    return mel


# ----------------------------- main -----------------------------

if __name__ == "__main__":
    key = jax.random.PRNGKey(0)
    wkey, mkey = jax.random.split(key)
    waveform = jax.random.normal(wkey, (1, 8192), dtype=jnp.float32)  # (channels=1, time)

    params = build_specgen_params(input_freq=16000, resample_freq=8000,
                                  n_fft=1024, n_mel=40, stretch_factor=0.8)
    forward = jax.jit(lambda w, k: specgen_forward(w, params, k))
    mel = forward(waveform, mkey)
    jax.block_until_ready(mel)

    assert mel.ndim == 2 and mel.shape[0] == 40, mel.shape
    assert bool(jnp.all(jnp.isfinite(mel)))
    print("KERNEL_OK")
</pallas_src>

<mosaic_0001>
module attributes {stable_mosaic.version = 11 : i64} {
  func.func @_resample_kernel(%arg0: i32, %arg1: memref<32x256xf32, #tpu.memory_space<vmem>>, %arg2: memref<32x256xf32, #tpu.memory_space<vmem>>, %arg3: memref<256x128xf32, #tpu.memory_space<vmem>>, %arg4: memref<256x128xf32, #tpu.memory_space<vmem>>, %arg5: memref<32x128xf32, #tpu.memory_space<vmem>>) attributes {dimension_semantics = [#tpu.dimension_semantics<parallel>], iteration_bounds = array<i64: 1>, scalar_prefetch = 0 : i64, scratch_operands = 0 : i64, tpu.core_type = #tpu.core_type<tc>, window_params = [{transform_indices = @transform_0, window_bounds = array<i64: 32, 256>}, {transform_indices = @transform_1, window_bounds = array<i64: 32, 256>}, {pipeline_mode = #tpu.pipeline_mode<synchronous>, transform_indices = @transform_2, window_bounds = array<i64: 256, 128>}, {pipeline_mode = #tpu.pipeline_mode<synchronous>, transform_indices = @transform_3, window_bounds = array<i64: 256, 128>}, {transform_indices = @transform_4, window_bounds = array<i64: 32, 128>}]} {
    %c0 = arith.constant 0 : index
    %c0_0 = arith.constant 0 : index
    %0 = vector.load %arg1[%c0, %c0_0] : memref<32x256xf32, #tpu.memory_space<vmem>>, vector<32x256xf32>
    %c0_1 = arith.constant 0 : index
    %c0_2 = arith.constant 0 : index
    %1 = vector.load %arg3[%c0_1, %c0_2] : memref<256x128xf32, #tpu.memory_space<vmem>>, vector<256x128xf32>
    %cst = arith.constant dense<0.000000e+00> : vector<32x128xf32>
    %2 = tpu.matmul %0, %1, %cst {dimension_numbers = #tpu.dot_dimension_numbers<[1], [0], [0], [1], [0, 0, 1, 1], [], []>} : vector<32x256xf32>, vector<256x128xf32>, vector<32x128xf32> -> vector<32x128xf32>
    %c0_3 = arith.constant 0 : index
    %c0_4 = arith.constant 0 : index
    %3 = vector.load %arg2[%c0_3, %c0_4] : memref<32x256xf32, #tpu.memory_space<vmem>>, vector<32x256xf32>
    %c0_5 = arith.constant 0 : index
    %c0_6 = arith.constant 0 : index
    %4 = vector.load %arg4[%c0_5, %c0_6] : memref<256x128xf32, #tpu.memory_space<vmem>>, vector<256x128xf32>
    %cst_7 = arith.constant dense<0.000000e+00> : vector<32x128xf32>
    %5 = tpu.matmul %3, %4, %cst_7 {dimension_numbers = #tpu.dot_dimension_numbers<[1], [0], [0], [1], [0, 0, 1, 1], [], []>} : vector<32x256xf32>, vector<256x128xf32>, vector<32x128xf32> -> vector<32x128xf32>
    %6 = arith.addf %2, %5 : vector<32x128xf32>
    %c0_8 = arith.constant 0 : index
    %c0_9 = arith.constant 0 : index
    %7 = vector.load %arg5[%c0_8, %c0_9] : memref<32x128xf32, #tpu.memory_space<vmem>>, vector<32x128xf32>
    tpu.vector_store %arg5[%c0_8, %c0_9], %6 {strides = array<i32>} : memref<32x128xf32, #tpu.memory_space<vmem>>, vector<32x128xf32>,
    return
  }
  func.func @transform_0(%arg0: i32) -> (i32, i32) {
    %c0_i32 = arith.constant 0 : i32
    %c0_i32_0 = arith.constant 0 : i32
    return %arg0, %c0_i32 : i32, i32
  }
  func.func @transform_1(%arg0: i32) -> (i32, i32) {
    %c0_i32 = arith.constant 0 : i32
    %c0_i32_0 = arith.constant 0 : i32
    return %arg0, %c0_i32 : i32, i32
  }
  func.func @transform_2(%arg0: i32) -> (i32, i32) {
    %c0_i32 = arith.constant 0 : i32
    %c0_i32_0 = arith.constant 0 : i32
    %c0_i32_1 = arith.constant 0 : i32
    return %c0_i32, %c0_i32_0 : i32, i32
  }
  func.func @transform_3(%arg0: i32) -> (i32, i32) {
    %c0_i32 = arith.constant 0 : i32
    %c0_i32_0 = arith.constant 0 : i32
    %c0_i32_1 = arith.constant 0 : i32
    return %c0_i32, %c0_i32_0 : i32, i32
  }
  func.func @transform_4(%arg0: i32) -> (i32, i32) {
    %c0_i32 = arith.constant 0 : i32
    %c0_i32_0 = arith.constant 0 : i32
    return %arg0, %c0_i32 : i32, i32
  }
}

module attributes {stable_mosaic.version = 11 : i64} {
  func.func @_spec_mel_kernel(%arg0: i32, %arg1: memref<16x512xbf16, #tpu.memory_space<vmem>>, %arg2: memref<16x512xbf16, #tpu.memory_space<vmem>>, %arg3: memref<512x1024xbf16, #tpu.memory_space<vmem>>, %arg4: memref<512x1024xbf16, #tpu.memory_space<vmem>>, %arg5: memref<512x128xf32, #tpu.memory_space<vmem>>, %arg6: memref<16x128xf32, #tpu.memory_space<vmem>>) attributes {dimension_semantics = [#tpu.dimension_semantics<parallel>], iteration_bounds = array<i64: 1>, scalar_prefetch = 0 : i64, scratch_operands = 0 : i64, tpu.core_type = #tpu.core_type<tc>, window_params = [{transform_indices = @transform_0, window_bounds = array<i64: 16, 512>}, {transform_indices = @transform_1, window_bounds = array<i64: 16, 512>}, {pipeline_mode = #tpu.pipeline_mode<synchronous>, transform_indices = @transform_2, window_bounds = array<i64: 512, 1024>}, {pipeline_mode = #tpu.pipeline_mode<synchronous>, transform_indices = @transform_3, window_bounds = array<i64: 512, 1024>}, {pipeline_mode = #tpu.pipeline_mode<synchronous>, transform_indices = @transform_4, window_bounds = array<i64: 512, 128>}, {transform_indices = @transform_5, window_bounds = array<i64: 16, 128>}]} {
    %c0 = arith.constant 0 : index
    %c0_0 = arith.constant 0 : index
    %0 = vector.load %arg1[%c0, %c0_0] : memref<16x512xbf16, #tpu.memory_space<vmem>>, vector<16x512xbf16>
    %c0_1 = arith.constant 0 : index
    %c0_2 = arith.constant 0 : index
    %1 = vector.load %arg3[%c0_1, %c0_2] : memref<512x1024xbf16, #tpu.memory_space<vmem>>, vector<512x1024xbf16>
    %cst = arith.constant dense<0.000000e+00> : vector<16x1024xf32>
    %2 = tpu.matmul %0, %1, %cst {dimension_numbers = #tpu.dot_dimension_numbers<[1], [0], [0], [1], [0, 0, 1, 1], [], []>} : vector<16x512xbf16>, vector<512x1024xbf16>, vector<16x1024xf32> -> vector<16x1024xf32>
    %c0_3 = arith.constant 0 : index
    %c0_4 = arith.constant 0 : index
    %3 = vector.load %arg2[%c0_3, %c0_4] : memref<16x512xbf16, #tpu.memory_space<vmem>>, vector<16x512xbf16>
    %c0_5 = arith.constant 0 : index
    %c0_6 = arith.constant 0 : index
    %4 = vector.load %arg4[%c0_5, %c0_6] : memref<512x1024xbf16, #tpu.memory_space<vmem>>, vector<512x1024xbf16>
    %cst_7 = arith.constant dense<0.000000e+00> : vector<16x1024xf32>
    %5 = tpu.matmul %3, %4, %cst_7 {dimension_numbers = #tpu.dot_dimension_numbers<[1], [0], [0], [1], [0, 0, 1, 1], [], []>} : vector<16x512xbf16>, vector<512x1024xbf16>, vector<16x1024xf32> -> vector<16x1024xf32>
    %6 = arith.addf %2, %5 : vector<16x1024xf32>
    %7 = vector.extract_strided_slice %6 {offsets = [0, 0], sizes = [16, 512], strides = [1, 1]} : vector<16x1024xf32> to vector<16x512xf32>
    %8 = vector.extract_strided_slice %6 {offsets = [0, 512], sizes = [16, 512], strides = [1, 1]} : vector<16x1024xf32> to vector<16x512xf32>
    %9 = arith.mulf %7, %7 : vector<16x512xf32>
    %10 = arith.mulf %8, %8 : vector<16x512xf32>
    %11 = arith.addf %9, %10 : vector<16x512xf32>
    %c0_8 = arith.constant 0 : index
    %c0_9 = arith.constant 0 : index
    %12 = vector.load %arg5[%c0_8, %c0_9] : memref<512x128xf32, #tpu.memory_space<vmem>>, vector<512x128xf32>
    %cst_10 = arith.constant dense<0.000000e+00> : vector<16x128xf32>
    %13 = tpu.matmul %11, %12, %cst_10 {dimension_numbers = #tpu.dot_dimension_numbers<[1], [0], [0], [1], [0, 0, 1, 1], [], []>} : vector<16x512xf32>, vector<512x128xf32>, vector<16x128xf32> -> vector<16x128xf32>
    %c16_i32 = arith.constant 16 : i32
    %14 = arith.muli %arg0, %c16_i32 : i32
    %15 = tpu.iota {dimensions = array<i32: 0>} : vector<16x128xi32>
    %16 = vector.broadcast %14 : i32 to vector<16x128xi32>
    %17 = arith.addi %16, %15 : vector<16x128xi32>
    %c9_i32 = arith.constant 9 : i32
    %18 = vector.broadcast %c9_i32 : i32 to vector<16x128xi32>
    %19 = arith.cmpi slt, %17, %18 : vector<16x128xi32>
    %cst_11 = arith.constant 0.000000e+00 : f32
    %20 = vector.broadcast %cst_11 : f32 to vector<16x128xf32>
    %21 = arith.select %19, %13, %20 : vector<16x128xi1>, vector<16x128xf32>
    %c0_12 = arith.constant 0 : index
    %c0_13 = arith.constant 0 : index
    %22 = vector.load %arg6[%c0_12, %c0_13] : memref<16x128xf32, #tpu.memory_space<vmem>>, vector<16x128xf32>
    tpu.vector_store %arg6[%c0_12, %c0_13], %21 {strides = array<i32>} : memref<16x128xf32, #tpu.memory_space<vmem>>, vector<16x128xf32>,
    return
  }
  func.func @transform_0(%arg0: i32) -> (i32, i32) {
    %c0_i32 = arith.constant 0 : i32
    %c0_i32_0 = arith.constant 0 : i32
    return %arg0, %c0_i32 : i32, i32
  }
  func.func @transform_1(%arg0: i32) -> (i32, i32) {
    %c0_i32 = arith.constant 0 : i32
    %c0_i32_0 = arith.constant 0 : i32
    return %arg0, %c0_i32 : i32, i32
  }
  func.func @transform_2(%arg0: i32) -> (i32, i32) {
    %c0_i32 = arith.constant 0 : i32
    %c0_i32_0 = arith.constant 0 : i32
    %c0_i32_1 = arith.constant 0 : i32
    return %c0_i32, %c0_i32_0 : i32, i32
  }
  func.func @transform_3(%arg0: i32) -> (i32, i32) {
    %c0_i32 = arith.constant 0 : i32
    %c0_i32_0 = arith.constant 0 : i32
    %c0_i32_1 = arith.constant 0 : i32
    return %c0_i32, %c0_i32_0 : i32, i32
  }
  func.func @transform_4(%arg0: i32) -> (i32, i32) {
    %c0_i32 = arith.constant 0 : i32
    %c0_i32_0 = arith.constant 0 : i32
    %c0_i32_1 = arith.constant 0 : i32
    return %c0_i32, %c0_i32_0 : i32, i32
  }
  func.func @transform_5(%arg0: i32) -> (i32, i32) {
    %c0_i32 = arith.constant 0 : i32
    %c0_i32_0 = arith.constant 0 : i32
    return %arg0, %c0_i32 : i32, i32
  }
}

module attributes {stable_mosaic.version = 11 : i64} {
  func.func @_stretch_kernel(%arg0: i32, %arg1: memref<1xi32, #tpu.memory_space<smem>>, %arg2: memref<16x16xf32, #tpu.memory_space<vmem>>, %arg3: memref<16x16xf32, #tpu.memory_space<vmem>>, %arg4: memref<16x128xf32, #tpu.memory_space<vmem>>, %arg5: memref<16x128xf32, #tpu.memory_space<vmem>>, %arg6: memref<16x128xf32, #tpu.memory_space<vmem>>) attributes {dimension_semantics = [#tpu.dimension_semantics<parallel>], iteration_bounds = array<i64: 1>, scalar_prefetch = 1 : i64, scratch_operands = 0 : i64, tpu.core_type = #tpu.core_type<tc>, window_params = [{transform_indices = @transform_0, window_bounds = array<i64: 16, 16>}, {transform_indices = @transform_1, window_bounds = array<i64: 16, 16>}, {transform_indices = @transform_2, window_bounds = array<i64: 16, 128>}, {transform_indices = @transform_3, window_bounds = array<i64: 16, 128>}, {transform_indices = @transform_4, window_bounds = array<i64: 16, 128>}]} {
    %c0 = arith.constant 0 : index
    %c0_0 = arith.constant 0 : index
    %0 = vector.load %arg2[%c0, %c0_0] : memref<16x16xf32, #tpu.memory_space<vmem>>, vector<16x16xf32>
    %c0_1 = arith.constant 0 : index
    %c0_2 = arith.constant 0 : index
    %1 = vector.load %arg4[%c0_1, %c0_2] : memref<16x128xf32, #tpu.memory_space<vmem>>, vector<16x128xf32>
    %cst = arith.constant dense<0.000000e+00> : vector<16x128xf32>
    %2 = tpu.matmul %0, %1, %cst {dimension_numbers = #tpu.dot_dimension_numbers<[1], [0], [0], [1], [0, 0, 1, 1], [], []>} : vector<16x16xf32>, vector<16x128xf32>, vector<16x128xf32> -> vector<16x128xf32>
    %c0_3 = arith.constant 0 : index
    %c0_4 = arith.constant 0 : index
    %3 = vector.load %arg3[%c0_3, %c0_4] : memref<16x16xf32, #tpu.memory_space<vmem>>, vector<16x16xf32>
    %c0_5 = arith.constant 0 : index
    %c0_6 = arith.constant 0 : index
    %4 = vector.load %arg5[%c0_5, %c0_6] : memref<16x128xf32, #tpu.memory_space<vmem>>, vector<16x128xf32>
    %cst_7 = arith.constant dense<0.000000e+00> : vector<16x128xf32>
    %5 = tpu.matmul %3, %4, %cst_7 {dimension_numbers = #tpu.dot_dimension_numbers<[1], [0], [0], [1], [0, 0, 1, 1], [], []>} : vector<16x16xf32>, vector<16x128xf32>, vector<16x128xf32> -> vector<16x128xf32>
    %6 = arith.addf %2, %5 : vector<16x128xf32>
    %c0_8 = arith.constant 0 : index
    %c0_9 = arith.constant 0 : index
    %7 = vector.load %arg6[%c0_8, %c0_9] : memref<16x128xf32, #tpu.memory_space<vmem>>, vector<16x128xf32>
    tpu.vector_store %arg6[%c0_8, %c0_9], %6 {strides = array<i32>} : memref<16x128xf32, #tpu.memory_space<vmem>>, vector<16x128xf32>,
    return
  }
  func.func @transform_0(%arg0: i32, %arg1: memref<1xi32, #tpu.memory_space<smem>>) -> (i32, i32) {
    %c0_i32 = arith.constant 0 : i32
    %c0_i32_0 = arith.constant 0 : i32
    return %arg0, %c0_i32 : i32, i32
  }
  func.func @transform_1(%arg0: i32, %arg1: memref<1xi32, #tpu.memory_space<smem>>) -> (i32, i32) {
    %c0_i32 = arith.constant 0 : i32
    %c0_i32_0 = arith.constant 0 : i32
    return %arg0, %c0_i32 : i32, i32
  }
  func.func @transform_2(%arg0: i32, %arg1: memref<1xi32, #tpu.memory_space<smem>>) -> (i32, i32) {
    %0 = arith.index_cast %arg0 : i32 to index
    %1 = memref.load %arg1[%0] : memref<1xi32, #tpu.memory_space<smem>>
    %c0_i32 = arith.constant 0 : i32
    %c0_i32_0 = arith.constant 0 : i32
    return %1, %c0_i32 : i32, i32
  }
  func.func @transform_3(%arg0: i32, %arg1: memref<1xi32, #tpu.memory_space<smem>>) -> (i32, i32) {
    %0 = arith.index_cast %arg0 : i32 to index
    %1 = memref.load %arg1[%0] : memref<1xi32, #tpu.memory_space<smem>>
    %c1_i32 = arith.constant 1 : i32
    %2 = arith.addi %1, %c1_i32 : i32
    %c0_i32 = arith.constant 0 : i32
    %c0_i32_0 = arith.constant 0 : i32
    return %2, %c0_i32 : i32, i32
  }
  func.func @transform_4(%arg0: i32, %arg1: memref<1xi32, #tpu.memory_space<smem>>) -> (i32, i32) {
    %c0_i32 = arith.constant 0 : i32
    %c0_i32_0 = arith.constant 0 : i32
    return %arg0, %c0_i32 : i32, i32
  }
}

</mosaic_0001>

<bundles_post_ra>
// kernel: _lambda_.3
= control target key start
LH: loop header
LB: loop body
LE: loop exit
PB: predicated region body
PF: predicated region fallthrough
CT: control target
= control target key end

     0   :  { %9 = vsyncpa [#allocation3], 0  ;;  %s469_s15 = smov [#allocation2]   ;;  %s665_s0 = inlined_call_operand.vmem [shape: f32[32,256], index: 0, kind: input, shape index: {}]   ;;  %s666_s1 = inlined_call_operand.vmem [shape: f32[32,256], index: 1, kind: input, shape index: {}]   ;;  %s667_s2 = inlined_call_operand.vmem [shape: f32[256,128], index: 2, kind: input, shape index: {}]   ;;  %s668_s3 = inlined_call_operand.hbm [shape: f32[256,128], index: 3, kind: input, shape index: {}]   ;;  %s669_s4 = inlined_call_operand.vmem [shape: f32[32,128], index: 4, kind: output, shape index: {}]  }
   0x1   :  { %s21_s16 = sshll.u32 %s469_s15, 4  ;;  %s445_s19 = scalar_lea.hbm %s668_s3, 4096  ;;  %s22_s16 = int_to_ptr.vmem [resolvable:$true] %s21_s16 }
   0x2   :  { %p446_p0 = scmp.ne.s32.totalorder %s668_s3, %s445_s19  ;;  %p449_p1 = scmp.lt.u32.totalorder %s445_s19, %s668_s3 }
   0x4   :  { %p451_p2 = pnand %p449_p1, %p446_p0 }
   0x6   :  { %454 = shalt.err (!%p451_p2)
}
   0x7   :  { %s455_s24 = scalar_lea.vmem %s22_s16, 4096  ;;  %p460_p4 = scmp.lt.s32.totalorder %s22_s16, %s22_s16 }
   0x8   :  { %p456_p3 = scmp.ne.s32.totalorder %s22_s16, %s455_s24  ;;  %p461_p5 = scmp.lt.s32.totalorder %s455_s24, %s455_s24 }
   0xa   :  { %p462_p6 = por %p461_p5, %p460_p4 }
   0xc   :  { %p463_p7 = pnand %p462_p6, %p456_p3 }
   0xe   :  { %466 = shalt.err (!%p463_p7)
}
   0xf   :  { %s470_s25 = smov 128   ;;  %s471_s26 = smov 8  }
  0x10   :  { %27 = dma.hbm_to_vmem [thread:$0]  %s668_s3, 4096, %s22_s16, [#allocation3], %s470_s25, %s470_s25, %s471_s26  }
  0x11   :  { %467 = dma.done.wait [#allocation3], 4096  }
  0x12   :  { %468 = vsyncadd [#allocation3], 4294963200  ;;  %v95_v0 = vld [vmem:[#allocation2 + $0x80] sm:$0xff]  ;;  %v96_v1 = vld [vmem:[#allocation2 + $0x88] sm:$0xff] }
  0x13   :  { %v55_v2 = vld [vmem:[%s667_s2 + $0x80] sm:$0xff]  ;;  %v378_v3 = vpack.c.bf16 %v96_v1, %v95_v0  ;;  %v56_v4 = vld [vmem:[%s667_s2 + $0x88] sm:$0xff]  ;;  %v97_v11 = vld [vmem:[#allocation2 + $0x90] sm:$0xff] }
  0x14   :  { %v79_v5 = vld [vmem:[#allocation2] sm:$0xff]  ;;  %v80_v6 = vld [vmem:[#allocation2 + $0x8] sm:$0xff]  ;;  %v410_v7 = vpack.c.bf16 %v56_v4, %v55_v2  ;;  %v98_v13 = vld [vmem:[#allocation2 + $0x98] sm:$0xff] }
  0x15   :  { %v380_v8 = vpack.c.bf16 %v80_v6, %v79_v5  ;;  %v39_v9 = vld [vmem:[%s667_s2] sm:$0xff]  ;;  %v40_v10 = vld [vmem:[%s667_s2 + $0x8] sm:$0xff]  ;;  %379 = vmatprep.subr.bf16.mxu0 %v378_v3  ;;  %v57_v14 = vld [vmem:[%s667_s2 + $0x90] sm:$0xff]  ;;  %v382_v16 = vpack.c.bf16 %v98_v13, %v97_v11 }
  0x16   :  { %v412_v12 = vpack.c.bf16 %v40_v10, %v39_v9  ;;  %v58_v15 = vld [vmem:[%s667_s2 + $0x98] sm:$0xff]  ;;  %411 = vmatprep.subr.bf16.mxu1 %v410_v7  ;;  %v81_v18 = vld [vmem:[#allocation2 + $0x10] sm:$0xff]  ;;  %v99_v23 = vld [vmem:[#allocation2 + $0xa0] sm:$0xff] }
  0x17   :  { %381 = vmatpush3.bf16.msra.mxu0 %v380_v8  ;;  %v414_v17 = vpack.c.bf16 %v58_v15, %v57_v14  ;;  %v82_v19 = vld [vmem:[#allocation2 + $0x18] sm:$0xff]  ;;  %v41_v20 = vld [vmem:[%s667_s2 + $0x10] sm:$0xff]  ;;  %v100_v24 = vld [vmem:[#allocation2 + $0xa8] sm:$0xff] }
  0x18   :  { %413 = vmatpush3.bf16.msra.mxu1 %v412_v12  ;;  %v384_v21 = vpack.c.bf16 %v82_v19, %v81_v18  ;;  %v42_v22 = vld [vmem:[%s667_s2 + $0x18] sm:$0xff]  ;;  %383 = vmatprep.subr.bf16.mxu0 %v382_v16  ;;  %v386_v26 = vpack.c.bf16 %v100_v24, %v99_v23  ;;  %v59_v27 = vld [vmem:[%s667_s2 + $0xa0] sm:$0xff]  ;;  %v60_v28 = vld [vmem:[%s667_s2 + $0xa8] sm:$0xff] }
  0x19   :  { %415 = vmatprep.subr.bf16.mxu1 %v414_v17  ;;  %v416_v25 = vpack.c.bf16 %v42_v22, %v41_v20  ;;  %v83_v29 = vld [vmem:[#allocation2 + $0x20] sm:$0xff]  ;;  %v418_v30 = vpack.c.bf16 %v60_v28, %v59_v27  ;;  %v84_v31 = vld [vmem:[#allocation2 + $0x28] sm:$0xff]  ;;  %v101_v35 = vld [vmem:[#allocation2 + $0xb0] sm:$0xff] }
  0x1a   :  { %v43_v32 = vld [vmem:[%s667_s2 + $0x20] sm:$0xff]  ;;  %v44_v33 = vld [vmem:[%s667_s2 + $0x28] sm:$0xff]  ;;  %v388_v34 = vpack.c.bf16 %v84_v31, %v83_v29  ;;  %v102_v36 = vld [vmem:[#allocation2 + $0xb8] sm:$0xff] }
  0x1b   :  { %385 = vmatpush3.bf16.msra.mxu0 %v384_v21  ;;  %v61_v37 = vld [vmem:[%s667_s2 + $0xb0] sm:$0xff]  ;;  %v420_v38 = vpack.c.bf16 %v44_v33, %v43_v32  ;;  %v390_v39 = vpack.c.bf16 %v102_v36, %v101_v35  ;;  %v62_v40 = vld [vmem:[%s667_s2 + $0xb8] sm:$0xff]  ;;  %v103_v46 = vld [vmem:[#allocation2 + $0xc0] sm:$0xff] }
  0x1c   :  { %417 = vmatpush3.bf16.msra.mxu1 %v416_v25  ;;  %387 = vmatprep.subr.bf16.mxu0 %v386_v26  ;;  %v85_v41 = vld [vmem:[#allocation2 + $0x30] sm:$0xff]  ;;  %v86_v42 = vld [vmem:[#allocation2 + $0x38] sm:$0xff]  ;;  %v422_v43 = vpack.c.bf16 %v62_v40, %v61_v37  ;;  %v104_v47 = vld [vmem:[#allocation2 + $0xc8] sm:$0xff] }
  0x1d   :  { %419 = vmatprep.subr.bf16.mxu1 %v418_v30  ;;  %v45_v44 = vld [vmem:[%s667_s2 + $0x30] sm:$0xff]  ;;  %v46_v45 = vld [vmem:[%s667_s2 + $0x38] sm:$0xff]  ;;  %v63_v48 = vld [vmem:[%s667_s2 + $0xc0] sm:$0xff]  ;;  %v392_v50 = vpack.c.bf16 %v86_v42, %v85_v41  ;;  %v394_v52 = vpack.c.bf16 %v104_v47, %v103_v46 }
  0x1e   :  { %v64_v49 = vld [vmem:[%s667_s2 + $0xc8] sm:$0xff]  ;;  %v424_v51 = vpack.c.bf16 %v46_v45, %v45_v44  ;;  %v87_v53 = vld [vmem:[#allocation2 + $0x40] sm:$0xff]  ;;  %v105_v58 = vld [vmem:[#allocation2 + $0xd0] sm:$0xff] }
  0x1f   :  { %389 = vmatpush3.bf16.msra.mxu0 %v388_v34  ;;  %v88_v54 = vld [vmem:[#allocation2 + $0x48] sm:$0xff]  ;;  %v47_v55 = vld [vmem:[%s667_s2 + $0x40] sm:$0xff]  ;;  %v426_v56 = vpack.c.bf16 %v64_v49, %v63_v48  ;;  %v106_v59 = vld [vmem:[#allocation2 + $0xd8] sm:$0xff] }
  0x20   :  { %421 = vmatpush3.bf16.msra.mxu1 %v420_v38  ;;  %391 = vmatprep.subr.bf16.mxu0 %v390_v39  ;;  %v48_v57 = vld [vmem:[%s667_s2 + $0x48] sm:$0xff]  ;;  %v65_v60 = vld [vmem:[%s667_s2 + $0xd0] sm:$0xff]  ;;  %v66_v61 = vld [vmem:[%s667_s2 + $0xd8] sm:$0xff]  ;;  %v396_v62 = vpack.c.bf16 %v88_v54, %v87_v53  ;;  %v398_v0 = vpack.c.bf16 %v106_v59, %v105_v58 }
  0x21   :  { %423 = vmatprep.subr.bf16.mxu1 %v422_v43  ;;  %v428_v63 = vpack.c.bf16 %v48_v57, %v47_v55  ;;  %v89_v1 = vld [vmem:[#allocation2 + $0x50] sm:$0xff]  ;;  %v90_v2 = vld [vmem:[#allocation2 + $0x58] sm:$0xff]  ;;  %v430_v4 = vpack.c.bf16 %v66_v61, %v65_v60  ;;  %v107_v6 = vld [vmem:[#allocation2 + $0xe0] sm:$0xff] }
  0x22   :  { %v49_v3 = vld [vmem:[%s667_s2 + $0x50] sm:$0xff]  ;;  %v50_v5 = vld [vmem:[%s667_s2 + $0x58] sm:$0xff]  ;;  %v108_v7 = vld [vmem:[#allocation2 + $0xe8] sm:$0xff]  ;;  %v400_v10 = vpack.c.bf16 %v90_v2, %v89_v1 }
  0x23   :  { %393 = vmatpush3.bf16.msra.mxu0 %v392_v50  ;;  %v67_v8 = vld [vmem:[%s667_s2 + $0xe0] sm:$0xff]  ;;  %v68_v9 = vld [vmem:[%s667_s2 + $0xe8] sm:$0xff]  ;;  %v432_v13 = vpack.c.bf16 %v50_v5, %v49_v3  ;;  %v402_v14 = vpack.c.bf16 %v108_v7, %v107_v6  ;;  %v109_v20 = vld [vmem:[#allocation2 + $0xf0] sm:$0xff] }
  0x24   :  { %425 = vmatpush3.bf16.msra.mxu1 %v424_v51  ;;  %395 = vmatprep.subr.bf16.mxu0 %v394_v52  ;;  %v91_v11 = vld [vmem:[#allocation2 + $0x60] sm:$0xff]  ;;  %v92_v12 = vld [vmem:[#allocation2 + $0x68] sm:$0xff]  ;;  %v434_v18 = vpack.c.bf16 %v68_v9, %v67_v8  ;;  %v110_v21 = vld [vmem:[#allocation2 + $0xf8] sm:$0xff] }
  0x25   :  { %427 = vmatprep.subr.bf16.mxu1 %v426_v56  ;;  %v51_v15 = vld [vmem:[%s667_s2 + $0x60] sm:$0xff]  ;;  %v72_v16 = vld [vmem:[%s666_s1 + $0x8] sm:$0xff]  ;;  %v69_v22 = vld [vmem:[%s667_s2 + $0xf0] sm:$0xff]  ;;  %v404_v24 = vpack.c.bf16 %v92_v12, %v91_v11  ;;  %v406_v26 = vpack.c.bf16 %v110_v21, %v109_v20 }
  0x26   :  { %v32_v17 = vld [vmem:[%s665_s0 + $0x8] sm:$0xff]  ;;  %175 = vmatprep.mubr.f32.mxu0 %v72_v16  ;;  %v70_v23 = vld [vmem:[%s667_s2 + $0xf8] sm:$0xff]  ;;  %v93_v27 = vld [vmem:[#allocation2 + $0x70] sm:$0xff] }
  0x27   :  { %397 = vmatpush3.bf16.msra.mxu0 %v396_v62  ;;  %v52_v19 = vld [vmem:[%s667_s2 + $0x68] sm:$0xff]  ;;  %260 = vmatprep.mubr.f32.mxu1 %v32_v17  ;;  %v94_v28 = vld [vmem:[#allocation2 + $0x78] sm:$0xff]  ;;  %v438_v29 = vpack.c.bf16 %v70_v23, %v69_v22  ;;  %v53_v30 = vld [vmem:[%s667_s2 + $0x70] sm:$0xff] }
  0x28   :  { %429 = vmatpush3.bf16.msra.mxu1 %v428_v63  ;;  %399 = vmatprep.subr.bf16.mxu0 %v398_v0  ;;  %v436_v25 = vpack.c.bf16 %v52_v19, %v51_v15  ;;  %v54_v31 = vld [vmem:[%s667_s2 + $0x78] sm:$0xff]  ;;  %v408_v32 = vpack.c.bf16 %v94_v28, %v93_v27  ;;  %v71_v34 = vld [vmem:[%s666_s1] sm:$0xff]  ;;  %v73_v38 = vld [vmem:[%s666_s1 + $0x10] sm:$0xff] }
  0x29   :  { %431 = vmatprep.subr.bf16.mxu1 %v430_v4  ;;  %v440_v33 = vpack.c.bf16 %v54_v31, %v53_v30  ;;  %v31_v35 = vld [vmem:[%s665_s0] sm:$0xff]  ;;  %v74_v36 = vld [vmem:[%s666_s1 + $0x18] sm:$0xff]  ;;  %v33_v39 = vld [vmem:[%s665_s0 + $0x10] sm:$0xff] }
  0x2a   :  { %v34_v37 = vld [vmem:[%s665_s0 + $0x18] sm:$0xff]  ;;  %v76_v40 = vld [vmem:[%s666_s1 + $0x28] sm:$0xff]  ;;  %v75_v42 = vld [vmem:[%s666_s1 + $0x20] sm:$0xff] }
  0x2b   :  { %401 = vmatpush3.bf16.msra.mxu0 %v400_v10  ;;  %v36_v41 = vld [vmem:[%s665_s0 + $0x28] sm:$0xff]  ;;  %v35_v43 = vld [vmem:[%s665_s0 + $0x20] sm:$0xff]  ;;  %v78_v44 = vld [vmem:[%s666_s1 + $0x38] sm:$0xff] }
  0x2c   :  { %433 = vmatpush3.bf16.msra.mxu1 %v432_v13  ;;  %403 = vmatprep.subr.bf16.mxu0 %v402_v14  ;;  %v38_v45 = vld [vmem:[%s665_s0 + $0x38] sm:$0xff]  ;;  %v77_v46 = vld [vmem:[%s666_s1 + $0x30] sm:$0xff] }
  0x2d   :  { %435 = vmatprep.subr.bf16.mxu1 %v434_v18  ;;  %v37_v47 = vld [vmem:[%s665_s0 + $0x30] sm:$0xff] }
  0x2f   :  { %405 = vmatpush3.bf16.msra.mxu0 %v404_v24 }
  0x30   :  { %437 = vmatpush3.bf16.msra.mxu1 %v436_v25  ;;  %407 = vmatprep.subr.bf16.mxu0 %v406_v26 }
  0x31   :  { %439 = vmatprep.subr.bf16.mxu1 %v438_v29 }
  0x33   :  { %409 = vmatpush3.bf16.msra.mxu0 %v408_v32 }
  0x34   :  { %441 = vmatpush3.bf16.msra.mxu1 %v440_v33 }
  0x36   :  { %176 = vmatmul.mubr.f32.vlgmr.msra.gmra.mrb[0].mxu0 %v71_v34 }
  0x37   :  { %261 = vmatmul.mubr.f32.vlgmr.msra.gmra.mrb[0].mxu1 %v31_v35  ;;  %180 = vmatprep.mubr.f32.mxu0 %v74_v36 }
  0x38   :  { %265 = vmatprep.mubr.f32.mxu1 %v34_v37 }
  0x3a   :  { %181 = vmatmul.mubr.f32.gmra.mrb[2].mxu0 %v73_v38 }
  0x3b   :  { %266 = vmatmul.mubr.f32.gmra.mrb[2].mxu1 %v33_v39  ;;  %185 = vmatprep.mubr.f32.mxu0 %v76_v40 }
  0x3c   :  { %270 = vmatprep.mubr.f32.mxu1 %v36_v41 }
  0x3e   :  { %186 = vmatmul.mubr.f32.gmra.mrb[4].mxu0 %v75_v42 }
  0x3f   :  { %271 = vmatmul.mubr.f32.gmra.mrb[4].mxu1 %v35_v43  ;;  %190 = vmatprep.mubr.f32.mxu0 %v78_v44 }
  0x40   :  { %275 = vmatprep.mubr.f32.mxu1 %v38_v45 }
  0x42   :  { %191 = vmatmul.mubr.f32.gmra.mrb[6].mxu0 %v77_v46 }
  0x43   :  { %276 = vmatmul.mubr.f32.gmra.mrb[6].mxu1 %v37_v47 }
 0x109   :  { %v322_v48 = vpop.f32.mrb[0].mxu0 }
 0x10a   :  { %v366_v49 = vpop.f32.mrb[0].mxu1  ;;  %v323_v50 = vpop.f32.mrb[1].mxu0 }
 0x10b   :  { %v324_v51 = vadd.f32 %v323_v50, %v322_v48  ;;  %v367_v52 = vpop.f32.mrb[1].mxu1 }
 0x10c   :  { %v368_v53 = vadd.f32 %v367_v52, %v366_v49 }
 0x10d   :  { %v325_v54 = vpop.f32.mrb[2].mxu0 }
 0x10e   :  { %v263_v55 = vadd.f32 %v368_v53, %v324_v51  ;;  %v369_v56 = vpop.f32.mrb[2].mxu1  ;;  %v326_v57 = vpop.f32.mrb[3].mxu0 }
 0x10f   :  { %v327_v58 = vadd.f32 %v326_v57, %v325_v54  ;;  %v370_v59 = vpop.f32.mrb[3].mxu1 }
 0x110   :  { %281 = vst [vmem:[%s669_s4] sm:$0xff] %v263_v55  ;;  %v371_v60 = vadd.f32 %v370_v59, %v369_v56 }
 0x111   :  { %v328_v61 = vpop.f32.mrb[4].mxu0 }
 0x112   :  { %v268_v62 = vadd.f32 %v371_v60, %v327_v58  ;;  %v372_v63 = vpop.f32.mrb[4].mxu1  ;;  %v329_v0 = vpop.f32.mrb[5].mxu0 }
 0x113   :  { %v330_v1 = vadd.f32 %v329_v0, %v328_v61  ;;  %v373_v2 = vpop.f32.mrb[5].mxu1 }
 0x114   :  { %282 = vst [vmem:[%s669_s4 + $0x8] sm:$0xff] %v268_v62  ;;  %v374_v3 = vadd.f32 %v373_v2, %v372_v63 }
 0x115   :  { %v331_v4 = vpop.f32.mrb[6].mxu0 }
 0x116   :  { %v273_v5 = vadd.f32 %v374_v3, %v330_v1  ;;  %v375_v6 = vpop.f32.mrb[6].mxu1  ;;  %v332_v7 = vpop.f32.mrb[7].mxu0 }
 0x117   :  { %v333_v8 = vadd.f32 %v332_v7, %v331_v4  ;;  %v376_v9 = vpop.f32.mrb[7].mxu1 }
 0x118   :  { %283 = vst [vmem:[%s669_s4 + $0x10] sm:$0xff] %v273_v5  ;;  %v377_v10 = vadd.f32 %v376_v9, %v375_v6 }
 0x11a   :  { %v278_v11 = vadd.f32 %v377_v10, %v333_v8 }
 0x11c   :  { %284 = vst [vmem:[%s669_s4 + $0x18] sm:$0xff] %v278_v11 }
 0x11d   :  { %289 = vsyncpa [#allocation3], 1 }

// kernel: _lambda_.5
= control target key start
LH: loop header
LB: loop body
LE: loop exit
PB: predicated region body
PF: predicated region fallthrough
CT: control target
= control target key end

     0   :  { %vm76_vm0 = vcmask 130048   ;;  %s360_s0 = inlined_call_operand.<no memory space> [shape: s32[1], index: 0, kind: input, shape index: {}]   ;;  %s361_s1 = inlined_call_operand.vmem [shape: f32[16,16], index: 1, kind: input, shape index: {}]   ;;  %s362_s2 = inlined_call_operand.vmem [shape: f32[16,16], index: 2, kind: input, shape index: {}]   ;;  %s363_s3 = inlined_call_operand.vmem [shape: f32[32,128], index: 3, kind: input, shape index: {}, may-alias: {3,4}]   ;;  %s364_s4 = inlined_call_operand.vmem [shape: f32[32,128], index: 4, kind: input, shape index: {}, may-alias: {3,4}]   ;;  %s365_s5 = inlined_call_operand.vmem [shape: f32[16,128], index: 5, kind: output, shape index: {}]  }
   0x1   :  { %s257_s20 = sshll.u32 %s360_s0, 1  ;;  %v68_v0 = vld [vmem:[%s361_s1] sm:$0xff]  ;;  %v69_v8 = vld [vmem:[%s361_s1 + $0x8] sm:$0xff] }
   0x2   :  { %v72_v1 = vld [vmem:[%s362_s2] sm:$0xff]  ;;  %p52_p0 = scmp.lt.s32.totalorder %s257_s20, 3  ;;  %s266_s25 = sadd.s32 2, %s257_s20  ;;  %286 = vmatprep.mubr.msk.f32.mxu0 %vm76_vm0, %v68_v0  ;;  %v73_v9 = vld [vmem:[%s362_s2 + $0x8] sm:$0xff] }
   0x3   :  { %279 = vmatprep.mubr.msk.f32.mxu1 %vm76_vm0, %v72_v1  ;;  %p61_p1 = scmp.lt.s32.totalorder %s266_s25, 3 }
   0x4   :  { %s367_s20 = smov (!%p52_p0, %s257_s20), 3 }
   0x5   :  { %s369_s25 = smov (!%p61_p1, %s266_s25), 3  ;;  %s258_s26 = sshll.u32 %s367_s20, 3 }
   0x6   :  { %s55_s28 = scalar_lea.vmem %s363_s3, %s258_s26  ;;  %s260_s29 = sshll.u32 %s369_s25, 3 }
   0x7   :  { %v70_v2 = vld [vmem:[%s55_s28] sm:$0xff]  ;;  %v71_v3 = vld [vmem:[%s55_s28 + $0x8] sm:$0xff]  ;;  %s64_s7 = scalar_lea.vmem %s364_s4, %s260_s29 }
   0x8   :  { %v293_v4 = vpack.c.bf16 %v71_v3, %v70_v2  ;;  %v74_v5 = vld [vmem:[%s64_s7] sm:$0xff]  ;;  %v75_v6 = vld [vmem:[%s64_s7 + $0x8] sm:$0xff] }
   0x9   :  { %v289_v7 = vpack.c.bf16 %v75_v6, %v74_v5 }
   0xa   :  { %294 = vmatprep.subr.bf16.mxu0 %v293_v4 }
   0xb   :  { %290 = vmatprep.subr.bf16.mxu1 %v289_v7  ;;  %296 = vmatpush3.bf16.msra.mxu0 %v293_v4 }
   0xc   :  { %292 = vmatpush3.bf16.msra.mxu1 %v289_v7 }
   0xe   :  { %287 = vmatmul.mubr.msk.f32.vlgmr.msra.gmra.mrb[0].mxu0 %vm76_vm0, %v69_v8 }
   0xf   :  { %280 = vmatmul.mubr.msk.f32.vlgmr.msra.gmra.mrb[0].mxu1 %vm76_vm0, %v73_v9 }
  0xe1   :  { %v288_v10 = vpop.f32.mrb[0].mxu0 }
  0xe2   :  { %v281_v11 = vpop.f32.mrb[0].mxu1  ;;  %v230_v12 = vpop.f32.mrb[1].mxu0 }
  0xe3   :  { %v236_v13 = vadd.f32 %v288_v10, %v281_v11  ;;  %v149_v14 = vpop.f32.mrb[1].mxu1 }
  0xe4   :  { %v231_v15 = vadd.f32 %v230_v12, %v149_v14 }
  0xe5   :  { %240 = vst [vmem:[%s365_s5 + $0x8] sm:$0xff] %v236_v13 }
  0xe6   :  { %239 = vst [vmem:[%s365_s5] sm:$0xff] %v231_v15 }

// kernel: _lambda_.4
= control target key start
LH: loop header
LB: loop body
LE: loop exit
PB: predicated region body
PF: predicated region fallthrough
CT: control target
= control target key end

     0   :  { %s6639_s3 = inlined_call_operand.vmem [shape: bf16[512,1024], index: 3, kind: input, shape index: {}]   ;;  %s6640_s1 = inlined_call_operand.vmem [shape: bf16[16,512], index: 1, kind: input, shape index: {}]   ;;  %s6641_s0 = inlined_call_operand.vmem [shape: bf16[16,512], index: 0, kind: input, shape index: {}]   ;;  %s6642_s2 = inlined_call_operand.vmem [shape: bf16[512,1024], index: 2, kind: input, shape index: {}]   ;;  %s6643_s4 = inlined_call_operand.vmem [shape: f32[512,128], index: 4, kind: input, shape index: {}]   ;;  %s6644_s5 = inlined_call_operand.vmem [shape: f32[16,128], index: 5, kind: output, shape index: {}]  }
   0x1   :  { %v284_v0 = vld [vmem:[%s6639_s3] sm:$0xff]  ;;  %v285_v2 = vld [vmem:[%s6639_s3 + $0x8] sm:$0xff] }
   0x2   :  { %v288_v1 = vld [vmem:[%s6639_s3 + $0x20] sm:$0xff]  ;;  %v289_v4 = vld [vmem:[%s6639_s3 + $0x28] sm:$0xff] }
   0x3   :  { %v4088_v3 = vcombine.high %v284_v0, %v288_v1  ;;  %v4087_v5 = vcombine.low %v284_v0, %v288_v1  ;;  %v292_v6 = vld [vmem:[%s6639_s3 + $0x40] sm:$0xff]  ;;  %v4090_v8 = vcombine.high %v285_v2, %v289_v4  ;;  %v4089_v9 = vcombine.low %v285_v2, %v289_v4  ;;  %v293_v11 = vld [vmem:[%s6639_s3 + $0x48] sm:$0xff] }
   0x4   :  { %v296_v7 = vld [vmem:[%s6639_s3 + $0x60] sm:$0xff]  ;;  %v297_v12 = vld [vmem:[%s6639_s3 + $0x68] sm:$0xff] }
   0x5   :  { %v4096_v10 = vcombine.high %v292_v6, %v296_v7  ;;  %v300_v13 = vld [vmem:[%s6639_s3 + $0x80] sm:$0xff]  ;;  %1840 = vmatprep.subr.bf16.mxu0 %v4088_v3  ;;  %v4098_v14 = vcombine.high %v293_v11, %v297_v12  ;;  %v301_v16 = vld [vmem:[%s6639_s3 + $0x88] sm:$0xff]  ;;  %1926 = vmatprep.subr.bf16.mxu1 %v4090_v8  ;;  %v4095_v18 = vcombine.low %v292_v6, %v296_v7 }
   0x6   :  { %v304_v15 = vld [vmem:[%s6639_s3 + $0xa0] sm:$0xff]  ;;  %v305_v17 = vld [vmem:[%s6639_s3 + $0xa8] sm:$0xff]  ;;  %1841 = vmatpush1.bf16.msra.mxu0 %v4087_v5  ;;  %1927 = vmatpush1.bf16.msra.mxu1 %v4089_v9  ;;  %v4097_v19 = vcombine.low %v293_v11, %v297_v12 }
   0x7   :  { %1842 = vmatprep.subr.bf16.mxu0 %v4096_v10  ;;  %v4104_v20 = vcombine.high %v300_v13, %v304_v15  ;;  %1928 = vmatprep.subr.bf16.mxu1 %v4098_v14  ;;  %v4106_v21 = vcombine.high %v301_v16, %v305_v17  ;;  %v308_v22 = vld [vmem:[%s6639_s3 + $0xc0] sm:$0xff]  ;;  %v309_v24 = vld [vmem:[%s6639_s3 + $0xc8] sm:$0xff]  ;;  %v4103_v26 = vcombine.low %v300_v13, %v304_v15 }
   0x8   :  { %v312_v23 = vld [vmem:[%s6639_s3 + $0xe0] sm:$0xff]  ;;  %v313_v25 = vld [vmem:[%s6639_s3 + $0xe8] sm:$0xff]  ;;  %v4105_v27 = vcombine.low %v301_v16, %v305_v17 }
   0x9   :  { %v4112_v28 = vcombine.high %v308_v22, %v312_v23  ;;  %v4114_v29 = vcombine.high %v309_v24, %v313_v25  ;;  %v316_v30 = vld [vmem:[%s6639_s3 + $0x100] sm:$0xff]  ;;  %v317_v32 = vld [vmem:[%s6639_s3 + $0x108] sm:$0xff]  ;;  %v4111_v34 = vcombine.low %v308_v22, %v312_v23  ;;  %v4113_v35 = vcombine.low %v309_v24, %v313_v25 }
   0xa   :  { %1843 = vmatpush1.bf16.msra.mxu0 %v4095_v18  ;;  %1929 = vmatpush1.bf16.msra.mxu1 %v4097_v19  ;;  %v320_v31 = vld [vmem:[%s6639_s3 + $0x120] sm:$0xff]  ;;  %v321_v33 = vld [vmem:[%s6639_s3 + $0x128] sm:$0xff] }
   0xb   :  { %1844 = vmatprep.subr.bf16.mxu0 %v4104_v20  ;;  %1930 = vmatprep.subr.bf16.mxu1 %v4106_v21  ;;  %v4120_v36 = vcombine.high %v316_v30, %v320_v31  ;;  %v4122_v37 = vcombine.high %v317_v32, %v321_v33  ;;  %v324_v38 = vld [vmem:[%s6639_s3 + $0x140] sm:$0xff]  ;;  %v325_v40 = vld [vmem:[%s6639_s3 + $0x148] sm:$0xff]  ;;  %v4119_v42 = vcombine.low %v316_v30, %v320_v31 }
   0xc   :  { %v328_v39 = vld [vmem:[%s6639_s3 + $0x160] sm:$0xff]  ;;  %v329_v41 = vld [vmem:[%s6639_s3 + $0x168] sm:$0xff]  ;;  %v4121_v43 = vcombine.low %v317_v32, %v321_v33 }
   0xd   :  { %v4128_v44 = vcombine.high %v324_v38, %v328_v39  ;;  %v4130_v45 = vcombine.high %v325_v40, %v329_v41  ;;  %v332_v46 = vld [vmem:[%s6639_s3 + $0x180] sm:$0xff]  ;;  %v333_v48 = vld [vmem:[%s6639_s3 + $0x188] sm:$0xff]  ;;  %v4127_v50 = vcombine.low %v324_v38, %v328_v39  ;;  %v4129_v51 = vcombine.low %v325_v40, %v329_v41 }
   0xe   :  { %1845 = vmatpush1.bf16.msra.mxu0 %v4103_v26  ;;  %1931 = vmatpush1.bf16.msra.mxu1 %v4105_v27  ;;  %v336_v47 = vld [vmem:[%s6639_s3 + $0x1a0] sm:$0xff]  ;;  %v337_v49 = vld [vmem:[%s6639_s3 + $0x1a8] sm:$0xff] }
   0xf   :  { %1846 = vmatprep.subr.bf16.mxu0 %v4112_v28  ;;  %1932 = vmatprep.subr.bf16.mxu1 %v4114_v29  ;;  %v4136_v52 = vcombine.high %v332_v46, %v336_v47  ;;  %v4138_v53 = vcombine.high %v333_v48, %v337_v49  ;;  %v340_v54 = vld [vmem:[%s6639_s3 + $0x1c0] sm:$0xff]  ;;  %v341_v57 = vld [vmem:[%s6639_s3 + $0x1c8] sm:$0xff]  ;;  %v4135_v59 = vcombine.low %v332_v46, %v336_v47 }
  0x10   :  { %v344_v55 = vld [vmem:[%s6639_s3 + $0x1e0] sm:$0xff]  ;;  %v345_v58 = vld [vmem:[%s6639_s3 + $0x1e8] sm:$0xff]  ;;  %v4137_v60 = vcombine.low %v333_v48, %v337_v49 }
  0x11   :  { %v4926_v56 = vld [vmem:[%s6640_s1 + $0x4] ss:$16 sps:$4 sm:$0xff]   ;;  %v4144_v61 = vcombine.high %v340_v54, %v344_v55  ;;  %v4146_v62 = vcombine.high %v341_v57, %v345_v58  ;;  %v349_v1 = vld [vmem:[%s6639_s3 + $0x208] sm:$0xff]  ;;  %v4143_v3 = vcombine.low %v340_v54, %v344_v55  ;;  %v4145_v4 = vcombine.low %v341_v57, %v345_v58 }
  0x12   :  { %1847 = vmatpush1.bf16.msra.mxu0 %v4111_v34  ;;  %1933 = vmatpush1.bf16.msra.mxu1 %v4113_v35  ;;  %v348_v63 = vld [vmem:[%s6639_s3 + $0x200] sm:$0xff]  ;;  %v353_v2 = vld [vmem:[%s6639_s3 + $0x228] sm:$0xff] }
  0x13   :  { %1848 = vmatprep.subr.bf16.mxu0 %v4120_v36  ;;  %1934 = vmatprep.subr.bf16.mxu1 %v4122_v37  ;;  %v352_v0 = vld [vmem:[%s6639_s3 + $0x220] sm:$0xff]  ;;  %v4154_v6 = vcombine.high %v349_v1, %v353_v2  ;;  %v357_v9 = vld [vmem:[%s6639_s3 + $0x248] sm:$0xff]  ;;  %v4153_v12 = vcombine.low %v349_v1, %v353_v2 }
  0x14   :  { %1872 = vmatprep.mubr.bf16.mxu0 %v4926_v56  ;;  %1958 = vmatprep.mubr.bf16.mxu1 %v4926_v56  ;;  %v4152_v5 = vcombine.high %v348_v63, %v352_v0  ;;  %v356_v7 = vld [vmem:[%s6639_s3 + $0x240] sm:$0xff]  ;;  %v361_v10 = vld [vmem:[%s6639_s3 + $0x268] sm:$0xff]  ;;  %v4151_v11 = vcombine.low %v348_v63, %v352_v0 }
  0x15   :  { %v360_v8 = vld [vmem:[%s6639_s3 + $0x260] sm:$0xff]  ;;  %v4162_v14 = vcombine.high %v357_v9, %v361_v10  ;;  %v365_v17 = vld [vmem:[%s6639_s3 + $0x288] sm:$0xff]  ;;  %v4161_v20 = vcombine.low %v357_v9, %v361_v10 }
  0x16   :  { %1849 = vmatpush1.bf16.msra.mxu0 %v4119_v42  ;;  %1935 = vmatpush1.bf16.msra.mxu1 %v4121_v43  ;;  %v4160_v13 = vcombine.high %v356_v7, %v360_v8  ;;  %v364_v15 = vld [vmem:[%s6639_s3 + $0x280] sm:$0xff]  ;;  %v369_v18 = vld [vmem:[%s6639_s3 + $0x2a8] sm:$0xff]  ;;  %v4159_v19 = vcombine.low %v356_v7, %v360_v8 }
  0x17   :  { %1850 = vmatprep.subr.bf16.mxu0 %v4128_v44  ;;  %1936 = vmatprep.subr.bf16.mxu1 %v4130_v45  ;;  %v368_v16 = vld [vmem:[%s6639_s3 + $0x2a0] sm:$0xff]  ;;  %v4170_v22 = vcombine.high %v365_v17, %v369_v18  ;;  %v373_v25 = vld [vmem:[%s6639_s3 + $0x2c8] sm:$0xff]  ;;  %v4169_v28 = vcombine.low %v365_v17, %v369_v18 }
  0x18   :  { %v4168_v21 = vcombine.high %v364_v15, %v368_v16  ;;  %v372_v23 = vld [vmem:[%s6639_s3 + $0x2c0] sm:$0xff]  ;;  %v377_v26 = vld [vmem:[%s6639_s3 + $0x2e8] sm:$0xff]  ;;  %v4167_v27 = vcombine.low %v364_v15, %v368_v16 }
  0x19   :  { %v376_v24 = vld [vmem:[%s6639_s3 + $0x2e0] sm:$0xff]  ;;  %v4178_v30 = vcombine.high %v373_v25, %v377_v26  ;;  %v381_v33 = vld [vmem:[%s6639_s3 + $0x308] sm:$0xff]  ;;  %v4177_v36 = vcombine.low %v373_v25, %v377_v26 }
  0x1a   :  { %1851 = vmatpush1.bf16.msra.mxu0 %v4127_v50  ;;  %1937 = vmatpush1.bf16.msra.mxu1 %v4129_v51  ;;  %v4176_v29 = vcombine.high %v372_v23, %v376_v24  ;;  %v380_v31 = vld [vmem:[%s6639_s3 + $0x300] sm:$0xff]  ;;  %v385_v34 = vld [vmem:[%s6639_s3 + $0x328] sm:$0xff]  ;;  %v4175_v35 = vcombine.low %v372_v23, %v376_v24 }
  0x1b   :  { %1852 = vmatprep.subr.bf16.mxu0 %v4136_v52  ;;  %1938 = vmatprep.subr.bf16.mxu1 %v4138_v53  ;;  %v384_v32 = vld [vmem:[%s6639_s3 + $0x320] sm:$0xff]  ;;  %v4186_v38 = vcombine.high %v381_v33, %v385_v34  ;;  %v389_v41 = vld [vmem:[%s6639_s3 + $0x348] sm:$0xff]  ;;  %v4185_v44 = vcombine.low %v381_v33, %v385_v34 }
  0x1c   :  { %v4184_v37 = vcombine.high %v380_v31, %v384_v32  ;;  %v388_v39 = vld [vmem:[%s6639_s3 + $0x340] sm:$0xff]  ;;  %v393_v42 = vld [vmem:[%s6639_s3 + $0x368] sm:$0xff]  ;;  %v4183_v43 = vcombine.low %v380_v31, %v384_v32 }
  0x1d   :  { %v392_v40 = vld [vmem:[%s6639_s3 + $0x360] sm:$0xff]  ;;  %v4194_v46 = vcombine.high %v389_v41, %v393_v42  ;;  %v397_v49 = vld [vmem:[%s6639_s3 + $0x388] sm:$0xff]  ;;  %v4193_v52 = vcombine.low %v389_v41, %v393_v42 }
  0x1e   :  { %1853 = vmatpush1.bf16.msra.mxu0 %v4135_v59  ;;  %1939 = vmatpush1.bf16.msra.mxu1 %v4137_v60  ;;  %v4192_v45 = vcombine.high %v388_v39, %v392_v40  ;;  %v396_v47 = vld [vmem:[%s6639_s3 + $0x380] sm:$0xff]  ;;  %v401_v50 = vld [vmem:[%s6639_s3 + $0x3a8] sm:$0xff]  ;;  %v4191_v51 = vcombine.low %v388_v39, %v392_v40 }
  0x1f   :  { %1854 = vmatprep.subr.bf16.mxu0 %v4144_v61  ;;  %1940 = vmatprep.subr.bf16.mxu1 %v4146_v62  ;;  %v400_v48 = vld [vmem:[%s6639_s3 + $0x3a0] sm:$0xff]  ;;  %v4202_v54 = vcombine.high %v397_v49, %v401_v50  ;;  %v405_v58 = vld [vmem:[%s6639_s3 + $0x3c8] sm:$0xff]  ;;  %v4201_v61 = vcombine.low %v397_v49, %v401_v50 }
  0x20   :  { %v4200_v53 = vcombine.high %v396_v47, %v400_v48  ;;  %v404_v55 = vld [vmem:[%s6639_s3 + $0x3c0] sm:$0xff]  ;;  %v409_v59 = vld [vmem:[%s6639_s3 + $0x3e8] sm:$0xff]  ;;  %v4199_v60 = vcombine.low %v396_v47, %v400_v48 }
  0x21   :  { %v408_v57 = vld [vmem:[%s6639_s3 + $0x3e0] sm:$0xff]  ;;  %v4210_v63 = vcombine.high %v405_v58, %v409_v59  ;;  %v413_v2 = vld [vmem:[%s6639_s3 + $0x408] sm:$0xff] }
  0x22   :  { %1855 = vmatpush1.bf16.msra.mxu0 %v4143_v3  ;;  %1941 = vmatpush1.bf16.msra.mxu1 %v4145_v4  ;;  %v4208_v62 = vcombine.high %v404_v55, %v408_v57  ;;  %v412_v0 = vld [vmem:[%s6639_s3 + $0x400] sm:$0xff]  ;;  %v417_v3 = vld [vmem:[%s6639_s3 + $0x428] sm:$0xff]  ;;  %v4207_v4 = vcombine.low %v404_v55, %v408_v57 }
  0x23   :  { %1856 = vmatprep.subr.bf16.mxu0 %v4152_v5  ;;  %1942 = vmatprep.subr.bf16.mxu1 %v4154_v6  ;;  %v416_v1 = vld [vmem:[%s6639_s3 + $0x420] sm:$0xff]  ;;  %v4209_v5 = vcombine.low %v405_v58, %v409_v59  ;;  %v4218_v7 = vcombine.high %v413_v2, %v417_v3 }
  0x24   :  { %v4216_v6 = vcombine.high %v412_v0, %v416_v1  ;;  %v420_v8 = vld [vmem:[%s6639_s3 + $0x440] sm:$0xff] }
  0x25   :  { %v424_v9 = vld [vmem:[%s6639_s3 + $0x460] sm:$0xff] }
  0x26   :  { %1857 = vmatpush1.bf16.msra.mxu0 %v4151_v11  ;;  %1943 = vmatpush1.bf16.msra.mxu1 %v4153_v12  ;;  %v5053_v10 = vld [vmem:[%s6640_s1] ss:$16 sps:$4 sm:$0xff]   ;;  %v421_v11 = vld [vmem:[%s6639_s3 + $0x448] sm:$0xff]  ;;  %v4224_v15 = vcombine.high %v420_v8, %v424_v9 }
  0x27   :  { %1858 = vmatprep.subr.bf16.mxu0 %v4160_v13  ;;  %1944 = vmatprep.subr.bf16.mxu1 %v4162_v14  ;;  %v425_v12 = vld [vmem:[%s6639_s3 + $0x468] sm:$0xff]  ;;  %v4215_v13 = vcombine.low %v412_v0, %v416_v1  ;;  %v4217_v14 = vcombine.low %v413_v2, %v417_v3  ;;  %v428_v17 = vld [vmem:[%s6639_s3 + $0x480] sm:$0xff] }
  0x28   :  { %v4226_v16 = vcombine.high %v421_v11, %v425_v12  ;;  %v432_v18 = vld [vmem:[%s6639_s3 + $0x4a0] sm:$0xff]  ;;  %v4225_v23 = vcombine.low %v421_v11, %v425_v12 }
  0x29   :  { %v4232_v24 = vcombine.high %v428_v17, %v432_v18  ;;  %v436_v26 = vld [vmem:[%s6639_s3 + $0x4c0] sm:$0xff] }
  0x2a   :  { %1859 = vmatpush1.bf16.msra.mxu0 %v4159_v19  ;;  %1945 = vmatpush1.bf16.msra.mxu1 %v4161_v20  ;;  %v5070_v19 = vld [vmem:[%s6640_s1 + $0xc] ss:$16 sps:$4 sm:$0xff]   ;;  %v444_v34 = vld [vmem:[%s6639_s3 + $0x500] sm:$0xff] }
  0x2b   :  { %1860 = vmatprep.subr.bf16.mxu0 %v4168_v21  ;;  %1946 = vmatprep.subr.bf16.mxu1 %v4170_v22  ;;  %v429_v20 = vld [vmem:[%s6639_s3 + $0x488] sm:$0xff]  ;;  %v4223_v22 = vcombine.low %v420_v8, %v424_v9  ;;  %v452_v42 = vld [vmem:[%s6639_s3 + $0x540] sm:$0xff] }
  0x2c   :  { %v433_v21 = vld [vmem:[%s6639_s3 + $0x4a8] sm:$0xff]  ;;  %v460_v50 = vld [vmem:[%s6639_s3 + $0x580] sm:$0xff] }
  0x2d   :  { %v4234_v25 = vcombine.high %v429_v20, %v433_v21  ;;  %v4233_v31 = vcombine.low %v429_v20, %v433_v21  ;;  %v468_v59 = vld [vmem:[%s6639_s3 + $0x5c0] sm:$0xff] }
  0x2e   :  { %1861 = vmatpush1.bf16.msra.mxu0 %v4167_v27  ;;  %1947 = vmatpush1.bf16.msra.mxu1 %v4169_v28  ;;  %v440_v27 = vld [vmem:[%s6639_s3 + $0x4e0] sm:$0xff]  ;;  %v437_v28 = vld [vmem:[%s6639_s3 + $0x4c8] sm:$0xff] }
  0x2f   :  { %1862 = vmatprep.subr.bf16.mxu0 %v4176_v29  ;;  %1948 = vmatprep.subr.bf16.mxu1 %v4178_v30  ;;  %v441_v29 = vld [vmem:[%s6639_s3 + $0x4e8] sm:$0xff]  ;;  %v4231_v30 = vcombine.low %v428_v17, %v432_v18  ;;  %v4240_v32 = vcombine.high %v436_v26, %v440_v27  ;;  %v476_v3 = vld [vmem:[%s6639_s3 + $0x600] sm:$0xff] }
  0x30   :  { %v4242_v33 = vcombine.high %v437_v28, %v441_v29  ;;  %v4241_v39 = vcombine.low %v437_v28, %v441_v29  ;;  %v484_v12 = vld [vmem:[%s6639_s3 + $0x640] sm:$0xff] }
  0x31   :  { %v492_v21 = vld [vmem:[%s6639_s3 + $0x680] sm:$0xff] }
  0x32   :  { %1863 = vmatpush1.bf16.msra.mxu0 %v4175_v35  ;;  %1949 = vmatpush1.bf16.msra.mxu1 %v4177_v36  ;;  %v448_v35 = vld [vmem:[%s6639_s3 + $0x520] sm:$0xff]  ;;  %v445_v36 = vld [vmem:[%s6639_s3 + $0x508] sm:$0xff] }
  0x33   :  { %1864 = vmatprep.subr.bf16.mxu0 %v4184_v37  ;;  %1950 = vmatprep.subr.bf16.mxu1 %v4186_v38  ;;  %v449_v37 = vld [vmem:[%s6639_s3 + $0x528] sm:$0xff]  ;;  %v4239_v38 = vcombine.low %v436_v26, %v440_v27  ;;  %v4248_v40 = vcombine.high %v444_v34, %v448_v35  ;;  %v500_v29 = vld [vmem:[%s6639_s3 + $0x6c0] sm:$0xff] }
  0x34   :  { %v4250_v41 = vcombine.high %v445_v36, %v449_v37  ;;  %v4249_v47 = vcombine.low %v445_v36, %v449_v37  ;;  %v508_v37 = vld [vmem:[%s6639_s3 + $0x700] sm:$0xff] }
  0x36   :  { %1865 = vmatpush1.bf16.msra.mxu0 %v4183_v43  ;;  %1951 = vmatpush1.bf16.msra.mxu1 %v4185_v44  ;;  %v456_v43 = vld [vmem:[%s6639_s3 + $0x560] sm:$0xff]  ;;  %v453_v44 = vld [vmem:[%s6639_s3 + $0x548] sm:$0xff] }
  0x37   :  { %1866 = vmatprep.subr.bf16.mxu0 %v4192_v45  ;;  %1952 = vmatprep.subr.bf16.mxu1 %v4194_v46  ;;  %v457_v45 = vld [vmem:[%s6639_s3 + $0x568] sm:$0xff]  ;;  %v4247_v46 = vcombine.low %v444_v34, %v448_v35  ;;  %v4256_v48 = vcombine.high %v452_v42, %v456_v43 }
  0x38   :  { %v4258_v49 = vcombine.high %v453_v44, %v457_v45  ;;  %v4257_v55 = vcombine.low %v453_v44, %v457_v45  ;;  %v516_v45 = vld [vmem:[%s6639_s3 + $0x740] sm:$0xff] }
  0x3a   :  { %1867 = vmatpush1.bf16.msra.mxu0 %v4191_v51  ;;  %1953 = vmatpush1.bf16.msra.mxu1 %v4193_v52  ;;  %v464_v51 = vld [vmem:[%s6639_s3 + $0x5a0] sm:$0xff]  ;;  %v461_v52 = vld [vmem:[%s6639_s3 + $0x588] sm:$0xff] }
  0x3b   :  { %1868 = vmatprep.subr.bf16.mxu0 %v4200_v53  ;;  %1954 = vmatprep.subr.bf16.mxu1 %v4202_v54  ;;  %v465_v53 = vld [vmem:[%s6639_s3 + $0x5a8] sm:$0xff]  ;;  %v4255_v54 = vcombine.low %v452_v42, %v456_v43  ;;  %v4264_v57 = vcombine.high %v460_v50, %v464_v51 }
  0x3c   :  { %v4266_v58 = vcombine.high %v461_v52, %v465_v53  ;;  %v4265_v0 = vcombine.low %v461_v52, %v465_v53  ;;  %v524_v53 = vld [vmem:[%s6639_s3 + $0x780] sm:$0xff] }
  0x3e   :  { %1869 = vmatpush1.bf16.msra.mxu0 %v4199_v60  ;;  %1955 = vmatpush1.bf16.msra.mxu1 %v4201_v61  ;;  %v472_v60 = vld [vmem:[%s6639_s3 + $0x5e0] sm:$0xff]  ;;  %v469_v61 = vld [vmem:[%s6639_s3 + $0x5c8] sm:$0xff] }
  0x3f   :  { %1870 = vmatprep.subr.bf16.mxu0 %v4208_v62  ;;  %1956 = vmatprep.subr.bf16.mxu1 %v4210_v63  ;;  %v473_v62 = vld [vmem:[%s6639_s3 + $0x5e8] sm:$0xff]  ;;  %v4263_v63 = vcombine.low %v460_v50, %v464_v51  ;;  %v4272_v1 = vcombine.high %v468_v59, %v472_v60 }
  0x40   :  { %v4274_v2 = vcombine.high %v469_v61, %v473_v62  ;;  %v4273_v8 = vcombine.low %v469_v61, %v473_v62  ;;  %v532_v62 = vld [vmem:[%s6639_s3 + $0x7c0] sm:$0xff] }
  0x42   :  { %1871 = vmatpush1.bf16.msra.mxu0 %v4207_v4  ;;  %1957 = vmatpush1.bf16.msra.mxu1 %v4209_v5  ;;  %v480_v4 = vld [vmem:[%s6639_s3 + $0x620] sm:$0xff]  ;;  %v477_v5 = vld [vmem:[%s6639_s3 + $0x608] sm:$0xff] }
  0x43   :  { %1883 = vmatprep.subr.bf16.mxu0 %v4216_v6  ;;  %1969 = vmatprep.subr.bf16.mxu1 %v4218_v7  ;;  %v481_v6 = vld [vmem:[%s6639_s3 + $0x628] sm:$0xff]  ;;  %v4271_v7 = vcombine.low %v468_v59, %v472_v60  ;;  %v4280_v9 = vcombine.high %v476_v3, %v480_v4 }
  0x44   :  { %v4282_v11 = vcombine.high %v477_v5, %v481_v6  ;;  %v4281_v17 = vcombine.low %v477_v5, %v481_v6  ;;  %v286_v6 = vld [vmem:[%s6639_s3 + $0x10] sm:$0xff] }
  0x45   :  { %1873 = vmatmul.mubr.bf16.vlgmr.msra.gmra.mrb[0].mxu0 %v5053_v10  ;;  %1959 = vmatmul.mubr.bf16.vlgmr.msra.gmra.mrb[0].mxu1 %v5053_v10 }
  0x46   :  { %1884 = vmatpush1.bf16.msra.mxu0 %v4215_v13  ;;  %1970 = vmatpush1.bf16.msra.mxu1 %v4217_v14  ;;  %v488_v13 = vld [vmem:[%s6639_s3 + $0x660] sm:$0xff]  ;;  %v485_v14 = vld [vmem:[%s6639_s3 + $0x648] sm:$0xff] }
  0x47   :  { %1885 = vmatprep.subr.bf16.mxu0 %v4224_v15  ;;  %1971 = vmatprep.subr.bf16.mxu1 %v4226_v16  ;;  %v489_v15 = vld [vmem:[%s6639_s3 + $0x668] sm:$0xff]  ;;  %v4279_v16 = vcombine.low %v476_v3, %v480_v4  ;;  %v4288_v18 = vcombine.high %v484_v12, %v488_v13 }
  0x48   :  { %1915 = vmatprep.mubr.bf16.mxu0 %v5070_v19  ;;  %2001 = vmatprep.mubr.bf16.mxu1 %v5070_v19  ;;  %v4290_v20 = vcombine.high %v485_v14, %v489_v15  ;;  %v4289_v26 = vcombine.low %v485_v14, %v489_v15  ;;  %v294_v15 = vld [vmem:[%s6639_s3 + $0x50] sm:$0xff] }
  0x4a   :  { %1886 = vmatpush1.bf16.msra.mxu0 %v4223_v22  ;;  %1972 = vmatpush1.bf16.msra.mxu1 %v4225_v23  ;;  %v496_v22 = vld [vmem:[%s6639_s3 + $0x6a0] sm:$0xff]  ;;  %v493_v23 = vld [vmem:[%s6639_s3 + $0x688] sm:$0xff] }
  0x4b   :  { %1887 = vmatprep.subr.bf16.mxu0 %v4232_v24  ;;  %1973 = vmatprep.subr.bf16.mxu1 %v4234_v25  ;;  %v497_v24 = vld [vmem:[%s6639_s3 + $0x6a8] sm:$0xff]  ;;  %v4287_v25 = vcombine.low %v484_v12, %v488_v13  ;;  %v4296_v27 = vcombine.high %v492_v21, %v496_v22 }
  0x4c   :  { %v4298_v28 = vcombine.high %v493_v23, %v497_v24  ;;  %v4297_v34 = vcombine.low %v493_v23, %v497_v24 }
  0x4e   :  { %1888 = vmatpush1.bf16.msra.mxu0 %v4231_v30  ;;  %1974 = vmatpush1.bf16.msra.mxu1 %v4233_v31  ;;  %v504_v30 = vld [vmem:[%s6639_s3 + $0x6e0] sm:$0xff]  ;;  %v501_v31 = vld [vmem:[%s6639_s3 + $0x6c8] sm:$0xff] }
  0x4f   :  { %1889 = vmatprep.subr.bf16.mxu0 %v4240_v32  ;;  %1975 = vmatprep.subr.bf16.mxu1 %v4242_v33  ;;  %v505_v32 = vld [vmem:[%s6639_s3 + $0x6e8] sm:$0xff]  ;;  %v4295_v33 = vcombine.low %v492_v21, %v496_v22  ;;  %v4304_v35 = vcombine.high %v500_v29, %v504_v30 }
  0x50   :  { %v4306_v36 = vcombine.high %v501_v31, %v505_v32  ;;  %v4305_v42 = vcombine.low %v501_v31, %v505_v32 }
  0x52   :  { %1890 = vmatpush1.bf16.msra.mxu0 %v4239_v38  ;;  %1976 = vmatpush1.bf16.msra.mxu1 %v4241_v39  ;;  %v512_v38 = vld [vmem:[%s6639_s3 + $0x720] sm:$0xff]  ;;  %v509_v39 = vld [vmem:[%s6639_s3 + $0x708] sm:$0xff] }
  0x53   :  { %1891 = vmatprep.subr.bf16.mxu0 %v4248_v40  ;;  %1977 = vmatprep.subr.bf16.mxu1 %v4250_v41  ;;  %v513_v40 = vld [vmem:[%s6639_s3 + $0x728] sm:$0xff]  ;;  %v4303_v41 = vcombine.low %v500_v29, %v504_v30  ;;  %v4312_v43 = vcombine.high %v508_v37, %v512_v38 }
  0x54   :  { %v4314_v44 = vcombine.high %v509_v39, %v513_v40  ;;  %v4313_v50 = vcombine.low %v509_v39, %v513_v40 }
  0x56   :  { %1892 = vmatpush1.bf16.msra.mxu0 %v4247_v46  ;;  %1978 = vmatpush1.bf16.msra.mxu1 %v4249_v47  ;;  %v520_v46 = vld [vmem:[%s6639_s3 + $0x760] sm:$0xff]  ;;  %v517_v47 = vld [vmem:[%s6639_s3 + $0x748] sm:$0xff] }
  0x57   :  { %1893 = vmatprep.subr.bf16.mxu0 %v4256_v48  ;;  %1979 = vmatprep.subr.bf16.mxu1 %v4258_v49  ;;  %v521_v48 = vld [vmem:[%s6639_s3 + $0x768] sm:$0xff]  ;;  %v4311_v49 = vcombine.low %v508_v37, %v512_v38  ;;  %v4320_v51 = vcombine.high %v516_v45, %v520_v46 }
  0x58   :  { %v4322_v52 = vcombine.high %v517_v47, %v521_v48  ;;  %v4321_v59 = vcombine.low %v517_v47, %v521_v48  ;;  %v326_v48 = vld [vmem:[%s6639_s3 + $0x150] sm:$0xff] }
  0x5a   :  { %1894 = vmatpush1.bf16.msra.mxu0 %v4255_v54  ;;  %1980 = vmatpush1.bf16.msra.mxu1 %v4257_v55  ;;  %v528_v54 = vld [vmem:[%s6639_s3 + $0x7a0] sm:$0xff]  ;;  %v525_v55 = vld [vmem:[%s6639_s3 + $0x788] sm:$0xff] }
  0x5b   :  { %1895 = vmatprep.subr.bf16.mxu0 %v4264_v57  ;;  %1981 = vmatprep.subr.bf16.mxu1 %v4266_v58  ;;  %v529_v57 = vld [vmem:[%s6639_s3 + $0x7a8] sm:$0xff]  ;;  %v4319_v58 = vcombine.low %v516_v45, %v520_v46  ;;  %v4328_v60 = vcombine.high %v524_v53, %v528_v54 }
  0x5c   :  { %v4330_v61 = vcombine.high %v525_v55, %v529_v57  ;;  %v4329_v3 = vcombine.low %v525_v55, %v529_v57  ;;  %v334_v57 = vld [vmem:[%s6639_s3 + $0x190] sm:$0xff] }
  0x5e   :  { %1896 = vmatpush1.bf16.msra.mxu0 %v4263_v63  ;;  %1982 = vmatpush1.bf16.msra.mxu1 %v4265_v0  ;;  %v536_v63 = vld [vmem:[%s6639_s3 + $0x7e0] sm:$0xff]  ;;  %v533_v0 = vld [vmem:[%s6639_s3 + $0x7c8] sm:$0xff] }
  0x5f   :  { %1897 = vmatprep.subr.bf16.mxu0 %v4272_v1  ;;  %1983 = vmatprep.subr.bf16.mxu1 %v4274_v2  ;;  %v537_v1 = vld [vmem:[%s6639_s3 + $0x7e8] sm:$0xff]  ;;  %v4327_v2 = vcombine.low %v524_v53, %v528_v54  ;;  %v4336_v4 = vcombine.high %v532_v62, %v536_v63 }
  0x60   :  { %v4338_v5 = vcombine.high %v533_v0, %v537_v1  ;;  %v4337_v12 = vcombine.low %v533_v0, %v537_v1  ;;  %v342_v1 = vld [vmem:[%s6639_s3 + $0x1d0] sm:$0xff] }
  0x62   :  { %1898 = vmatpush1.bf16.msra.mxu0 %v4271_v7  ;;  %1984 = vmatpush1.bf16.msra.mxu1 %v4273_v8  ;;  %v290_v7 = vld [vmem:[%s6639_s3 + $0x30] sm:$0xff]  ;;  %v287_v8 = vld [vmem:[%s6639_s3 + $0x18] sm:$0xff] }
  0x63   :  { %1899 = vmatprep.subr.bf16.mxu0 %v4280_v9  ;;  %1985 = vmatprep.subr.bf16.mxu1 %v4282_v11  ;;  %v291_v9 = vld [vmem:[%s6639_s3 + $0x38] sm:$0xff]  ;;  %v4335_v11 = vcombine.low %v532_v62, %v536_v63  ;;  %v4092_v13 = vcombine.high %v286_v6, %v290_v7  ;;  %v4091_v21 = vcombine.low %v286_v6, %v290_v7 }
  0x64   :  { %v4094_v14 = vcombine.high %v287_v8, %v291_v9  ;;  %v4093_v22 = vcombine.low %v287_v8, %v291_v9  ;;  %v350_v9 = vld [vmem:[%s6639_s3 + $0x210] sm:$0xff] }
  0x66   :  { %1900 = vmatpush1.bf16.msra.mxu0 %v4279_v16  ;;  %1986 = vmatpush1.bf16.msra.mxu1 %v4281_v17  ;;  %v298_v16 = vld [vmem:[%s6639_s3 + $0x70] sm:$0xff]  ;;  %v5259_v17 = vld [vmem:[%s6640_s1 + $0x8] ss:$16 sps:$4 sm:$0xff]  }
  0x67   :  { %1901 = vmatprep.subr.bf16.mxu0 %v4288_v18  ;;  %1987 = vmatprep.subr.bf16.mxu1 %v4290_v20  ;;  %v295_v18 = vld [vmem:[%s6639_s3 + $0x58] sm:$0xff]  ;;  %v4100_v23 = vcombine.high %v294_v15, %v298_v16  ;;  %v4099_v29 = vcombine.low %v294_v15, %v298_v16 }
  0x68   :  { %v299_v20 = vld [vmem:[%s6639_s3 + $0x78] sm:$0xff] }
  0x69   :  { %v4102_v24 = vcombine.high %v295_v18, %v299_v20  ;;  %v4101_v30 = vcombine.low %v295_v18, %v299_v20  ;;  %v358_v20 = vld [vmem:[%s6639_s3 + $0x250] sm:$0xff] }
  0x6a   :  { %1902 = vmatpush1.bf16.msra.mxu0 %v4287_v25  ;;  %1988 = vmatpush1.bf16.msra.mxu1 %v4289_v26  ;;  %v302_v25 = vld [vmem:[%s6639_s3 + $0x90] sm:$0xff] }
  0x6b   :  { %1903 = vmatprep.subr.bf16.mxu0 %v4296_v27  ;;  %1989 = vmatprep.subr.bf16.mxu1 %v4298_v28  ;;  %v306_v26 = vld [vmem:[%s6639_s3 + $0xb0] sm:$0xff]  ;;  %v303_v27 = vld [vmem:[%s6639_s3 + $0x98] sm:$0xff] }
  0x6c   :  { %v307_v28 = vld [vmem:[%s6639_s3 + $0xb8] sm:$0xff]  ;;  %v4108_v31 = vcombine.high %v302_v25, %v306_v26  ;;  %v4107_v37 = vcombine.low %v302_v25, %v306_v26 }
  0x6d   :  { %v4110_v32 = vcombine.high %v303_v27, %v307_v28  ;;  %v4109_v38 = vcombine.low %v303_v27, %v307_v28  ;;  %v366_v28 = vld [vmem:[%s6639_s3 + $0x290] sm:$0xff] }
  0x6e   :  { %1904 = vmatpush1.bf16.msra.mxu0 %v4295_v33  ;;  %1990 = vmatpush1.bf16.msra.mxu1 %v4297_v34  ;;  %v310_v33 = vld [vmem:[%s6639_s3 + $0xd0] sm:$0xff] }
  0x6f   :  { %1905 = vmatprep.subr.bf16.mxu0 %v4304_v35  ;;  %1991 = vmatprep.subr.bf16.mxu1 %v4306_v36  ;;  %v314_v34 = vld [vmem:[%s6639_s3 + $0xf0] sm:$0xff]  ;;  %v311_v35 = vld [vmem:[%s6639_s3 + $0xd8] sm:$0xff] }
  0x70   :  { %v315_v36 = vld [vmem:[%s6639_s3 + $0xf8] sm:$0xff]  ;;  %v4116_v39 = vcombine.high %v310_v33, %v314_v34 }
  0x71   :  { %v4118_v40 = vcombine.high %v311_v35, %v315_v36  ;;  %v4117_v45 = vcombine.low %v311_v35, %v315_v36  ;;  %v374_v36 = vld [vmem:[%s6639_s3 + $0x2d0] sm:$0xff] }
  0x72   :  { %1906 = vmatpush1.bf16.msra.mxu0 %v4303_v41  ;;  %1992 = vmatpush1.bf16.msra.mxu1 %v4305_v42  ;;  %v318_v41 = vld [vmem:[%s6639_s3 + $0x110] sm:$0xff] }
  0x73   :  { %1907 = vmatprep.subr.bf16.mxu0 %v4312_v43  ;;  %1993 = vmatprep.subr.bf16.mxu1 %v4314_v44  ;;  %v322_v42 = vld [vmem:[%s6639_s3 + $0x130] sm:$0xff]  ;;  %v323_v43 = vld [vmem:[%s6639_s3 + $0x138] sm:$0xff]  ;;  %v4115_v44 = vcombine.low %v310_v33, %v314_v34 }
  0x74   :  { %v4124_v46 = vcombine.high %v318_v41, %v322_v42 }
  0x76   :  { %1908 = vmatpush1.bf16.msra.mxu0 %v4311_v49  ;;  %1994 = vmatpush1.bf16.msra.mxu1 %v4313_v50  ;;  %v330_v49 = vld [vmem:[%s6639_s3 + $0x170] sm:$0xff]  ;;  %v327_v50 = vld [vmem:[%s6639_s3 + $0x158] sm:$0xff] }
  0x77   :  { %1909 = vmatprep.subr.bf16.mxu0 %v4320_v51  ;;  %1995 = vmatprep.subr.bf16.mxu1 %v4322_v52  ;;  %v331_v51 = vld [vmem:[%s6639_s3 + $0x178] sm:$0xff]  ;;  %v4123_v52 = vcombine.low %v318_v41, %v322_v42  ;;  %v4132_v54 = vcombine.high %v326_v48, %v330_v49 }
  0x78   :  { %v4134_v55 = vcombine.high %v327_v50, %v331_v51  ;;  %v4133_v62 = vcombine.low %v327_v50, %v331_v51  ;;  %v390_v51 = vld [vmem:[%s6639_s3 + $0x350] sm:$0xff] }
  0x7a   :  { %1910 = vmatpush1.bf16.msra.mxu0 %v4319_v58  ;;  %1996 = vmatpush1.bf16.msra.mxu1 %v4321_v59  ;;  %v338_v58 = vld [vmem:[%s6639_s3 + $0x1b0] sm:$0xff]  ;;  %v335_v59 = vld [vmem:[%s6639_s3 + $0x198] sm:$0xff] }
  0x7b   :  { %1911 = vmatprep.subr.bf16.mxu0 %v4328_v60  ;;  %1997 = vmatprep.subr.bf16.mxu1 %v4330_v61  ;;  %v339_v60 = vld [vmem:[%s6639_s3 + $0x1b8] sm:$0xff]  ;;  %v4131_v61 = vcombine.low %v326_v48, %v330_v49  ;;  %v4140_v63 = vcombine.high %v334_v57, %v338_v58 }
  0x7c   :  { %v4142_v0 = vcombine.high %v335_v59, %v339_v60  ;;  %v4141_v6 = vcombine.low %v335_v59, %v339_v60  ;;  %v398_v60 = vld [vmem:[%s6639_s3 + $0x390] sm:$0xff] }
  0x7e   :  { %1912 = vmatpush1.bf16.msra.mxu0 %v4327_v2  ;;  %1998 = vmatpush1.bf16.msra.mxu1 %v4329_v3  ;;  %v346_v2 = vld [vmem:[%s6639_s3 + $0x1f0] sm:$0xff]  ;;  %v343_v3 = vld [vmem:[%s6639_s3 + $0x1d8] sm:$0xff] }
  0x7f   :  { %1913 = vmatprep.subr.bf16.mxu0 %v4336_v4  ;;  %1999 = vmatprep.subr.bf16.mxu1 %v4338_v5  ;;  %v347_v4 = vld [vmem:[%s6639_s3 + $0x1f8] sm:$0xff]  ;;  %v4139_v5 = vcombine.low %v334_v57, %v338_v58  ;;  %v4148_v7 = vcombine.high %v342_v1, %v346_v2 }
  0x80   :  { %v4150_v8 = vcombine.high %v343_v3, %v347_v4  ;;  %v4149_v15 = vcombine.low %v343_v3, %v347_v4  ;;  %v406_v4 = vld [vmem:[%s6639_s3 + $0x3d0] sm:$0xff] }
  0x82   :  { %1914 = vmatpush1.bf16.msra.mxu0 %v4335_v11  ;;  %2000 = vmatpush1.bf16.msra.mxu1 %v4337_v12  ;;  %v354_v11 = vld [vmem:[%s6639_s3 + $0x230] sm:$0xff]  ;;  %v351_v12 = vld [vmem:[%s6639_s3 + $0x218] sm:$0xff] }
  0x83   :  { %2012 = vmatprep.subr.bf16.mxu0 %v4092_v13  ;;  %2098 = vmatprep.subr.bf16.mxu1 %v4094_v14  ;;  %v355_v13 = vld [vmem:[%s6639_s3 + $0x238] sm:$0xff]  ;;  %v4147_v14 = vcombine.low %v342_v1, %v346_v2  ;;  %v4156_v16 = vcombine.high %v350_v9, %v354_v11 }
  0x84   :  { %v4158_v18 = vcombine.high %v351_v12, %v355_v13  ;;  %v4157_v25 = vcombine.low %v351_v12, %v355_v13  ;;  %v414_v13 = vld [vmem:[%s6639_s3 + $0x410] sm:$0xff] }
  0x85   :  { %1916 = vmatmul.mubr.bf16.vlgmr.msra.gmra.mrb[0].mxu0 %v5259_v17  ;;  %2002 = vmatmul.mubr.bf16.vlgmr.msra.gmra.mrb[0].mxu1 %v5259_v17 }
  0x86   :  { %2013 = vmatpush1.bf16.msra.mxu0 %v4091_v21  ;;  %2099 = vmatpush1.bf16.msra.mxu1 %v4093_v22  ;;  %v362_v21 = vld [vmem:[%s6639_s3 + $0x270] sm:$0xff]  ;;  %v359_v22 = vld [vmem:[%s6639_s3 + $0x258] sm:$0xff] }
  0x87   :  { %2014 = vmatprep.subr.bf16.mxu0 %v4100_v23  ;;  %2100 = vmatprep.subr.bf16.mxu1 %v4102_v24  ;;  %v363_v23 = vld [vmem:[%s6639_s3 + $0x278] sm:$0xff]  ;;  %v4155_v24 = vcombine.low %v350_v9, %v354_v11  ;;  %v4164_v26 = vcombine.high %v358_v20, %v362_v21 }
  0x88   :  { %2044 = vmatprep.mubr.bf16.mxu0 %v4926_v56  ;;  %2130 = vmatprep.mubr.bf16.mxu1 %v4926_v56  ;;  %v319_v56 = vld [vmem:[%s6639_s3 + $0x118] sm:$0xff]  ;;  %v4166_v27 = vcombine.high %v359_v22, %v363_v23  ;;  %v4165_v33 = vcombine.low %v359_v22, %v363_v23  ;;  %v422_v23 = vld [vmem:[%s6639_s3 + $0x450] sm:$0xff] }
  0x89   :  { %v4126_v47 = vcombine.high %v319_v56, %v323_v43  ;;  %v4125_v53 = vcombine.low %v319_v56, %v323_v43  ;;  %v382_v43 = vld [vmem:[%s6639_s3 + $0x310] sm:$0xff] }
  0x8a   :  { %2015 = vmatpush1.bf16.msra.mxu0 %v4099_v29  ;;  %2101 = vmatpush1.bf16.msra.mxu1 %v4101_v30  ;;  %v370_v29 = vld [vmem:[%s6639_s3 + $0x2b0] sm:$0xff]  ;;  %v367_v30 = vld [vmem:[%s6639_s3 + $0x298] sm:$0xff] }
  0x8b   :  { %2016 = vmatprep.subr.bf16.mxu0 %v4108_v31  ;;  %2102 = vmatprep.subr.bf16.mxu1 %v4110_v32  ;;  %v371_v31 = vld [vmem:[%s6639_s3 + $0x2b8] sm:$0xff]  ;;  %v4163_v32 = vcombine.low %v358_v20, %v362_v21  ;;  %v4172_v34 = vcombine.high %v366_v28, %v370_v29 }
  0x8c   :  { %v4174_v35 = vcombine.high %v367_v30, %v371_v31  ;;  %v4173_v41 = vcombine.low %v367_v30, %v371_v31  ;;  %v430_v30 = vld [vmem:[%s6639_s3 + $0x490] sm:$0xff] }
  0x8e   :  { %2017 = vmatpush1.bf16.msra.mxu0 %v4107_v37  ;;  %2103 = vmatpush1.bf16.msra.mxu1 %v4109_v38  ;;  %v378_v37 = vld [vmem:[%s6639_s3 + $0x2f0] sm:$0xff]  ;;  %v375_v38 = vld [vmem:[%s6639_s3 + $0x2d8] sm:$0xff] }
  0x8f   :  { %2018 = vmatprep.subr.bf16.mxu0 %v4116_v39  ;;  %2104 = vmatprep.subr.bf16.mxu1 %v4118_v40  ;;  %v379_v39 = vld [vmem:[%s6639_s3 + $0x2f8] sm:$0xff]  ;;  %v4171_v40 = vcombine.low %v366_v28, %v370_v29  ;;  %v4180_v42 = vcombine.high %v374_v36, %v378_v37 }
  0x90   :  { %v4182_v56 = vcombine.high %v375_v38, %v379_v39  ;;  %v4181_v48 = vcombine.low %v375_v38, %v379_v39  ;;  %v438_v39 = vld [vmem:[%s6639_s3 + $0x4d0] sm:$0xff] }
  0x92   :  { %2019 = vmatpush1.bf16.msra.mxu0 %v4115_v44  ;;  %2105 = vmatpush1.bf16.msra.mxu1 %v4117_v45  ;;  %v386_v44 = vld [vmem:[%s6639_s3 + $0x330] sm:$0xff]  ;;  %v383_v45 = vld [vmem:[%s6639_s3 + $0x318] sm:$0xff] }
  0x93   :  { %2020 = vmatprep.subr.bf16.mxu0 %v4124_v46  ;;  %2106 = vmatprep.subr.bf16.mxu1 %v4126_v47  ;;  %v387_v46 = vld [vmem:[%s6639_s3 + $0x338] sm:$0xff]  ;;  %v4179_v47 = vcombine.low %v374_v36, %v378_v37  ;;  %v4188_v49 = vcombine.high %v382_v43, %v386_v44 }
  0x94   :  { %v4190_v50 = vcombine.high %v383_v45, %v387_v46  ;;  %v4189_v57 = vcombine.low %v383_v45, %v387_v46  ;;  %v446_v45 = vld [vmem:[%s6639_s3 + $0x510] sm:$0xff] }
  0x95   :  { %v450_v46 = vld [vmem:[%s6639_s3 + $0x530] sm:$0xff] }
  0x96   :  { %2021 = vmatpush1.bf16.msra.mxu0 %v4123_v52  ;;  %2107 = vmatpush1.bf16.msra.mxu1 %v4125_v53  ;;  %v394_v52 = vld [vmem:[%s6639_s3 + $0x370] sm:$0xff]  ;;  %v391_v53 = vld [vmem:[%s6639_s3 + $0x358] sm:$0xff] }
  0x97   :  { %2022 = vmatprep.subr.bf16.mxu0 %v4132_v54  ;;  %2108 = vmatprep.subr.bf16.mxu1 %v4134_v55  ;;  %v395_v54 = vld [vmem:[%s6639_s3 + $0x378] sm:$0xff]  ;;  %v4187_v55 = vcombine.low %v382_v43, %v386_v44  ;;  %v4196_v58 = vcombine.high %v390_v51, %v394_v52 }
  0x98   :  { %v4198_v59 = vcombine.high %v391_v53, %v395_v54  ;;  %v4197_v1 = vcombine.low %v391_v53, %v395_v54  ;;  %v458_v53 = vld [vmem:[%s6639_s3 + $0x570] sm:$0xff]  ;;  %v455_v54 = vld [vmem:[%s6639_s3 + $0x558] sm:$0xff] }
  0x9a   :  { %2023 = vmatpush1.bf16.msra.mxu0 %v4131_v61  ;;  %2109 = vmatpush1.bf16.msra.mxu1 %v4133_v62  ;;  %v402_v61 = vld [vmem:[%s6639_s3 + $0x3b0] sm:$0xff]  ;;  %v399_v62 = vld [vmem:[%s6639_s3 + $0x398] sm:$0xff] }
  0x9b   :  { %2024 = vmatprep.subr.bf16.mxu0 %v4140_v63  ;;  %2110 = vmatprep.subr.bf16.mxu1 %v4142_v0  ;;  %v403_v63 = vld [vmem:[%s6639_s3 + $0x3b8] sm:$0xff]  ;;  %v4195_v0 = vcombine.low %v390_v51, %v394_v52  ;;  %v4204_v2 = vcombine.high %v398_v60, %v402_v61  ;;  %v454_v52 = vld [vmem:[%s6639_s3 + $0x550] sm:$0xff] }
  0x9c   :  { %v4206_v3 = vcombine.high %v399_v62, %v403_v63  ;;  %v4205_v9 = vcombine.low %v399_v62, %v403_v63  ;;  %v466_v62 = vld [vmem:[%s6639_s3 + $0x5b0] sm:$0xff]  ;;  %v463_v63 = vld [vmem:[%s6639_s3 + $0x598] sm:$0xff] }
  0x9e   :  { %2025 = vmatpush1.bf16.msra.mxu0 %v4139_v5  ;;  %2111 = vmatpush1.bf16.msra.mxu1 %v4141_v6  ;;  %v410_v5 = vld [vmem:[%s6639_s3 + $0x3f0] sm:$0xff]  ;;  %v407_v6 = vld [vmem:[%s6639_s3 + $0x3d8] sm:$0xff] }
  0x9f   :  { %2026 = vmatprep.subr.bf16.mxu0 %v4148_v7  ;;  %2112 = vmatprep.subr.bf16.mxu1 %v4150_v8  ;;  %v411_v7 = vld [vmem:[%s6639_s3 + $0x3f8] sm:$0xff]  ;;  %v4203_v8 = vcombine.low %v398_v60, %v402_v61  ;;  %v4212_v11 = vcombine.high %v406_v4, %v410_v5  ;;  %v462_v61 = vld [vmem:[%s6639_s3 + $0x590] sm:$0xff] }
  0xa0   :  { %v4214_v12 = vcombine.high %v407_v6, %v411_v7  ;;  %v4213_v20 = vcombine.low %v407_v6, %v411_v7  ;;  %v474_v6 = vld [vmem:[%s6639_s3 + $0x5f0] sm:$0xff]  ;;  %v471_v7 = vld [vmem:[%s6639_s3 + $0x5d8] sm:$0xff] }
  0xa2   :  { %2027 = vmatpush1.bf16.msra.mxu0 %v4147_v14  ;;  %2113 = vmatpush1.bf16.msra.mxu1 %v4149_v15  ;;  %v418_v14 = vld [vmem:[%s6639_s3 + $0x430] sm:$0xff]  ;;  %v415_v15 = vld [vmem:[%s6639_s3 + $0x418] sm:$0xff] }
  0xa3   :  { %2028 = vmatprep.subr.bf16.mxu0 %v4156_v16  ;;  %2114 = vmatprep.subr.bf16.mxu1 %v4158_v18  ;;  %v419_v16 = vld [vmem:[%s6639_s3 + $0x438] sm:$0xff]  ;;  %v4211_v18 = vcombine.low %v406_v4, %v410_v5  ;;  %v4220_v21 = vcombine.high %v414_v13, %v418_v14  ;;  %v470_v5 = vld [vmem:[%s6639_s3 + $0x5d0] sm:$0xff] }
  0xa4   :  { %v4222_v22 = vcombine.high %v415_v15, %v419_v16  ;;  %v4221_v28 = vcombine.low %v415_v15, %v419_v16  ;;  %v482_v15 = vld [vmem:[%s6639_s3 + $0x630] sm:$0xff]  ;;  %v479_v16 = vld [vmem:[%s6639_s3 + $0x618] sm:$0xff] }
  0xa6   :  { %2029 = vmatpush1.bf16.msra.mxu0 %v4155_v24  ;;  %2115 = vmatpush1.bf16.msra.mxu1 %v4157_v25  ;;  %v426_v24 = vld [vmem:[%s6639_s3 + $0x470] sm:$0xff]  ;;  %v423_v25 = vld [vmem:[%s6639_s3 + $0x458] sm:$0xff] }
  0xa7   :  { %2030 = vmatprep.subr.bf16.mxu0 %v4164_v26  ;;  %2116 = vmatprep.subr.bf16.mxu1 %v4166_v27  ;;  %v427_v26 = vld [vmem:[%s6639_s3 + $0x478] sm:$0xff]  ;;  %v4219_v27 = vcombine.low %v414_v13, %v418_v14  ;;  %v4228_v29 = vcombine.high %v422_v23, %v426_v24  ;;  %v478_v14 = vld [vmem:[%s6639_s3 + $0x610] sm:$0xff] }
  0xa8   :  { %v4230_v31 = vcombine.high %v423_v25, %v427_v26  ;;  %v4229_v36 = vcombine.low %v423_v25, %v427_v26  ;;  %v490_v25 = vld [vmem:[%s6639_s3 + $0x670] sm:$0xff]  ;;  %v487_v26 = vld [vmem:[%s6639_s3 + $0x658] sm:$0xff] }
  0xaa   :  { %2031 = vmatpush1.bf16.msra.mxu0 %v4163_v32  ;;  %2117 = vmatpush1.bf16.msra.mxu1 %v4165_v33  ;;  %v434_v32 = vld [vmem:[%s6639_s3 + $0x4b0] sm:$0xff]  ;;  %v431_v33 = vld [vmem:[%s6639_s3 + $0x498] sm:$0xff] }
  0xab   :  { %2032 = vmatprep.subr.bf16.mxu0 %v4172_v34  ;;  %2118 = vmatprep.subr.bf16.mxu1 %v4174_v35  ;;  %v435_v34 = vld [vmem:[%s6639_s3 + $0x4b8] sm:$0xff]  ;;  %v4227_v35 = vcombine.low %v422_v23, %v426_v24  ;;  %v4236_v37 = vcombine.high %v430_v30, %v434_v32  ;;  %v486_v24 = vld [vmem:[%s6639_s3 + $0x650] sm:$0xff] }
  0xac   :  { %v4238_v38 = vcombine.high %v431_v33, %v435_v34 }
  0xae   :  { %2033 = vmatpush1.bf16.msra.mxu0 %v4171_v40  ;;  %2119 = vmatpush1.bf16.msra.mxu1 %v4173_v41  ;;  %v442_v40 = vld [vmem:[%s6639_s3 + $0x4f0] sm:$0xff]  ;;  %v443_v41 = vld [vmem:[%s6639_s3 + $0x4f8] sm:$0xff] }
  0xaf   :  { %2034 = vmatprep.subr.bf16.mxu0 %v4180_v42  ;;  %2120 = vmatprep.subr.bf16.mxu1 %v4182_v56  ;;  %v4235_v42 = vcombine.low %v430_v30, %v434_v32  ;;  %v4237_v56 = vcombine.low %v431_v33, %v435_v34  ;;  %v4244_v43 = vcombine.high %v438_v39, %v442_v40  ;;  %v494_v32 = vld [vmem:[%s6639_s3 + $0x690] sm:$0xff]  ;;  %v495_v34 = vld [vmem:[%s6639_s3 + $0x698] sm:$0xff] }
  0xb0   :  { %v4292_v30 = vcombine.high %v486_v24, %v490_v25  ;;  %v498_v33 = vld [vmem:[%s6639_s3 + $0x6b0] sm:$0xff] }
  0xb2   :  { %2035 = vmatpush1.bf16.msra.mxu0 %v4179_v47  ;;  %2121 = vmatpush1.bf16.msra.mxu1 %v4181_v48  ;;  %v451_v47 = vld [vmem:[%s6639_s3 + $0x538] sm:$0xff]  ;;  %v4243_v48 = vcombine.low %v438_v39, %v442_v40  ;;  %v502_v40 = vld [vmem:[%s6639_s3 + $0x6d0] sm:$0xff] }
  0xb3   :  { %2036 = vmatprep.subr.bf16.mxu0 %v4188_v49  ;;  %2122 = vmatprep.subr.bf16.mxu1 %v4190_v50  ;;  %v4252_v50 = vcombine.high %v446_v45, %v450_v46 }
  0xb6   :  { %2037 = vmatpush1.bf16.msra.mxu0 %v4187_v55  ;;  %2123 = vmatpush1.bf16.msra.mxu1 %v4189_v57  ;;  %v459_v55 = vld [vmem:[%s6639_s3 + $0x578] sm:$0xff]  ;;  %v4251_v57 = vcombine.low %v446_v45, %v450_v46  ;;  %v510_v46 = vld [vmem:[%s6639_s3 + $0x710] sm:$0xff] }
  0xb7   :  { %2038 = vmatprep.subr.bf16.mxu0 %v4196_v58  ;;  %2124 = vmatprep.subr.bf16.mxu1 %v4198_v59  ;;  %v4260_v59 = vcombine.high %v454_v52, %v458_v53  ;;  %v4262_v60 = vcombine.high %v455_v54, %v459_v55 }
  0xba   :  { %2039 = vmatpush1.bf16.msra.mxu0 %v4195_v0  ;;  %2125 = vmatpush1.bf16.msra.mxu1 %v4197_v1  ;;  %v467_v0 = vld [vmem:[%s6639_s3 + $0x5b8] sm:$0xff]  ;;  %v4259_v1 = vcombine.low %v454_v52, %v458_v53  ;;  %v518_v53 = vld [vmem:[%s6639_s3 + $0x750] sm:$0xff] }
  0xbb   :  { %2040 = vmatprep.subr.bf16.mxu0 %v4204_v2  ;;  %2126 = vmatprep.subr.bf16.mxu1 %v4206_v3  ;;  %v4261_v2 = vcombine.low %v455_v54, %v459_v55  ;;  %v4268_v3 = vcombine.high %v462_v61, %v466_v62  ;;  %v4270_v4 = vcombine.high %v463_v63, %v467_v0  ;;  %v522_v54 = vld [vmem:[%s6639_s3 + $0x770] sm:$0xff]  ;;  %v519_v55 = vld [vmem:[%s6639_s3 + $0x758] sm:$0xff] }
  0xbe   :  { %2041 = vmatpush1.bf16.msra.mxu0 %v4203_v8  ;;  %2127 = vmatpush1.bf16.msra.mxu1 %v4205_v9  ;;  %v475_v8 = vld [vmem:[%s6639_s3 + $0x5f8] sm:$0xff]  ;;  %v4267_v9 = vcombine.low %v462_v61, %v466_v62  ;;  %v526_v62 = vld [vmem:[%s6639_s3 + $0x790] sm:$0xff] }
  0xbf   :  { %2042 = vmatprep.subr.bf16.mxu0 %v4212_v11  ;;  %2128 = vmatprep.subr.bf16.mxu1 %v4214_v12  ;;  %v4269_v11 = vcombine.low %v463_v63, %v467_v0  ;;  %v4276_v12 = vcombine.high %v470_v5, %v474_v6  ;;  %v4278_v13 = vcombine.high %v471_v7, %v475_v8  ;;  %v530_v63 = vld [vmem:[%s6639_s3 + $0x7b0] sm:$0xff]  ;;  %v527_v0 = vld [vmem:[%s6639_s3 + $0x798] sm:$0xff] }
  0xc2   :  { %2043 = vmatpush1.bf16.msra.mxu0 %v4211_v18  ;;  %2129 = vmatpush1.bf16.msra.mxu1 %v4213_v20  ;;  %v483_v18 = vld [vmem:[%s6639_s3 + $0x638] sm:$0xff]  ;;  %v4275_v20 = vcombine.low %v470_v5, %v474_v6  ;;  %v534_v6 = vld [vmem:[%s6639_s3 + $0x7d0] sm:$0xff] }
  0xc3   :  { %2055 = vmatprep.subr.bf16.mxu0 %v4220_v21  ;;  %2141 = vmatprep.subr.bf16.mxu1 %v4222_v22  ;;  %v4277_v21 = vcombine.low %v471_v7, %v475_v8  ;;  %v4284_v22 = vcombine.high %v478_v14, %v482_v15  ;;  %v4286_v23 = vcombine.high %v479_v16, %v483_v18  ;;  %v538_v7 = vld [vmem:[%s6639_s3 + $0x7f0] sm:$0xff]  ;;  %v535_v8 = vld [vmem:[%s6639_s3 + $0x7d8] sm:$0xff] }
  0xc5   :  { %2045 = vmatmul.mubr.bf16.vlgmr.msra.gmra.mrb[4].mxu0 %v5053_v10  ;;  %2131 = vmatmul.mubr.bf16.vlgmr.msra.gmra.mrb[4].mxu1 %v5053_v10  ;;  %v439_v10 = vld [vmem:[%s6639_s3 + $0x4d8] sm:$0xff] }
  0xc6   :  { %2056 = vmatpush1.bf16.msra.mxu0 %v4219_v27  ;;  %2142 = vmatpush1.bf16.msra.mxu1 %v4221_v28  ;;  %v4246_v44 = vcombine.high %v439_v10, %v443_v41  ;;  %v4245_v49 = vcombine.low %v439_v10, %v443_v41  ;;  %v491_v27 = vld [vmem:[%s6639_s3 + $0x678] sm:$0xff]  ;;  %v4283_v28 = vcombine.low %v478_v14, %v482_v15  ;;  %v506_v10 = vld [vmem:[%s6639_s3 + $0x6f0] sm:$0xff]  ;;  %v24_v15 = vld [vmem:[%s6642_s2] sm:$0xff] }
  0xc7   :  { %2057 = vmatprep.subr.bf16.mxu0 %v4228_v29  ;;  %2143 = vmatprep.subr.bf16.mxu1 %v4230_v31  ;;  %v4285_v29 = vcombine.low %v479_v16, %v483_v18  ;;  %v4294_v31 = vcombine.high %v487_v26, %v491_v27  ;;  %v503_v41 = vld [vmem:[%s6639_s3 + $0x6d8] sm:$0xff]  ;;  %v28_v16 = vld [vmem:[%s6642_s2 + $0x20] sm:$0xff]  ;;  %v25_v18 = vld [vmem:[%s6642_s2 + $0x8] sm:$0xff] }
  0xc8   :  { %2087 = vmatprep.mubr.bf16.mxu0 %v5070_v19  ;;  %2173 = vmatprep.mubr.bf16.mxu1 %v5070_v19  ;;  %v447_v19 = vld [vmem:[%s6639_s3 + $0x518] sm:$0xff] }
  0xc9   :  { %v4254_v51 = vcombine.high %v447_v19, %v451_v47  ;;  %v4253_v58 = vcombine.low %v447_v19, %v451_v47  ;;  %v514_v19 = vld [vmem:[%s6639_s3 + $0x730] sm:$0xff]  ;;  %v511_v47 = vld [vmem:[%s6639_s3 + $0x718] sm:$0xff] }
  0xca   :  { %2058 = vmatpush1.bf16.msra.mxu0 %v4227_v35  ;;  %2144 = vmatpush1.bf16.msra.mxu1 %v4229_v36  ;;  %v499_v35 = vld [vmem:[%s6639_s3 + $0x6b8] sm:$0xff]  ;;  %v4291_v36 = vcombine.low %v486_v24, %v490_v25  ;;  %v32_v25 = vld [vmem:[%s6642_s2 + $0x40] sm:$0xff] }
  0xcb   :  { %2059 = vmatprep.subr.bf16.mxu0 %v4236_v37  ;;  %2145 = vmatprep.subr.bf16.mxu1 %v4238_v38  ;;  %v4293_v37 = vcombine.low %v487_v26, %v491_v27  ;;  %v4300_v38 = vcombine.high %v494_v32, %v498_v33  ;;  %v4302_v39 = vcombine.high %v495_v34, %v499_v35  ;;  %v36_v26 = vld [vmem:[%s6642_s2 + $0x60] sm:$0xff]  ;;  %v33_v27 = vld [vmem:[%s6642_s2 + $0x48] sm:$0xff] }
  0xce   :  { %2060 = vmatpush1.bf16.msra.mxu0 %v4235_v42  ;;  %2146 = vmatpush1.bf16.msra.mxu1 %v4237_v56  ;;  %v507_v42 = vld [vmem:[%s6639_s3 + $0x6f8] sm:$0xff]  ;;  %v4299_v56 = vcombine.low %v494_v32, %v498_v33  ;;  %v40_v33 = vld [vmem:[%s6642_s2 + $0x80] sm:$0xff] }
  0xcf   :  { %2061 = vmatprep.subr.bf16.mxu0 %v4244_v43  ;;  %2147 = vmatprep.subr.bf16.mxu1 %v4246_v44  ;;  %v4301_v43 = vcombine.low %v495_v34, %v499_v35  ;;  %v4308_v44 = vcombine.high %v502_v40, %v506_v10  ;;  %v4310_v45 = vcombine.high %v503_v41, %v507_v42  ;;  %v44_v34 = vld [vmem:[%s6642_s2 + $0xa0] sm:$0xff] }
  0xd0   :  { %v5668_v35 = vld [vmem:[%s6641_s0 + $0x4] ss:$16 sps:$4 sm:$0xff]  }
  0xd2   :  { %2062 = vmatpush1.bf16.msra.mxu0 %v4243_v48  ;;  %2148 = vmatpush1.bf16.msra.mxu1 %v4245_v49  ;;  %v515_v48 = vld [vmem:[%s6639_s3 + $0x738] sm:$0xff]  ;;  %v4307_v49 = vcombine.low %v502_v40, %v506_v10  ;;  %v4364_v40 = vcombine.high %v40_v33, %v44_v34 }
  0xd3   :  { %2063 = vmatprep.subr.bf16.mxu0 %v4252_v50  ;;  %2149 = vmatprep.subr.bf16.mxu1 %v4254_v51  ;;  %v4309_v50 = vcombine.low %v503_v41, %v507_v42  ;;  %v4316_v51 = vcombine.high %v510_v46, %v514_v19  ;;  %v4318_v52 = vcombine.high %v511_v47, %v515_v48  ;;  %v48_v41 = vld [vmem:[%s6642_s2 + $0xc0] sm:$0xff] }
  0xd4   :  { %v52_v42 = vld [vmem:[%s6642_s2 + $0xe0] sm:$0xff] }
  0xd6   :  { %2064 = vmatpush1.bf16.msra.mxu0 %v4251_v57  ;;  %2150 = vmatpush1.bf16.msra.mxu1 %v4253_v58  ;;  %v523_v57 = vld [vmem:[%s6639_s3 + $0x778] sm:$0xff]  ;;  %v4315_v58 = vcombine.low %v510_v46, %v514_v19  ;;  %v56_v19 = vld [vmem:[%s6642_s2 + $0x100] sm:$0xff] }
  0xd7   :  { %2065 = vmatprep.subr.bf16.mxu0 %v4260_v59  ;;  %2151 = vmatprep.subr.bf16.mxu1 %v4262_v60  ;;  %v4317_v59 = vcombine.low %v511_v47, %v515_v48  ;;  %v4324_v60 = vcombine.high %v518_v53, %v522_v54  ;;  %v4326_v61 = vcombine.high %v519_v55, %v523_v57  ;;  %v60_v47 = vld [vmem:[%s6642_s2 + $0x120] sm:$0xff]  ;;  %v57_v48 = vld [vmem:[%s6642_s2 + $0x108] sm:$0xff] }
  0xda   :  { %2066 = vmatpush1.bf16.msra.mxu0 %v4259_v1  ;;  %2152 = vmatpush1.bf16.msra.mxu1 %v4261_v2  ;;  %v531_v1 = vld [vmem:[%s6639_s3 + $0x7b8] sm:$0xff]  ;;  %v4323_v2 = vcombine.low %v518_v53, %v522_v54  ;;  %v64_v54 = vld [vmem:[%s6642_s2 + $0x140] sm:$0xff] }
  0xdb   :  { %2067 = vmatprep.subr.bf16.mxu0 %v4268_v3  ;;  %2153 = vmatprep.subr.bf16.mxu1 %v4270_v4  ;;  %v4325_v3 = vcombine.low %v519_v55, %v523_v57  ;;  %v4332_v4 = vcombine.high %v526_v62, %v530_v63  ;;  %v4334_v5 = vcombine.high %v527_v0, %v531_v1  ;;  %v68_v55 = vld [vmem:[%s6642_s2 + $0x160] sm:$0xff]  ;;  %v65_v57 = vld [vmem:[%s6642_s2 + $0x148] sm:$0xff] }
  0xde   :  { %2068 = vmatpush1.bf16.msra.mxu0 %v4267_v9  ;;  %2154 = vmatpush1.bf16.msra.mxu1 %v4269_v11  ;;  %v539_v9 = vld [vmem:[%s6639_s3 + $0x7f8] sm:$0xff]  ;;  %v4331_v11 = vcombine.low %v526_v62, %v530_v63  ;;  %v72_v63 = vld [vmem:[%s6642_s2 + $0x180] sm:$0xff] }
  0xdf   :  { %2069 = vmatprep.subr.bf16.mxu0 %v4276_v12  ;;  %2155 = vmatprep.subr.bf16.mxu1 %v4278_v13  ;;  %v4333_v12 = vcombine.low %v527_v0, %v531_v1  ;;  %v4340_v13 = vcombine.high %v534_v6, %v538_v7  ;;  %v4342_v14 = vcombine.high %v535_v8, %v539_v9  ;;  %v76_v0 = vld [vmem:[%s6642_s2 + $0x1a0] sm:$0xff]  ;;  %v73_v1 = vld [vmem:[%s6642_s2 + $0x188] sm:$0xff] }
  0xe2   :  { %2070 = vmatpush1.bf16.msra.mxu0 %v4275_v20  ;;  %2156 = vmatpush1.bf16.msra.mxu1 %v4277_v21  ;;  %v29_v20 = vld [vmem:[%s6642_s2 + $0x28] sm:$0xff]  ;;  %v4339_v21 = vcombine.low %v534_v6, %v538_v7  ;;  %v80_v7 = vld [vmem:[%s6642_s2 + $0x1c0] sm:$0xff] }
  0xe3   :  { %2071 = vmatprep.subr.bf16.mxu0 %v4284_v22  ;;  %2157 = vmatprep.subr.bf16.mxu1 %v4286_v23  ;;  %v4341_v22 = vcombine.low %v535_v8, %v539_v9  ;;  %v4348_v23 = vcombine.high %v24_v15, %v28_v16  ;;  %v4350_v24 = vcombine.high %v25_v18, %v29_v20  ;;  %v84_v8 = vld [vmem:[%s6642_s2 + $0x1e0] sm:$0xff]  ;;  %v81_v9 = vld [vmem:[%s6642_s2 + $0x1c8] sm:$0xff] }
  0xe6   :  { %2072 = vmatpush1.bf16.msra.mxu0 %v4283_v28  ;;  %2158 = vmatpush1.bf16.msra.mxu1 %v4285_v29  ;;  %v37_v28 = vld [vmem:[%s6642_s2 + $0x68] sm:$0xff]  ;;  %v4347_v29 = vcombine.low %v24_v15, %v28_v16  ;;  %v88_v16 = vld [vmem:[%s6642_s2 + $0x200] sm:$0xff] }
  0xe7   :  { %2073 = vmatprep.subr.bf16.mxu0 %v4292_v30  ;;  %2159 = vmatprep.subr.bf16.mxu1 %v4294_v31  ;;  %v4349_v30 = vcombine.low %v25_v18, %v29_v20  ;;  %v4356_v31 = vcombine.high %v32_v25, %v36_v26  ;;  %v4358_v32 = vcombine.high %v33_v27, %v37_v28  ;;  %v92_v18 = vld [vmem:[%s6642_s2 + $0x220] sm:$0xff]  ;;  %v89_v20 = vld [vmem:[%s6642_s2 + $0x208] sm:$0xff] }
  0xea   :  { %2074 = vmatpush1.bf16.msra.mxu0 %v4291_v36  ;;  %2160 = vmatpush1.bf16.msra.mxu1 %v4293_v37  ;;  %v41_v36 = vld [vmem:[%s6642_s2 + $0x88] sm:$0xff] }
  0xeb   :  { %2075 = vmatprep.subr.bf16.mxu0 %v4300_v38  ;;  %2161 = vmatprep.subr.bf16.mxu1 %v4302_v39  ;;  %v45_v37 = vld [vmem:[%s6642_s2 + $0xa8] sm:$0xff]  ;;  %v4355_v38 = vcombine.low %v32_v25, %v36_v26  ;;  %v4357_v39 = vcombine.low %v33_v27, %v37_v28  ;;  %v96_v26 = vld [vmem:[%s6642_s2 + $0x240] sm:$0xff] }
  0xec   :  { %v4366_v10 = vcombine.high %v41_v36, %v45_v37  ;;  %v100_v27 = vld [vmem:[%s6642_s2 + $0x260] sm:$0xff]  ;;  %v97_v28 = vld [vmem:[%s6642_s2 + $0x248] sm:$0xff] }
  0xee   :  { %2076 = vmatpush1.bf16.msra.mxu0 %v4299_v56  ;;  %2162 = vmatpush1.bf16.msra.mxu1 %v4301_v43  ;;  %v53_v56 = vld [vmem:[%s6642_s2 + $0xe8] sm:$0xff]  ;;  %v4363_v43 = vcombine.low %v40_v33, %v44_v34  ;;  %v104_v34 = vld [vmem:[%s6642_s2 + $0x280] sm:$0xff] }
  0xef   :  { %2077 = vmatprep.subr.bf16.mxu0 %v4308_v44  ;;  %2163 = vmatprep.subr.bf16.mxu1 %v4310_v45  ;;  %v4365_v44 = vcombine.low %v41_v36, %v45_v37  ;;  %v4372_v45 = vcombine.high %v48_v41, %v52_v42  ;;  %v108_v36 = vld [vmem:[%s6642_s2 + $0x2a0] sm:$0xff]  ;;  %v105_v37 = vld [vmem:[%s6642_s2 + $0x288] sm:$0xff] }
  0xf2   :  { %2078 = vmatpush1.bf16.msra.mxu0 %v4307_v49  ;;  %2164 = vmatpush1.bf16.msra.mxu1 %v4309_v50  ;;  %v61_v49 = vld [vmem:[%s6642_s2 + $0x128] sm:$0xff]  ;;  %v4371_v50 = vcombine.low %v48_v41, %v52_v42  ;;  %v112_v42 = vld [vmem:[%s6642_s2 + $0x2c0] sm:$0xff] }
  0xf3   :  { %2079 = vmatprep.subr.bf16.mxu0 %v4316_v51  ;;  %2165 = vmatprep.subr.bf16.mxu1 %v4318_v52  ;;  %v4380_v52 = vcombine.high %v56_v19, %v60_v47  ;;  %v4382_v53 = vcombine.high %v57_v48, %v61_v49 }
  0xf6   :  { %2080 = vmatpush1.bf16.msra.mxu0 %v4315_v58  ;;  %2166 = vmatpush1.bf16.msra.mxu1 %v4317_v59  ;;  %v69_v58 = vld [vmem:[%s6642_s2 + $0x168] sm:$0xff]  ;;  %v4379_v59 = vcombine.low %v56_v19, %v60_v47  ;;  %v120_v47 = vld [vmem:[%s6642_s2 + $0x300] sm:$0xff] }
  0xf7   :  { %2081 = vmatprep.subr.bf16.mxu0 %v4324_v60  ;;  %2167 = vmatprep.subr.bf16.mxu1 %v4326_v61  ;;  %v4381_v60 = vcombine.low %v57_v48, %v61_v49  ;;  %v4388_v61 = vcombine.high %v64_v54, %v68_v55  ;;  %v4390_v62 = vcombine.high %v65_v57, %v69_v58  ;;  %v124_v48 = vld [vmem:[%s6642_s2 + $0x320] sm:$0xff]  ;;  %v121_v49 = vld [vmem:[%s6642_s2 + $0x308] sm:$0xff] }
  0xfa   :  { %2082 = vmatpush1.bf16.msra.mxu0 %v4323_v2  ;;  %2168 = vmatpush1.bf16.msra.mxu1 %v4325_v3  ;;  %v77_v2 = vld [vmem:[%s6642_s2 + $0x1a8] sm:$0xff]  ;;  %v4387_v3 = vcombine.low %v64_v54, %v68_v55  ;;  %v128_v55 = vld [vmem:[%s6642_s2 + $0x340] sm:$0xff] }
  0xfb   :  { %2083 = vmatprep.subr.bf16.mxu0 %v4332_v4  ;;  %2169 = vmatprep.subr.bf16.mxu1 %v4334_v5  ;;  %v4389_v4 = vcombine.low %v65_v57, %v69_v58  ;;  %v4396_v5 = vcombine.high %v72_v63, %v76_v0  ;;  %v4398_v6 = vcombine.high %v73_v1, %v77_v2  ;;  %v132_v57 = vld [vmem:[%s6642_s2 + $0x360] sm:$0xff]  ;;  %v129_v58 = vld [vmem:[%s6642_s2 + $0x348] sm:$0xff] }
  0xfe   :  { %2084 = vmatpush1.bf16.msra.mxu0 %v4331_v11  ;;  %2170 = vmatpush1.bf16.msra.mxu1 %v4333_v12  ;;  %v85_v11 = vld [vmem:[%s6642_s2 + $0x1e8] sm:$0xff]  ;;  %v4395_v12 = vcombine.low %v72_v63, %v76_v0  ;;  %v136_v0 = vld [vmem:[%s6642_s2 + $0x380] sm:$0xff] }
  0xff   :  { %2085 = vmatprep.subr.bf16.mxu0 %v4340_v13  ;;  %2171 = vmatprep.subr.bf16.mxu1 %v4342_v14  ;;  %v4397_v13 = vcombine.low %v73_v1, %v77_v2  ;;  %v4404_v14 = vcombine.high %v80_v7, %v84_v8  ;;  %v4406_v15 = vcombine.high %v81_v9, %v85_v11  ;;  %v140_v1 = vld [vmem:[%s6642_s2 + $0x3a0] sm:$0xff]  ;;  %v137_v2 = vld [vmem:[%s6642_s2 + $0x388] sm:$0xff] }
 0x102   :  { %2086 = vmatpush1.bf16.msra.mxu0 %v4339_v21  ;;  %2172 = vmatpush1.bf16.msra.mxu1 %v4341_v22  ;;  %v93_v21 = vld [vmem:[%s6642_s2 + $0x228] sm:$0xff]  ;;  %v4403_v22 = vcombine.low %v80_v7, %v84_v8  ;;  %v144_v8 = vld [vmem:[%s6642_s2 + $0x3c0] sm:$0xff] }
 0x103   :  { %3484 = vmatprep.subr.bf16.mxu0 %v4348_v23  ;;  %3570 = vmatprep.subr.bf16.mxu1 %v4350_v24  ;;  %v4405_v23 = vcombine.low %v81_v9, %v85_v11  ;;  %v4412_v24 = vcombine.high %v88_v16, %v92_v18  ;;  %v4414_v25 = vcombine.high %v89_v20, %v93_v21  ;;  %v148_v9 = vld [vmem:[%s6642_s2 + $0x3e0] sm:$0xff]  ;;  %v145_v11 = vld [vmem:[%s6642_s2 + $0x3c8] sm:$0xff] }
 0x105   :  { %2088 = vmatmul.mubr.bf16.vlgmr.msra.gmra.mrb[4].mxu0 %v5259_v17  ;;  %2174 = vmatmul.mubr.bf16.vlgmr.msra.gmra.mrb[4].mxu1 %v5259_v17  ;;  %v49_v17 = vld [vmem:[%s6642_s2 + $0xc8] sm:$0xff] }
 0x106   :  { %3485 = vmatpush1.bf16.msra.mxu0 %v4347_v29  ;;  %3571 = vmatpush1.bf16.msra.mxu1 %v4349_v30  ;;  %v4374_v46 = vcombine.high %v49_v17, %v53_v56  ;;  %v4373_v51 = vcombine.low %v49_v17, %v53_v56  ;;  %v101_v29 = vld [vmem:[%s6642_s2 + $0x268] sm:$0xff]  ;;  %v4411_v30 = vcombine.low %v88_v16, %v92_v18  ;;  %v116_v17 = vld [vmem:[%s6642_s2 + $0x2e0] sm:$0xff] }
 0x107   :  { %3486 = vmatprep.subr.bf16.mxu0 %v4356_v31  ;;  %3572 = vmatprep.subr.bf16.mxu1 %v4358_v32  ;;  %v4413_v31 = vcombine.low %v89_v20, %v93_v21  ;;  %v4420_v32 = vcombine.high %v96_v26, %v100_v27  ;;  %v4422_v33 = vcombine.high %v97_v28, %v101_v29  ;;  %v113_v56 = vld [vmem:[%s6642_s2 + $0x2c8] sm:$0xff]  ;;  %v152_v18 = vld [vmem:[%s6642_s2 + $0x400] sm:$0xff] }
 0x108   :  { %3516 = vmatprep.mubr.bf16.mxu0 %v5668_v35  ;;  %3602 = vmatprep.mubr.bf16.mxu1 %v5668_v35  ;;  %v156_v20 = vld [vmem:[%s6642_s2 + $0x420] sm:$0xff]  ;;  %v153_v21 = vld [vmem:[%s6642_s2 + $0x408] sm:$0xff] }
 0x10a   :  { %3487 = vmatpush1.bf16.msra.mxu0 %v4355_v38  ;;  %3573 = vmatpush1.bf16.msra.mxu1 %v4357_v39  ;;  %v109_v38 = vld [vmem:[%s6642_s2 + $0x2a8] sm:$0xff]  ;;  %v4419_v39 = vcombine.low %v96_v26, %v100_v27  ;;  %v160_v27 = vld [vmem:[%s6642_s2 + $0x440] sm:$0xff] }
 0x10b   :  { %3488 = vmatprep.subr.bf16.mxu0 %v4364_v40  ;;  %3574 = vmatprep.subr.bf16.mxu1 %v4366_v10  ;;  %v4421_v40 = vcombine.low %v97_v28, %v101_v29  ;;  %v4428_v10 = vcombine.high %v104_v34, %v108_v36  ;;  %v4430_v41 = vcombine.high %v105_v37, %v109_v38  ;;  %v164_v28 = vld [vmem:[%s6642_s2 + $0x460] sm:$0xff] }
 0x10c   :  { %v5857_v29 = vld [vmem:[%s6641_s0] ss:$16 sps:$4 sm:$0xff]  }
 0x10e   :  { %3489 = vmatpush1.bf16.msra.mxu0 %v4363_v43  ;;  %3575 = vmatpush1.bf16.msra.mxu1 %v4365_v44  ;;  %v117_v43 = vld [vmem:[%s6642_s2 + $0x2e8] sm:$0xff]  ;;  %v4427_v44 = vcombine.low %v104_v34, %v108_v36  ;;  %v4484_v34 = vcombine.high %v160_v27, %v164_v28 }
 0x10f   :  { %3490 = vmatprep.subr.bf16.mxu0 %v4372_v45  ;;  %3576 = vmatprep.subr.bf16.mxu1 %v4374_v46  ;;  %v4429_v45 = vcombine.low %v105_v37, %v109_v38  ;;  %v4436_v46 = vcombine.high %v112_v42, %v116_v17  ;;  %v4438_v19 = vcombine.high %v113_v56, %v117_v43  ;;  %v168_v37 = vld [vmem:[%s6642_s2 + $0x480] sm:$0xff] }
 0x110   :  { %v172_v38 = vld [vmem:[%s6642_s2 + $0x4a0] sm:$0xff] }
 0x112   :  { %3491 = vmatpush1.bf16.msra.mxu0 %v4371_v50  ;;  %3577 = vmatpush1.bf16.msra.mxu1 %v4373_v51  ;;  %v125_v50 = vld [vmem:[%s6642_s2 + $0x328] sm:$0xff]  ;;  %v4435_v51 = vcombine.low %v112_v42, %v116_v17  ;;  %v4492_v17 = vcombine.high %v168_v37, %v172_v38 }
 0x113   :  { %3492 = vmatprep.subr.bf16.mxu0 %v4380_v52  ;;  %3578 = vmatprep.subr.bf16.mxu1 %v4382_v53  ;;  %v4437_v52 = vcombine.low %v113_v56, %v117_v43  ;;  %v4444_v53 = vcombine.high %v120_v47, %v124_v48  ;;  %v4446_v54 = vcombine.high %v121_v49, %v125_v50  ;;  %v176_v43 = vld [vmem:[%s6642_s2 + $0x4c0] sm:$0xff] }
 0x116   :  { %3493 = vmatpush1.bf16.msra.mxu0 %v4379_v59  ;;  %3579 = vmatpush1.bf16.msra.mxu1 %v4381_v60  ;;  %v133_v59 = vld [vmem:[%s6642_s2 + $0x368] sm:$0xff]  ;;  %v4443_v60 = vcombine.low %v120_v47, %v124_v48 }
 0x117   :  { %3494 = vmatprep.subr.bf16.mxu0 %v4388_v61  ;;  %3580 = vmatprep.subr.bf16.mxu1 %v4390_v62  ;;  %v4445_v61 = vcombine.low %v121_v49, %v125_v50  ;;  %v4452_v62 = vcombine.high %v128_v55, %v132_v57  ;;  %v4454_v63 = vcombine.high %v129_v58, %v133_v59  ;;  %v184_v50 = vld [vmem:[%s6642_s2 + $0x500] sm:$0xff] }
 0x11a   :  { %3495 = vmatpush1.bf16.msra.mxu0 %v4387_v3  ;;  %3581 = vmatpush1.bf16.msra.mxu1 %v4389_v4  ;;  %v141_v3 = vld [vmem:[%s6642_s2 + $0x3a8] sm:$0xff]  ;;  %v4451_v4 = vcombine.low %v128_v55, %v132_v57 }
 0x11b   :  { %3496 = vmatprep.subr.bf16.mxu0 %v4396_v5  ;;  %3582 = vmatprep.subr.bf16.mxu1 %v4398_v6  ;;  %v4453_v5 = vcombine.low %v129_v58, %v133_v59  ;;  %v4460_v6 = vcombine.high %v136_v0, %v140_v1  ;;  %v4462_v7 = vcombine.high %v137_v2, %v141_v3  ;;  %v192_v59 = vld [vmem:[%s6642_s2 + $0x540] sm:$0xff] }
 0x11e   :  { %3497 = vmatpush1.bf16.msra.mxu0 %v4395_v12  ;;  %3583 = vmatpush1.bf16.msra.mxu1 %v4397_v13  ;;  %v149_v12 = vld [vmem:[%s6642_s2 + $0x3e8] sm:$0xff]  ;;  %v4459_v13 = vcombine.low %v136_v0, %v140_v1 }
 0x11f   :  { %3498 = vmatprep.subr.bf16.mxu0 %v4404_v14  ;;  %3584 = vmatprep.subr.bf16.mxu1 %v4406_v15  ;;  %v4461_v14 = vcombine.low %v137_v2, %v141_v3  ;;  %v4468_v15 = vcombine.high %v144_v8, %v148_v9  ;;  %v4470_v16 = vcombine.high %v145_v11, %v149_v12  ;;  %v200_v3 = vld [vmem:[%s6642_s2 + $0x580] sm:$0xff] }
 0x122   :  { %3499 = vmatpush1.bf16.msra.mxu0 %v4403_v22  ;;  %3585 = vmatpush1.bf16.msra.mxu1 %v4405_v23  ;;  %v157_v22 = vld [vmem:[%s6642_s2 + $0x428] sm:$0xff]  ;;  %v4467_v23 = vcombine.low %v144_v8, %v148_v9 }
 0x123   :  { %3500 = vmatprep.subr.bf16.mxu0 %v4412_v24  ;;  %3586 = vmatprep.subr.bf16.mxu1 %v4414_v25  ;;  %v4469_v24 = vcombine.low %v145_v11, %v149_v12  ;;  %v4476_v25 = vcombine.high %v152_v18, %v156_v20  ;;  %v4478_v26 = vcombine.high %v153_v21, %v157_v22  ;;  %v208_v12 = vld [vmem:[%s6642_s2 + $0x5c0] sm:$0xff] }
 0x126   :  { %3501 = vmatpush1.bf16.msra.mxu0 %v4411_v30  ;;  %3587 = vmatpush1.bf16.msra.mxu1 %v4413_v31  ;;  %v161_v30 = vld [vmem:[%s6642_s2 + $0x448] sm:$0xff] }
 0x127   :  { %3502 = vmatprep.subr.bf16.mxu0 %v4420_v32  ;;  %3588 = vmatprep.subr.bf16.mxu1 %v4422_v33  ;;  %v165_v31 = vld [vmem:[%s6642_s2 + $0x468] sm:$0xff]  ;;  %v4475_v32 = vcombine.low %v152_v18, %v156_v20  ;;  %v4477_v33 = vcombine.low %v153_v21, %v157_v22  ;;  %v216_v22 = vld [vmem:[%s6642_s2 + $0x600] sm:$0xff] }
 0x128   :  { %v4486_v36 = vcombine.high %v161_v30, %v165_v31  ;;  %v4485_v42 = vcombine.low %v161_v30, %v165_v31  ;;  %v224_v31 = vld [vmem:[%s6642_s2 + $0x640] sm:$0xff] }
 0x12a   :  { %3503 = vmatpush1.bf16.msra.mxu0 %v4419_v39  ;;  %3589 = vmatpush1.bf16.msra.mxu1 %v4421_v40  ;;  %v5874_v39 = vld [vmem:[%s6641_s0 + $0xc] ss:$16 sps:$4 sm:$0xff]  }
 0x12b   :  { %3504 = vmatprep.subr.bf16.mxu0 %v4428_v10  ;;  %3590 = vmatprep.subr.bf16.mxu1 %v4430_v41  ;;  %v169_v40 = vld [vmem:[%s6642_s2 + $0x488] sm:$0xff]  ;;  %v4483_v41 = vcombine.low %v160_v27, %v164_v28 }
 0x12c   :  { %v173_v10 = vld [vmem:[%s6642_s2 + $0x4a8] sm:$0xff] }
 0x12d   :  { %v4494_v56 = vcombine.high %v169_v40, %v173_v10  ;;  %v4493_v47 = vcombine.low %v169_v40, %v173_v10  ;;  %v232_v10 = vld [vmem:[%s6642_s2 + $0x680] sm:$0xff] }
 0x12e   :  { %3505 = vmatpush1.bf16.msra.mxu0 %v4427_v44  ;;  %3591 = vmatpush1.bf16.msra.mxu1 %v4429_v45  ;;  %v180_v44 = vld [vmem:[%s6642_s2 + $0x4e0] sm:$0xff]  ;;  %v177_v45 = vld [vmem:[%s6642_s2 + $0x4c8] sm:$0xff] }
 0x12f   :  { %3506 = vmatprep.subr.bf16.mxu0 %v4436_v46  ;;  %3592 = vmatprep.subr.bf16.mxu1 %v4438_v19  ;;  %v181_v46 = vld [vmem:[%s6642_s2 + $0x4e8] sm:$0xff]  ;;  %v4491_v19 = vcombine.low %v168_v37, %v172_v38  ;;  %v4500_v48 = vcombine.high %v176_v43, %v180_v44 }
 0x130   :  { %v4502_v49 = vcombine.high %v177_v45, %v181_v46  ;;  %v4501_v55 = vcombine.low %v177_v45, %v181_v46  ;;  %v240_v46 = vld [vmem:[%s6642_s2 + $0x6c0] sm:$0xff] }
 0x132   :  { %3507 = vmatpush1.bf16.msra.mxu0 %v4435_v51  ;;  %3593 = vmatpush1.bf16.msra.mxu1 %v4437_v52  ;;  %v188_v51 = vld [vmem:[%s6642_s2 + $0x520] sm:$0xff]  ;;  %v185_v52 = vld [vmem:[%s6642_s2 + $0x508] sm:$0xff] }
 0x133   :  { %3508 = vmatprep.subr.bf16.mxu0 %v4444_v53  ;;  %3594 = vmatprep.subr.bf16.mxu1 %v4446_v54  ;;  %v189_v53 = vld [vmem:[%s6642_s2 + $0x528] sm:$0xff]  ;;  %v4499_v54 = vcombine.low %v176_v43, %v180_v44  ;;  %v4508_v57 = vcombine.high %v184_v50, %v188_v51 }
 0x134   :  { %v4510_v58 = vcombine.high %v185_v52, %v189_v53  ;;  %v4509_v0 = vcombine.low %v185_v52, %v189_v53  ;;  %v248_v53 = vld [vmem:[%s6642_s2 + $0x700] sm:$0xff] }
 0x136   :  { %3509 = vmatpush1.bf16.msra.mxu0 %v4443_v60  ;;  %3595 = vmatpush1.bf16.msra.mxu1 %v4445_v61  ;;  %v196_v60 = vld [vmem:[%s6642_s2 + $0x560] sm:$0xff]  ;;  %v193_v61 = vld [vmem:[%s6642_s2 + $0x548] sm:$0xff] }
 0x137   :  { %3510 = vmatprep.subr.bf16.mxu0 %v4452_v62  ;;  %3596 = vmatprep.subr.bf16.mxu1 %v4454_v63  ;;  %v197_v62 = vld [vmem:[%s6642_s2 + $0x568] sm:$0xff]  ;;  %v4507_v63 = vcombine.low %v184_v50, %v188_v51  ;;  %v4516_v1 = vcombine.high %v192_v59, %v196_v60 }
 0x138   :  { %v4518_v2 = vcombine.high %v193_v61, %v197_v62  ;;  %v4517_v8 = vcombine.low %v193_v61, %v197_v62  ;;  %v256_v62 = vld [vmem:[%s6642_s2 + $0x740] sm:$0xff] }
 0x13a   :  { %3511 = vmatpush1.bf16.msra.mxu0 %v4451_v4  ;;  %3597 = vmatpush1.bf16.msra.mxu1 %v4453_v5  ;;  %v204_v4 = vld [vmem:[%s6642_s2 + $0x5a0] sm:$0xff]  ;;  %v201_v5 = vld [vmem:[%s6642_s2 + $0x588] sm:$0xff] }
 0x13b   :  { %3512 = vmatprep.subr.bf16.mxu0 %v4460_v6  ;;  %3598 = vmatprep.subr.bf16.mxu1 %v4462_v7  ;;  %v205_v6 = vld [vmem:[%s6642_s2 + $0x5a8] sm:$0xff]  ;;  %v4515_v7 = vcombine.low %v192_v59, %v196_v60  ;;  %v4524_v9 = vcombine.high %v200_v3, %v204_v4 }
 0x13c   :  { %v4526_v11 = vcombine.high %v201_v5, %v205_v6  ;;  %v4525_v18 = vcombine.low %v201_v5, %v205_v6  ;;  %v264_v6 = vld [vmem:[%s6642_s2 + $0x780] sm:$0xff] }
 0x13e   :  { %3513 = vmatpush1.bf16.msra.mxu0 %v4459_v13  ;;  %3599 = vmatpush1.bf16.msra.mxu1 %v4461_v14  ;;  %v212_v13 = vld [vmem:[%s6642_s2 + $0x5e0] sm:$0xff]  ;;  %v209_v14 = vld [vmem:[%s6642_s2 + $0x5c8] sm:$0xff] }
 0x13f   :  { %3514 = vmatprep.subr.bf16.mxu0 %v4468_v15  ;;  %3600 = vmatprep.subr.bf16.mxu1 %v4470_v16  ;;  %v213_v15 = vld [vmem:[%s6642_s2 + $0x5e8] sm:$0xff]  ;;  %v4523_v16 = vcombine.low %v200_v3, %v204_v4  ;;  %v4532_v20 = vcombine.high %v208_v12, %v212_v13 }
 0x140   :  { %v4534_v21 = vcombine.high %v209_v14, %v213_v15  ;;  %v4533_v27 = vcombine.low %v209_v14, %v213_v15  ;;  %v272_v15 = vld [vmem:[%s6642_s2 + $0x7c0] sm:$0xff] }
 0x142   :  { %3515 = vmatpush1.bf16.msra.mxu0 %v4467_v23  ;;  %3601 = vmatpush1.bf16.msra.mxu1 %v4469_v24  ;;  %v220_v23 = vld [vmem:[%s6642_s2 + $0x620] sm:$0xff]  ;;  %v217_v24 = vld [vmem:[%s6642_s2 + $0x608] sm:$0xff] }
 0x143   :  { %3527 = vmatprep.subr.bf16.mxu0 %v4476_v25  ;;  %3613 = vmatprep.subr.bf16.mxu1 %v4478_v26  ;;  %v221_v25 = vld [vmem:[%s6642_s2 + $0x628] sm:$0xff]  ;;  %v4531_v26 = vcombine.low %v208_v12, %v212_v13  ;;  %v4540_v28 = vcombine.high %v216_v22, %v220_v23 }
 0x144   :  { %v4542_v30 = vcombine.high %v217_v24, %v221_v25  ;;  %v4541_v37 = vcombine.low %v217_v24, %v221_v25  ;;  %v26_v25 = vld [vmem:[%s6642_s2 + $0x10] sm:$0xff] }
 0x145   :  { %3517 = vmatmul.mubr.bf16.vlgmr.msra.gmra.mrb[0].mxu0 %v5857_v29  ;;  %3603 = vmatmul.mubr.bf16.vlgmr.msra.gmra.mrb[0].mxu1 %v5857_v29 }
 0x146   :  { %3528 = vmatpush1.bf16.msra.mxu0 %v4475_v32  ;;  %3614 = vmatpush1.bf16.msra.mxu1 %v4477_v33  ;;  %v228_v32 = vld [vmem:[%s6642_s2 + $0x660] sm:$0xff]  ;;  %v225_v33 = vld [vmem:[%s6642_s2 + $0x648] sm:$0xff] }
 0x147   :  { %3529 = vmatprep.subr.bf16.mxu0 %v4484_v34  ;;  %3615 = vmatprep.subr.bf16.mxu1 %v4486_v36  ;;  %v229_v34 = vld [vmem:[%s6642_s2 + $0x668] sm:$0xff]  ;;  %v4539_v36 = vcombine.low %v216_v22, %v220_v23  ;;  %v4548_v38 = vcombine.high %v224_v31, %v228_v32 }
 0x148   :  { %3559 = vmatprep.mubr.bf16.mxu0 %v5874_v39  ;;  %3645 = vmatprep.mubr.bf16.mxu1 %v5874_v39  ;;  %v4550_v40 = vcombine.high %v225_v33, %v229_v34  ;;  %v4549_v43 = vcombine.low %v225_v33, %v229_v34  ;;  %v34_v34 = vld [vmem:[%s6642_s2 + $0x50] sm:$0xff] }
 0x14a   :  { %3530 = vmatpush1.bf16.msra.mxu0 %v4483_v41  ;;  %3616 = vmatpush1.bf16.msra.mxu1 %v4485_v42  ;;  %v236_v41 = vld [vmem:[%s6642_s2 + $0x6a0] sm:$0xff]  ;;  %v233_v42 = vld [vmem:[%s6642_s2 + $0x688] sm:$0xff] }
 0x14b   :  { %3531 = vmatprep.subr.bf16.mxu0 %v4492_v17  ;;  %3617 = vmatprep.subr.bf16.mxu1 %v4494_v56  ;;  %v237_v17 = vld [vmem:[%s6642_s2 + $0x6a8] sm:$0xff]  ;;  %v4547_v56 = vcombine.low %v224_v31, %v228_v32  ;;  %v4556_v44 = vcombine.high %v232_v10, %v236_v41 }
 0x14c   :  { %v4558_v45 = vcombine.high %v233_v42, %v237_v17  ;;  %v4557_v50 = vcombine.low %v233_v42, %v237_v17 }
 0x14e   :  { %3532 = vmatpush1.bf16.msra.mxu0 %v4491_v19  ;;  %3618 = vmatpush1.bf16.msra.mxu1 %v4493_v47  ;;  %v244_v19 = vld [vmem:[%s6642_s2 + $0x6e0] sm:$0xff]  ;;  %v241_v47 = vld [vmem:[%s6642_s2 + $0x6c8] sm:$0xff] }
 0x14f   :  { %3533 = vmatprep.subr.bf16.mxu0 %v4500_v48  ;;  %3619 = vmatprep.subr.bf16.mxu1 %v4502_v49  ;;  %v245_v48 = vld [vmem:[%s6642_s2 + $0x6e8] sm:$0xff]  ;;  %v4555_v49 = vcombine.low %v232_v10, %v236_v41  ;;  %v4564_v51 = vcombine.high %v240_v46, %v244_v19 }
 0x150   :  { %v4566_v52 = vcombine.high %v241_v47, %v245_v48  ;;  %v4565_v59 = vcombine.low %v241_v47, %v245_v48 }
 0x152   :  { %3534 = vmatpush1.bf16.msra.mxu0 %v4499_v54  ;;  %3620 = vmatpush1.bf16.msra.mxu1 %v4501_v55  ;;  %v252_v54 = vld [vmem:[%s6642_s2 + $0x720] sm:$0xff]  ;;  %v249_v55 = vld [vmem:[%s6642_s2 + $0x708] sm:$0xff] }
 0x153   :  { %3535 = vmatprep.subr.bf16.mxu0 %v4508_v57  ;;  %3621 = vmatprep.subr.bf16.mxu1 %v4510_v58  ;;  %v253_v57 = vld [vmem:[%s6642_s2 + $0x728] sm:$0xff]  ;;  %v4563_v58 = vcombine.low %v240_v46, %v244_v19  ;;  %v4572_v60 = vcombine.high %v248_v53, %v252_v54 }
 0x154   :  { %v4574_v61 = vcombine.high %v249_v55, %v253_v57  ;;  %v4573_v3 = vcombine.low %v249_v55, %v253_v57 }
 0x156   :  { %3536 = vmatpush1.bf16.msra.mxu0 %v4507_v63  ;;  %3622 = vmatpush1.bf16.msra.mxu1 %v4509_v0  ;;  %v260_v63 = vld [vmem:[%s6642_s2 + $0x760] sm:$0xff]  ;;  %v257_v0 = vld [vmem:[%s6642_s2 + $0x748] sm:$0xff] }
 0x157   :  { %3537 = vmatprep.subr.bf16.mxu0 %v4516_v1  ;;  %3623 = vmatprep.subr.bf16.mxu1 %v4518_v2  ;;  %v261_v1 = vld [vmem:[%s6642_s2 + $0x768] sm:$0xff]  ;;  %v4571_v2 = vcombine.low %v248_v53, %v252_v54  ;;  %v4580_v4 = vcombine.high %v256_v62, %v260_v63 }
 0x158   :  { %v4582_v5 = vcombine.high %v257_v0, %v261_v1  ;;  %v4581_v12 = vcombine.low %v257_v0, %v261_v1  ;;  %v66_v1 = vld [vmem:[%s6642_s2 + $0x150] sm:$0xff] }
 0x15a   :  { %3538 = vmatpush1.bf16.msra.mxu0 %v4515_v7  ;;  %3624 = vmatpush1.bf16.msra.mxu1 %v4517_v8  ;;  %v268_v7 = vld [vmem:[%s6642_s2 + $0x7a0] sm:$0xff]  ;;  %v265_v8 = vld [vmem:[%s6642_s2 + $0x788] sm:$0xff] }
 0x15b   :  { %3539 = vmatprep.subr.bf16.mxu0 %v4524_v9  ;;  %3625 = vmatprep.subr.bf16.mxu1 %v4526_v11  ;;  %v269_v9 = vld [vmem:[%s6642_s2 + $0x7a8] sm:$0xff]  ;;  %v4579_v11 = vcombine.low %v256_v62, %v260_v63  ;;  %v4588_v13 = vcombine.high %v264_v6, %v268_v7 }
 0x15c   :  { %v4590_v14 = vcombine.high %v265_v8, %v269_v9  ;;  %v4589_v22 = vcombine.low %v265_v8, %v269_v9  ;;  %v74_v9 = vld [vmem:[%s6642_s2 + $0x190] sm:$0xff] }
 0x15e   :  { %3540 = vmatpush1.bf16.msra.mxu0 %v4523_v16  ;;  %3626 = vmatpush1.bf16.msra.mxu1 %v4525_v18  ;;  %v276_v16 = vld [vmem:[%s6642_s2 + $0x7e0] sm:$0xff]  ;;  %v273_v18 = vld [vmem:[%s6642_s2 + $0x7c8] sm:$0xff] }
 0x15f   :  { %3541 = vmatprep.subr.bf16.mxu0 %v4532_v20  ;;  %3627 = vmatprep.subr.bf16.mxu1 %v4534_v21  ;;  %v277_v20 = vld [vmem:[%s6642_s2 + $0x7e8] sm:$0xff]  ;;  %v4587_v21 = vcombine.low %v264_v6, %v268_v7  ;;  %v4596_v23 = vcombine.high %v272_v15, %v276_v16 }
 0x160   :  { %v4598_v24 = vcombine.high %v273_v18, %v277_v20  ;;  %v4597_v31 = vcombine.low %v273_v18, %v277_v20  ;;  %v82_v20 = vld [vmem:[%s6642_s2 + $0x1d0] sm:$0xff] }
 0x162   :  { %3542 = vmatpush1.bf16.msra.mxu0 %v4531_v26  ;;  %3628 = vmatpush1.bf16.msra.mxu1 %v4533_v27  ;;  %v30_v26 = vld [vmem:[%s6642_s2 + $0x30] sm:$0xff]  ;;  %v27_v27 = vld [vmem:[%s6642_s2 + $0x18] sm:$0xff] }
 0x163   :  { %3543 = vmatprep.subr.bf16.mxu0 %v4540_v28  ;;  %3629 = vmatprep.subr.bf16.mxu1 %v4542_v30  ;;  %v31_v28 = vld [vmem:[%s6642_s2 + $0x38] sm:$0xff]  ;;  %v4595_v30 = vcombine.low %v272_v15, %v276_v16  ;;  %v4352_v32 = vcombine.high %v26_v25, %v30_v26  ;;  %v4351_v10 = vcombine.low %v26_v25, %v30_v26 }
 0x164   :  { %v4354_v33 = vcombine.high %v27_v27, %v31_v28  ;;  %v4353_v41 = vcombine.low %v27_v27, %v31_v28  ;;  %v90_v28 = vld [vmem:[%s6642_s2 + $0x210] sm:$0xff] }
 0x166   :  { %3544 = vmatpush1.bf16.msra.mxu0 %v4539_v36  ;;  %3630 = vmatpush1.bf16.msra.mxu1 %v4541_v37  ;;  %v38_v36 = vld [vmem:[%s6642_s2 + $0x70] sm:$0xff]  ;;  %v6063_v37 = vld [vmem:[%s6641_s0 + $0x8] ss:$16 sps:$4 sm:$0xff]  }
 0x167   :  { %3545 = vmatprep.subr.bf16.mxu0 %v4548_v38  ;;  %3631 = vmatprep.subr.bf16.mxu1 %v4550_v40  ;;  %v35_v38 = vld [vmem:[%s6642_s2 + $0x58] sm:$0xff]  ;;  %v4360_v42 = vcombine.high %v34_v34, %v38_v36  ;;  %v4359_v46 = vcombine.low %v34_v34, %v38_v36 }
 0x168   :  { %v39_v40 = vld [vmem:[%s6642_s2 + $0x78] sm:$0xff] }
 0x169   :  { %v4362_v17 = vcombine.high %v35_v38, %v39_v40  ;;  %v4361_v19 = vcombine.low %v35_v38, %v39_v40  ;;  %v98_v40 = vld [vmem:[%s6642_s2 + $0x250] sm:$0xff] }
 0x16a   :  { %3546 = vmatpush1.bf16.msra.mxu0 %v4547_v56  ;;  %3632 = vmatpush1.bf16.msra.mxu1 %v4549_v43  ;;  %v42_v56 = vld [vmem:[%s6642_s2 + $0x90] sm:$0xff] }
 0x16b   :  { %3547 = vmatprep.subr.bf16.mxu0 %v4556_v44  ;;  %3633 = vmatprep.subr.bf16.mxu1 %v4558_v45  ;;  %v46_v43 = vld [vmem:[%s6642_s2 + $0xb0] sm:$0xff]  ;;  %v43_v44 = vld [vmem:[%s6642_s2 + $0x98] sm:$0xff] }
 0x16c   :  { %v47_v45 = vld [vmem:[%s6642_s2 + $0xb8] sm:$0xff]  ;;  %v4368_v47 = vcombine.high %v42_v56, %v46_v43  ;;  %v4367_v53 = vcombine.low %v42_v56, %v46_v43 }
 0x16d   :  { %v4370_v48 = vcombine.high %v43_v44, %v47_v45  ;;  %v4369_v54 = vcombine.low %v43_v44, %v47_v45  ;;  %v106_v45 = vld [vmem:[%s6642_s2 + $0x290] sm:$0xff] }
 0x16e   :  { %3548 = vmatpush1.bf16.msra.mxu0 %v4555_v49  ;;  %3634 = vmatpush1.bf16.msra.mxu1 %v4557_v50  ;;  %v50_v49 = vld [vmem:[%s6642_s2 + $0xd0] sm:$0xff] }
 0x16f   :  { %3549 = vmatprep.subr.bf16.mxu0 %v4564_v51  ;;  %3635 = vmatprep.subr.bf16.mxu1 %v4566_v52  ;;  %v54_v50 = vld [vmem:[%s6642_s2 + $0xf0] sm:$0xff]  ;;  %v51_v51 = vld [vmem:[%s6642_s2 + $0xd8] sm:$0xff] }
 0x170   :  { %v55_v52 = vld [vmem:[%s6642_s2 + $0xf8] sm:$0xff]  ;;  %v4376_v55 = vcombine.high %v50_v49, %v54_v50 }
 0x171   :  { %v4378_v57 = vcombine.high %v51_v51, %v55_v52  ;;  %v4377_v62 = vcombine.low %v51_v51, %v55_v52  ;;  %v114_v52 = vld [vmem:[%s6642_s2 + $0x2d0] sm:$0xff] }
 0x172   :  { %3550 = vmatpush1.bf16.msra.mxu0 %v4563_v58  ;;  %3636 = vmatpush1.bf16.msra.mxu1 %v4565_v59  ;;  %v58_v58 = vld [vmem:[%s6642_s2 + $0x110] sm:$0xff] }
 0x173   :  { %3551 = vmatprep.subr.bf16.mxu0 %v4572_v60  ;;  %3637 = vmatprep.subr.bf16.mxu1 %v4574_v61  ;;  %v62_v59 = vld [vmem:[%s6642_s2 + $0x130] sm:$0xff]  ;;  %v63_v60 = vld [vmem:[%s6642_s2 + $0x138] sm:$0xff]  ;;  %v4375_v61 = vcombine.low %v50_v49, %v54_v50 }
 0x174   :  { %v4384_v63 = vcombine.high %v58_v58, %v62_v59 }
 0x176   :  { %3552 = vmatpush1.bf16.msra.mxu0 %v4571_v2  ;;  %3638 = vmatpush1.bf16.msra.mxu1 %v4573_v3  ;;  %v70_v2 = vld [vmem:[%s6642_s2 + $0x170] sm:$0xff]  ;;  %v67_v3 = vld [vmem:[%s6642_s2 + $0x158] sm:$0xff] }
 0x177   :  { %3553 = vmatprep.subr.bf16.mxu0 %v4580_v4  ;;  %3639 = vmatprep.subr.bf16.mxu1 %v4582_v5  ;;  %v71_v4 = vld [vmem:[%s6642_s2 + $0x178] sm:$0xff]  ;;  %v4383_v5 = vcombine.low %v58_v58, %v62_v59  ;;  %v4392_v7 = vcombine.high %v66_v1, %v70_v2 }
 0x178   :  { %v4394_v8 = vcombine.high %v67_v3, %v71_v4  ;;  %v4393_v15 = vcombine.low %v67_v3, %v71_v4  ;;  %v130_v4 = vld [vmem:[%s6642_s2 + $0x350] sm:$0xff] }
 0x17a   :  { %3554 = vmatpush1.bf16.msra.mxu0 %v4579_v11  ;;  %3640 = vmatpush1.bf16.msra.mxu1 %v4581_v12  ;;  %v78_v11 = vld [vmem:[%s6642_s2 + $0x1b0] sm:$0xff]  ;;  %v75_v12 = vld [vmem:[%s6642_s2 + $0x198] sm:$0xff] }
 0x17b   :  { %3555 = vmatprep.subr.bf16.mxu0 %v4588_v13  ;;  %3641 = vmatprep.subr.bf16.mxu1 %v4590_v14  ;;  %v79_v13 = vld [vmem:[%s6642_s2 + $0x1b8] sm:$0xff]  ;;  %v4391_v14 = vcombine.low %v66_v1, %v70_v2  ;;  %v4400_v16 = vcombine.high %v74_v9, %v78_v11 }
 0x17c   :  { %v4402_v18 = vcombine.high %v75_v12, %v79_v13  ;;  %v4401_v25 = vcombine.low %v75_v12, %v79_v13  ;;  %v138_v13 = vld [vmem:[%s6642_s2 + $0x390] sm:$0xff] }
 0x17e   :  { %3556 = vmatpush1.bf16.msra.mxu0 %v4587_v21  ;;  %3642 = vmatpush1.bf16.msra.mxu1 %v4589_v22  ;;  %v86_v21 = vld [vmem:[%s6642_s2 + $0x1f0] sm:$0xff]  ;;  %v83_v22 = vld [vmem:[%s6642_s2 + $0x1d8] sm:$0xff] }
 0x17f   :  { %3557 = vmatprep.subr.bf16.mxu0 %v4596_v23  ;;  %3643 = vmatprep.subr.bf16.mxu1 %v4598_v24  ;;  %v87_v23 = vld [vmem:[%s6642_s2 + $0x1f8] sm:$0xff]  ;;  %v4399_v24 = vcombine.low %v74_v9, %v78_v11  ;;  %v4408_v26 = vcombine.high %v82_v20, %v86_v21 }
 0x180   :  { %v4410_v27 = vcombine.high %v83_v22, %v87_v23  ;;  %v4409_v34 = vcombine.low %v83_v22, %v87_v23  ;;  %v146_v23 = vld [vmem:[%s6642_s2 + $0x3d0] sm:$0xff] }
 0x182   :  { %3558 = vmatpush1.bf16.msra.mxu0 %v4595_v30  ;;  %3644 = vmatpush1.bf16.msra.mxu1 %v4597_v31  ;;  %v94_v30 = vld [vmem:[%s6642_s2 + $0x230] sm:$0xff]  ;;  %v91_v31 = vld [vmem:[%s6642_s2 + $0x218] sm:$0xff] }
 0x183   :  { %3656 = vmatprep.subr.bf16.mxu0 %v4352_v32  ;;  %3742 = vmatprep.subr.bf16.mxu1 %v4354_v33  ;;  %v95_v32 = vld [vmem:[%s6642_s2 + $0x238] sm:$0xff]  ;;  %v4407_v33 = vcombine.low %v82_v20, %v86_v21  ;;  %v4416_v36 = vcombine.high %v90_v28, %v94_v30 }
 0x184   :  { %v4418_v38 = vcombine.high %v91_v31, %v95_v32  ;;  %v4417_v56 = vcombine.low %v91_v31, %v95_v32  ;;  %v154_v32 = vld [vmem:[%s6642_s2 + $0x410] sm:$0xff] }
 0x185   :  { %3560 = vmatmul.mubr.bf16.vlgmr.msra.gmra.mrb[0].mxu0 %v6063_v37  ;;  %3646 = vmatmul.mubr.bf16.vlgmr.msra.gmra.mrb[0].mxu1 %v6063_v37 }
 0x186   :  { %3657 = vmatpush1.bf16.msra.mxu0 %v4351_v10  ;;  %3743 = vmatpush1.bf16.msra.mxu1 %v4353_v41  ;;  %v102_v10 = vld [vmem:[%s6642_s2 + $0x270] sm:$0xff]  ;;  %v99_v41 = vld [vmem:[%s6642_s2 + $0x258] sm:$0xff] }
 0x187   :  { %3658 = vmatprep.subr.bf16.mxu0 %v4360_v42  ;;  %3744 = vmatprep.subr.bf16.mxu1 %v4362_v17  ;;  %v103_v42 = vld [vmem:[%s6642_s2 + $0x278] sm:$0xff]  ;;  %v4415_v17 = vcombine.low %v90_v28, %v94_v30  ;;  %v4424_v43 = vcombine.high %v98_v40, %v102_v10 }
 0x188   :  { %3688 = vmatprep.mubr.bf16.mxu0 %v5668_v35  ;;  %3774 = vmatprep.mubr.bf16.mxu1 %v5668_v35  ;;  %v59_v35 = vld [vmem:[%s6642_s2 + $0x118] sm:$0xff]  ;;  %v4426_v44 = vcombine.high %v99_v41, %v103_v42  ;;  %v4425_v49 = vcombine.low %v99_v41, %v103_v42  ;;  %v162_v42 = vld [vmem:[%s6642_s2 + $0x450] sm:$0xff] }
 0x189   :  { %v4386_v0 = vcombine.high %v59_v35, %v63_v60  ;;  %v4385_v6 = vcombine.low %v59_v35, %v63_v60  ;;  %v122_v60 = vld [vmem:[%s6642_s2 + $0x310] sm:$0xff] }
 0x18a   :  { %3659 = vmatpush1.bf16.msra.mxu0 %v4359_v46  ;;  %3745 = vmatpush1.bf16.msra.mxu1 %v4361_v19  ;;  %v110_v46 = vld [vmem:[%s6642_s2 + $0x2b0] sm:$0xff]  ;;  %v107_v19 = vld [vmem:[%s6642_s2 + $0x298] sm:$0xff] }
 0x18b   :  { %3660 = vmatprep.subr.bf16.mxu0 %v4368_v47  ;;  %3746 = vmatprep.subr.bf16.mxu1 %v4370_v48  ;;  %v111_v47 = vld [vmem:[%s6642_s2 + $0x2b8] sm:$0xff]  ;;  %v4423_v48 = vcombine.low %v98_v40, %v102_v10  ;;  %v4432_v50 = vcombine.high %v106_v45, %v110_v46 }
 0x18c   :  { %v4434_v51 = vcombine.high %v107_v19, %v111_v47  ;;  %v4433_v58 = vcombine.low %v107_v19, %v111_v47  ;;  %v170_v47 = vld [vmem:[%s6642_s2 + $0x490] sm:$0xff] }
 0x18e   :  { %3661 = vmatpush1.bf16.msra.mxu0 %v4367_v53  ;;  %3747 = vmatpush1.bf16.msra.mxu1 %v4369_v54  ;;  %v118_v53 = vld [vmem:[%s6642_s2 + $0x2f0] sm:$0xff]  ;;  %v115_v54 = vld [vmem:[%s6642_s2 + $0x2d8] sm:$0xff] }
 0x18f   :  { %3662 = vmatprep.subr.bf16.mxu0 %v4376_v55  ;;  %3748 = vmatprep.subr.bf16.mxu1 %v4378_v57  ;;  %v119_v55 = vld [vmem:[%s6642_s2 + $0x2f8] sm:$0xff]  ;;  %v4431_v57 = vcombine.low %v106_v45, %v110_v46  ;;  %v4440_v59 = vcombine.high %v114_v52, %v118_v53 }
 0x190   :  { %v4442_v35 = vcombine.high %v115_v54, %v119_v55  ;;  %v4441_v1 = vcombine.low %v115_v54, %v119_v55  ;;  %v178_v55 = vld [vmem:[%s6642_s2 + $0x4d0] sm:$0xff] }
 0x192   :  { %3663 = vmatpush1.bf16.msra.mxu0 %v4375_v61  ;;  %3749 = vmatpush1.bf16.msra.mxu1 %v4377_v62  ;;  %v126_v61 = vld [vmem:[%s6642_s2 + $0x330] sm:$0xff]  ;;  %v123_v62 = vld [vmem:[%s6642_s2 + $0x318] sm:$0xff] }
 0x193   :  { %3664 = vmatprep.subr.bf16.mxu0 %v4384_v63  ;;  %3750 = vmatprep.subr.bf16.mxu1 %v4386_v0  ;;  %v127_v63 = vld [vmem:[%s6642_s2 + $0x338] sm:$0xff]  ;;  %v4439_v0 = vcombine.low %v114_v52, %v118_v53  ;;  %v4448_v2 = vcombine.high %v122_v60, %v126_v61 }
 0x194   :  { %v4450_v3 = vcombine.high %v123_v62, %v127_v63  ;;  %v4449_v9 = vcombine.low %v123_v62, %v127_v63  ;;  %v186_v62 = vld [vmem:[%s6642_s2 + $0x510] sm:$0xff] }
 0x195   :  { %v190_v63 = vld [vmem:[%s6642_s2 + $0x530] sm:$0xff] }
 0x196   :  { %3665 = vmatpush1.bf16.msra.mxu0 %v4383_v5  ;;  %3751 = vmatpush1.bf16.msra.mxu1 %v4385_v6  ;;  %v134_v5 = vld [vmem:[%s6642_s2 + $0x370] sm:$0xff]  ;;  %v131_v6 = vld [vmem:[%s6642_s2 + $0x358] sm:$0xff] }
 0x197   :  { %3666 = vmatprep.subr.bf16.mxu0 %v4392_v7  ;;  %3752 = vmatprep.subr.bf16.mxu1 %v4394_v8  ;;  %v135_v7 = vld [vmem:[%s6642_s2 + $0x378] sm:$0xff]  ;;  %v4447_v8 = vcombine.low %v122_v60, %v126_v61  ;;  %v4456_v11 = vcombine.high %v130_v4, %v134_v5 }
 0x198   :  { %v4458_v12 = vcombine.high %v131_v6, %v135_v7  ;;  %v4457_v20 = vcombine.low %v131_v6, %v135_v7  ;;  %v198_v6 = vld [vmem:[%s6642_s2 + $0x570] sm:$0xff]  ;;  %v195_v7 = vld [vmem:[%s6642_s2 + $0x558] sm:$0xff] }
 0x19a   :  { %3667 = vmatpush1.bf16.msra.mxu0 %v4391_v14  ;;  %3753 = vmatpush1.bf16.msra.mxu1 %v4393_v15  ;;  %v142_v14 = vld [vmem:[%s6642_s2 + $0x3b0] sm:$0xff]  ;;  %v139_v15 = vld [vmem:[%s6642_s2 + $0x398] sm:$0xff] }
 0x19b   :  { %3668 = vmatprep.subr.bf16.mxu0 %v4400_v16  ;;  %3754 = vmatprep.subr.bf16.mxu1 %v4402_v18  ;;  %v143_v16 = vld [vmem:[%s6642_s2 + $0x3b8] sm:$0xff]  ;;  %v4455_v18 = vcombine.low %v130_v4, %v134_v5  ;;  %v4464_v21 = vcombine.high %v138_v13, %v142_v14  ;;  %v194_v5 = vld [vmem:[%s6642_s2 + $0x550] sm:$0xff] }
 0x19c   :  { %v4466_v22 = vcombine.high %v139_v15, %v143_v16  ;;  %v4465_v28 = vcombine.low %v139_v15, %v143_v16  ;;  %v206_v15 = vld [vmem:[%s6642_s2 + $0x5b0] sm:$0xff]  ;;  %v203_v16 = vld [vmem:[%s6642_s2 + $0x598] sm:$0xff] }
 0x19e   :  { %3669 = vmatpush1.bf16.msra.mxu0 %v4399_v24  ;;  %3755 = vmatpush1.bf16.msra.mxu1 %v4401_v25  ;;  %v150_v24 = vld [vmem:[%s6642_s2 + $0x3f0] sm:$0xff]  ;;  %v147_v25 = vld [vmem:[%s6642_s2 + $0x3d8] sm:$0xff] }
 0x19f   :  { %3670 = vmatprep.subr.bf16.mxu0 %v4408_v26  ;;  %3756 = vmatprep.subr.bf16.mxu1 %v4410_v27  ;;  %v151_v26 = vld [vmem:[%s6642_s2 + $0x3f8] sm:$0xff]  ;;  %v4463_v27 = vcombine.low %v138_v13, %v142_v14  ;;  %v4472_v30 = vcombine.high %v146_v23, %v150_v24  ;;  %v202_v14 = vld [vmem:[%s6642_s2 + $0x590] sm:$0xff] }
 0x1a0   :  { %v4474_v31 = vcombine.high %v147_v25, %v151_v26  ;;  %v4473_v40 = vcombine.low %v147_v25, %v151_v26  ;;  %v214_v25 = vld [vmem:[%s6642_s2 + $0x5f0] sm:$0xff]  ;;  %v211_v26 = vld [vmem:[%s6642_s2 + $0x5d8] sm:$0xff] }
 0x1a2   :  { %3671 = vmatpush1.bf16.msra.mxu0 %v4407_v33  ;;  %3757 = vmatpush1.bf16.msra.mxu1 %v4409_v34  ;;  %v158_v33 = vld [vmem:[%s6642_s2 + $0x430] sm:$0xff]  ;;  %v155_v34 = vld [vmem:[%s6642_s2 + $0x418] sm:$0xff] }
 0x1a3   :  { %3672 = vmatprep.subr.bf16.mxu0 %v4416_v36  ;;  %3758 = vmatprep.subr.bf16.mxu1 %v4418_v38  ;;  %v159_v36 = vld [vmem:[%s6642_s2 + $0x438] sm:$0xff]  ;;  %v4471_v38 = vcombine.low %v146_v23, %v150_v24  ;;  %v4480_v10 = vcombine.high %v154_v32, %v158_v33  ;;  %v210_v24 = vld [vmem:[%s6642_s2 + $0x5d0] sm:$0xff] }
 0x1a4   :  { %v4482_v41 = vcombine.high %v155_v34, %v159_v36  ;;  %v4481_v45 = vcombine.low %v155_v34, %v159_v36  ;;  %v222_v34 = vld [vmem:[%s6642_s2 + $0x630] sm:$0xff]  ;;  %v219_v36 = vld [vmem:[%s6642_s2 + $0x618] sm:$0xff] }
 0x1a6   :  { %3673 = vmatpush1.bf16.msra.mxu0 %v4415_v17  ;;  %3759 = vmatpush1.bf16.msra.mxu1 %v4417_v56  ;;  %v166_v17 = vld [vmem:[%s6642_s2 + $0x470] sm:$0xff]  ;;  %v163_v56 = vld [vmem:[%s6642_s2 + $0x458] sm:$0xff] }
 0x1a7   :  { %3674 = vmatprep.subr.bf16.mxu0 %v4424_v43  ;;  %3760 = vmatprep.subr.bf16.mxu1 %v4426_v44  ;;  %v167_v43 = vld [vmem:[%s6642_s2 + $0x478] sm:$0xff]  ;;  %v4479_v44 = vcombine.low %v154_v32, %v158_v33  ;;  %v4488_v46 = vcombine.high %v162_v42, %v166_v17  ;;  %v218_v33 = vld [vmem:[%s6642_s2 + $0x610] sm:$0xff] }
 0x1a8   :  { %v4490_v19 = vcombine.high %v163_v56, %v167_v43  ;;  %v4489_v52 = vcombine.low %v163_v56, %v167_v43  ;;  %v230_v56 = vld [vmem:[%s6642_s2 + $0x670] sm:$0xff]  ;;  %v227_v43 = vld [vmem:[%s6642_s2 + $0x658] sm:$0xff] }
 0x1aa   :  { %3675 = vmatpush1.bf16.msra.mxu0 %v4423_v48  ;;  %3761 = vmatpush1.bf16.msra.mxu1 %v4425_v49  ;;  %v174_v48 = vld [vmem:[%s6642_s2 + $0x4b0] sm:$0xff]  ;;  %v171_v49 = vld [vmem:[%s6642_s2 + $0x498] sm:$0xff] }
 0x1ab   :  { %3676 = vmatprep.subr.bf16.mxu0 %v4432_v50  ;;  %3762 = vmatprep.subr.bf16.mxu1 %v4434_v51  ;;  %v175_v50 = vld [vmem:[%s6642_s2 + $0x4b8] sm:$0xff]  ;;  %v4487_v51 = vcombine.low %v162_v42, %v166_v17  ;;  %v4496_v53 = vcombine.high %v170_v47, %v174_v48  ;;  %v226_v17 = vld [vmem:[%s6642_s2 + $0x650] sm:$0xff] }
 0x1ac   :  { %v4498_v54 = vcombine.high %v171_v49, %v175_v50 }
 0x1ae   :  { %3677 = vmatpush1.bf16.msra.mxu0 %v4431_v57  ;;  %3763 = vmatpush1.bf16.msra.mxu1 %v4433_v58  ;;  %v182_v57 = vld [vmem:[%s6642_s2 + $0x4f0] sm:$0xff]  ;;  %v183_v58 = vld [vmem:[%s6642_s2 + $0x4f8] sm:$0xff] }
 0x1af   :  { %3678 = vmatprep.subr.bf16.mxu0 %v4440_v59  ;;  %3764 = vmatprep.subr.bf16.mxu1 %v4442_v35  ;;  %v4495_v59 = vcombine.low %v170_v47, %v174_v48  ;;  %v4497_v35 = vcombine.low %v171_v49, %v175_v50  ;;  %v4504_v60 = vcombine.high %v178_v55, %v182_v57  ;;  %v234_v48 = vld [vmem:[%s6642_s2 + $0x690] sm:$0xff]  ;;  %v235_v50 = vld [vmem:[%s6642_s2 + $0x698] sm:$0xff] }
 0x1b0   :  { %v238_v49 = vld [vmem:[%s6642_s2 + $0x6b0] sm:$0xff] }
 0x1b2   :  { %3679 = vmatpush1.bf16.msra.mxu0 %v4439_v0  ;;  %3765 = vmatpush1.bf16.msra.mxu1 %v4441_v1  ;;  %v191_v0 = vld [vmem:[%s6642_s2 + $0x538] sm:$0xff]  ;;  %v4503_v1 = vcombine.low %v178_v55, %v182_v57  ;;  %v242_v57 = vld [vmem:[%s6642_s2 + $0x6d0] sm:$0xff] }
 0x1b3   :  { %3680 = vmatprep.subr.bf16.mxu0 %v4448_v2  ;;  %3766 = vmatprep.subr.bf16.mxu1 %v4450_v3  ;;  %v4512_v3 = vcombine.high %v186_v62, %v190_v63 }
 0x1b6   :  { %3681 = vmatpush1.bf16.msra.mxu0 %v4447_v8  ;;  %3767 = vmatpush1.bf16.msra.mxu1 %v4449_v9  ;;  %v199_v8 = vld [vmem:[%s6642_s2 + $0x578] sm:$0xff]  ;;  %v4511_v9 = vcombine.low %v186_v62, %v190_v63  ;;  %v250_v63 = vld [vmem:[%s6642_s2 + $0x710] sm:$0xff] }
 0x1b7   :  { %3682 = vmatprep.subr.bf16.mxu0 %v4456_v11  ;;  %3768 = vmatprep.subr.bf16.mxu1 %v4458_v12  ;;  %v4520_v12 = vcombine.high %v194_v5, %v198_v6  ;;  %v4522_v13 = vcombine.high %v195_v7, %v199_v8 }
 0x1ba   :  { %3683 = vmatpush1.bf16.msra.mxu0 %v4455_v18  ;;  %3769 = vmatpush1.bf16.msra.mxu1 %v4457_v20  ;;  %v207_v18 = vld [vmem:[%s6642_s2 + $0x5b8] sm:$0xff]  ;;  %v4519_v20 = vcombine.low %v194_v5, %v198_v6  ;;  %v258_v6 = vld [vmem:[%s6642_s2 + $0x750] sm:$0xff] }
 0x1bb   :  { %3684 = vmatprep.subr.bf16.mxu0 %v4464_v21  ;;  %3770 = vmatprep.subr.bf16.mxu1 %v4466_v22  ;;  %v4521_v21 = vcombine.low %v195_v7, %v199_v8  ;;  %v4528_v22 = vcombine.high %v202_v14, %v206_v15  ;;  %v4530_v23 = vcombine.high %v203_v16, %v207_v18  ;;  %v262_v7 = vld [vmem:[%s6642_s2 + $0x770] sm:$0xff]  ;;  %v259_v8 = vld [vmem:[%s6642_s2 + $0x758] sm:$0xff] }
 0x1be   :  { %3685 = vmatpush1.bf16.msra.mxu0 %v4463_v27  ;;  %3771 = vmatpush1.bf16.msra.mxu1 %v4465_v28  ;;  %v215_v27 = vld [vmem:[%s6642_s2 + $0x5f8] sm:$0xff]  ;;  %v4527_v28 = vcombine.low %v202_v14, %v206_v15  ;;  %v266_v15 = vld [vmem:[%s6642_s2 + $0x790] sm:$0xff] }
 0x1bf   :  { %3686 = vmatprep.subr.bf16.mxu0 %v4472_v30  ;;  %3772 = vmatprep.subr.bf16.mxu1 %v4474_v31  ;;  %v4529_v30 = vcombine.low %v203_v16, %v207_v18  ;;  %v4536_v31 = vcombine.high %v210_v24, %v214_v25  ;;  %v4538_v32 = vcombine.high %v211_v26, %v215_v27  ;;  %v270_v16 = vld [vmem:[%s6642_s2 + $0x7b0] sm:$0xff]  ;;  %v267_v18 = vld [vmem:[%s6642_s2 + $0x798] sm:$0xff] }
 0x1c2   :  { %3687 = vmatpush1.bf16.msra.mxu0 %v4471_v38  ;;  %3773 = vmatpush1.bf16.msra.mxu1 %v4473_v40  ;;  %v223_v38 = vld [vmem:[%s6642_s2 + $0x638] sm:$0xff]  ;;  %v4535_v40 = vcombine.low %v210_v24, %v214_v25  ;;  %v274_v25 = vld [vmem:[%s6642_s2 + $0x7d0] sm:$0xff] }
 0x1c3   :  { %3699 = vmatprep.subr.bf16.mxu0 %v4480_v10  ;;  %3785 = vmatprep.subr.bf16.mxu1 %v4482_v41  ;;  %v4537_v10 = vcombine.low %v211_v26, %v215_v27  ;;  %v4544_v41 = vcombine.high %v218_v33, %v222_v34  ;;  %v4546_v42 = vcombine.high %v219_v36, %v223_v38  ;;  %v278_v26 = vld [vmem:[%s6642_s2 + $0x7f0] sm:$0xff]  ;;  %v275_v27 = vld [vmem:[%s6642_s2 + $0x7d8] sm:$0xff] }
 0x1c5   :  { %3689 = vmatmul.mubr.bf16.vlgmr.msra.gmra.mrb[4].mxu0 %v5857_v29  ;;  %3775 = vmatmul.mubr.bf16.vlgmr.msra.gmra.mrb[4].mxu1 %v5857_v29  ;;  %v179_v29 = vld [vmem:[%s6642_s2 + $0x4d8] sm:$0xff] }
 0x1c6   :  { %3700 = vmatpush1.bf16.msra.mxu0 %v4479_v44  ;;  %3786 = vmatpush1.bf16.msra.mxu1 %v4481_v45  ;;  %v4506_v61 = vcombine.high %v179_v29, %v183_v58  ;;  %v4505_v2 = vcombine.low %v179_v29, %v183_v58  ;;  %v231_v44 = vld [vmem:[%s6642_s2 + $0x678] sm:$0xff]  ;;  %v4543_v45 = vcombine.low %v218_v33, %v222_v34  ;;  %v246_v29 = vld [vmem:[%s6642_s2 + $0x6f0] sm:$0xff]  ;;  %v3868_v34 = vld [vmem:[%s6643_s4 + $0x80] sm:$0xff] }
 0x1c7   :  { %3701 = vmatprep.subr.bf16.mxu0 %v4488_v46  ;;  %3787 = vmatprep.subr.bf16.mxu1 %v4490_v19  ;;  %v4545_v46 = vcombine.low %v219_v36, %v223_v38  ;;  %v4552_v19 = vcombine.high %v226_v17, %v230_v56  ;;  %v4554_v47 = vcombine.high %v227_v43, %v231_v44  ;;  %v243_v58 = vld [vmem:[%s6642_s2 + $0x6d8] sm:$0xff]  ;;  %v3869_v36 = vld [vmem:[%s6643_s4 + $0x88] sm:$0xff]  ;;  %v3900_v38 = vld [vmem:[%s6643_s4 + $0x180] sm:$0xff] }
 0x1c8   :  { %3731 = vmatprep.mubr.bf16.mxu0 %v5874_v39  ;;  %3817 = vmatprep.mubr.bf16.mxu1 %v5874_v39  ;;  %v187_v39 = vld [vmem:[%s6642_s2 + $0x518] sm:$0xff] }
 0x1c9   :  { %v4514_v4 = vcombine.high %v187_v39, %v191_v0  ;;  %v4513_v11 = vcombine.low %v187_v39, %v191_v0  ;;  %v254_v39 = vld [vmem:[%s6642_s2 + $0x730] sm:$0xff]  ;;  %v251_v0 = vld [vmem:[%s6642_s2 + $0x718] sm:$0xff] }
 0x1ca   :  { %3702 = vmatpush1.bf16.msra.mxu0 %v4487_v51  ;;  %3788 = vmatpush1.bf16.msra.mxu1 %v4489_v52  ;;  %v239_v51 = vld [vmem:[%s6642_s2 + $0x6b8] sm:$0xff]  ;;  %v4551_v52 = vcombine.low %v226_v17, %v230_v56  ;;  %v3852_v17 = vld [vmem:[%s6643_s4] sm:$0xff]  ;;  %v3853_v56 = vld [vmem:[%s6643_s4 + $0x8] sm:$0xff] }
 0x1cb   :  { %3703 = vmatprep.subr.bf16.mxu0 %v4496_v53  ;;  %3789 = vmatprep.subr.bf16.mxu1 %v4498_v54  ;;  %v4553_v53 = vcombine.low %v227_v43, %v231_v44  ;;  %v4560_v54 = vcombine.high %v234_v48, %v238_v49  ;;  %v4562_v55 = vcombine.high %v235_v50, %v239_v51  ;;  %v3884_v43 = vld [vmem:[%s6643_s4 + $0x100] sm:$0xff] }
 0x1ce   :  { %3704 = vmatpush1.bf16.msra.mxu0 %v4495_v59  ;;  %3790 = vmatpush1.bf16.msra.mxu1 %v4497_v35  ;;  %v247_v59 = vld [vmem:[%s6642_s2 + $0x6f8] sm:$0xff]  ;;  %v4559_v35 = vcombine.low %v234_v48, %v238_v49  ;;  %v4681_v49 = vpack.c.bf16 %v3853_v56, %v3852_v17  ;;  %v3880_v56 = vld [vmem:[%s6643_s4 + $0xe0] sm:$0xff] }
 0x1cf   :  { %3705 = vmatprep.subr.bf16.mxu0 %v4504_v60  ;;  %3791 = vmatprep.subr.bf16.mxu1 %v4506_v61  ;;  %v4561_v60 = vcombine.low %v235_v50, %v239_v51  ;;  %v4568_v61 = vcombine.high %v242_v57, %v246_v29  ;;  %v4570_v62 = vcombine.high %v243_v58, %v247_v59  ;;  %v3903_v48 = vld [vmem:[%s6643_s4 + $0x198] sm:$0xff] }
 0x1d0   :  { %v3895_v17 = vld [vmem:[%s6643_s4 + $0x158] sm:$0xff] }
 0x1d2   :  { %3706 = vmatpush1.bf16.msra.mxu0 %v4503_v1  ;;  %3792 = vmatpush1.bf16.msra.mxu1 %v4505_v2  ;;  %v255_v1 = vld [vmem:[%s6642_s2 + $0x738] sm:$0xff]  ;;  %v4567_v2 = vcombine.low %v242_v57, %v246_v29  ;;  %v3872_v29 = vld [vmem:[%s6643_s4 + $0xa0] sm:$0xff] }
 0x1d3   :  { %3707 = vmatprep.subr.bf16.mxu0 %v4512_v3  ;;  %3793 = vmatprep.subr.bf16.mxu1 %v4514_v4  ;;  %v4569_v3 = vcombine.low %v243_v58, %v247_v59  ;;  %v4576_v4 = vcombine.high %v250_v63, %v254_v39  ;;  %v4578_v5 = vcombine.high %v251_v0, %v255_v1  ;;  %v3887_v57 = vld [vmem:[%s6643_s4 + $0x118] sm:$0xff]  ;;  %v3873_v58 = vld [vmem:[%s6643_s4 + $0xa8] sm:$0xff]  ;;  %v3904_v59 = vld [vmem:[%s6643_s4 + $0x1a0] sm:$0xff] }
 0x1d6   :  { %3708 = vmatpush1.bf16.msra.mxu0 %v4511_v9  ;;  %3794 = vmatpush1.bf16.msra.mxu1 %v4513_v11  ;;  %v263_v9 = vld [vmem:[%s6642_s2 + $0x778] sm:$0xff]  ;;  %v4575_v11 = vcombine.low %v250_v63, %v254_v39  ;;  %v3856_v63 = vld [vmem:[%s6643_s4 + $0x20] sm:$0xff]  ;;  %v3857_v39 = vld [vmem:[%s6643_s4 + $0x28] sm:$0xff] }
 0x1d7   :  { %3709 = vmatprep.subr.bf16.mxu0 %v4520_v12  ;;  %3795 = vmatprep.subr.bf16.mxu1 %v4522_v13  ;;  %v4577_v12 = vcombine.low %v251_v0, %v255_v1  ;;  %v4584_v13 = vcombine.high %v258_v6, %v262_v7  ;;  %v4586_v14 = vcombine.high %v259_v8, %v263_v9  ;;  %v3888_v0 = vld [vmem:[%s6643_s4 + $0x120] sm:$0xff]  ;;  %v3889_v1 = vld [vmem:[%s6643_s4 + $0x128] sm:$0xff] }
 0x1da   :  { %3710 = vmatpush1.bf16.msra.mxu0 %v4519_v20  ;;  %3796 = vmatpush1.bf16.msra.mxu1 %v4521_v21  ;;  %v271_v20 = vld [vmem:[%s6642_s2 + $0x7b8] sm:$0xff]  ;;  %v4583_v21 = vcombine.low %v258_v6, %v262_v7  ;;  %v4689_v6 = vpack.c.bf16 %v3857_v39, %v3856_v63  ;;  %v4721_v7 = vpack.c.bf16 %v3889_v1, %v3888_v0  ;;  %v3866_v39 = vld [vmem:[%s6643_s4 + $0x70] sm:$0xff] }
 0x1db   :  { %3711 = vmatprep.subr.bf16.mxu0 %v4528_v22  ;;  %3797 = vmatprep.subr.bf16.mxu1 %v4530_v23  ;;  %v4585_v22 = vcombine.low %v259_v8, %v263_v9  ;;  %v4592_v23 = vcombine.high %v266_v15, %v270_v16  ;;  %v4594_v24 = vcombine.high %v267_v18, %v271_v20  ;;  %v3858_v9 = vld [vmem:[%s6643_s4 + $0x30] sm:$0xff]  ;;  %v3915_v63 = vld [vmem:[%s6643_s4 + $0x1f8] sm:$0xff] }
 0x1dc   :  { %v3867_v0 = vld [vmem:[%s6643_s4 + $0x78] sm:$0xff] }
 0x1de   :  { %3712 = vmatpush1.bf16.msra.mxu0 %v4527_v28  ;;  %3798 = vmatpush1.bf16.msra.mxu1 %v4529_v30  ;;  %v279_v28 = vld [vmem:[%s6642_s2 + $0x7f8] sm:$0xff]  ;;  %v4591_v30 = vcombine.low %v266_v15, %v270_v16  ;;  %v3876_v15 = vld [vmem:[%s6643_s4 + $0xc0] sm:$0xff]  ;;  %v3877_v16 = vld [vmem:[%s6643_s4 + $0xc8] sm:$0xff] }
 0x1df   :  { %3713 = vmatprep.subr.bf16.mxu0 %v4536_v31  ;;  %3799 = vmatprep.subr.bf16.mxu1 %v4538_v32  ;;  %v4593_v31 = vcombine.low %v267_v18, %v271_v20  ;;  %v4600_v32 = vcombine.high %v274_v25, %v278_v26  ;;  %v4602_v33 = vcombine.high %v275_v27, %v279_v28  ;;  %v3908_v18 = vld [vmem:[%s6643_s4 + $0x1c0] sm:$0xff]  ;;  %v3909_v20 = vld [vmem:[%s6643_s4 + $0x1c8] sm:$0xff] }
 0x1e2   :  { %3714 = vmatpush1.bf16.msra.mxu0 %v4535_v40  ;;  %3800 = vmatpush1.bf16.msra.mxu1 %v4537_v10  ;;  %v3901_v40 = vld [vmem:[%s6643_s4 + $0x188] sm:$0xff]  ;;  %v4599_v10 = vcombine.low %v274_v25, %v278_v26  ;;  %v3892_v26 = vld [vmem:[%s6643_s4 + $0x140] sm:$0xff] }
 0x1e3   :  { %3715 = vmatprep.subr.bf16.mxu0 %v4544_v41  ;;  %3801 = vmatprep.subr.bf16.mxu1 %v4546_v42  ;;  %v4601_v41 = vcombine.low %v275_v27, %v279_v28  ;;  %v4679_v42 = vpack.c.bf16 %v3869_v36, %v3868_v34  ;;  %v4711_v44 = vpack.c.bf16 %v3901_v40, %v3900_v38  ;;  %v3861_v25 = vld [vmem:[%s6643_s4 + $0x48] sm:$0xff]  ;;  %v3862_v40 = vld [vmem:[%s6643_s4 + $0x50] sm:$0xff] }
 0x1e4   :  { %v4727_v27 = vpack.c.bf16 %v3909_v20, %v3908_v18  ;;  %v3893_v28 = vld [vmem:[%s6643_s4 + $0x148] sm:$0xff] }
 0x1e5   :  { %v4729_v36 = vpack.c.bf16 %v3893_v28, %v3892_v26 }
 0x1e6   :  { %3716 = vmatpush1.bf16.msra.mxu0 %v4543_v45  ;;  %3802 = vmatpush1.bf16.msra.mxu1 %v4545_v46  ;;  %v3885_v45 = vld [vmem:[%s6643_s4 + $0x108] sm:$0xff]  ;;  %v3870_v46 = vld [vmem:[%s6643_s4 + $0x90] sm:$0xff] }
 0x1e7   :  { %3717 = vmatprep.subr.bf16.mxu0 %v4552_v19  ;;  %3803 = vmatprep.subr.bf16.mxu1 %v4554_v47  ;;  %v3871_v19 = vld [vmem:[%s6643_s4 + $0x98] sm:$0xff]  ;;  %v3902_v47 = vld [vmem:[%s6643_s4 + $0x190] sm:$0xff]  ;;  %v4713_v50 = vpack.c.bf16 %v3885_v45, %v3884_v43  ;;  %v3881_v43 = vld [vmem:[%s6643_s4 + $0xe8] sm:$0xff] }
 0x1e8   :  { %v4683_v51 = vpack.c.bf16 %v3871_v19, %v3870_v46  ;;  %v3913_v45 = vld [vmem:[%s6643_s4 + $0x1e8] sm:$0xff] }
 0x1ea   :  { %3718 = vmatpush1.bf16.msra.mxu0 %v4551_v52  ;;  %3804 = vmatpush1.bf16.msra.mxu1 %v4553_v53  ;;  %v3854_v52 = vld [vmem:[%s6643_s4 + $0x10] sm:$0xff]  ;;  %v3855_v53 = vld [vmem:[%s6643_s4 + $0x18] sm:$0xff] }
 0x1eb   :  { %3719 = vmatprep.subr.bf16.mxu0 %v4560_v54  ;;  %3805 = vmatprep.subr.bf16.mxu1 %v4562_v55  ;;  %v3886_v54 = vld [vmem:[%s6643_s4 + $0x110] sm:$0xff]  ;;  %v4715_v55 = vpack.c.bf16 %v3903_v48, %v3902_v47  ;;  %v4703_v47 = vpack.c.bf16 %v3881_v43, %v3880_v56 }
 0x1ee   :  { %3720 = vmatpush1.bf16.msra.mxu0 %v4559_v35  ;;  %3806 = vmatpush1.bf16.msra.mxu1 %v4561_v60  ;;  %v3905_v35 = vld [vmem:[%s6643_s4 + $0x1a8] sm:$0xff]  ;;  %v4685_v60 = vpack.c.bf16 %v3855_v53, %v3854_v52 }
 0x1ef   :  { %3721 = vmatprep.subr.bf16.mxu0 %v4568_v61  ;;  %3807 = vmatprep.subr.bf16.mxu1 %v4570_v62  ;;  %v4717_v61 = vpack.c.bf16 %v3887_v57, %v3886_v54  ;;  %v4687_v62 = vpack.c.bf16 %v3873_v58, %v3872_v29  ;;  %v3897_v53 = vld [vmem:[%s6643_s4 + $0x168] sm:$0xff]  ;;  %v3882_v58 = vld [vmem:[%s6643_s4 + $0xf0] sm:$0xff] }
 0x1f2   :  { %3722 = vmatpush1.bf16.msra.mxu0 %v4567_v2  ;;  %3808 = vmatpush1.bf16.msra.mxu1 %v4569_v3  ;;  %v3874_v2 = vld [vmem:[%s6643_s4 + $0xb0] sm:$0xff]  ;;  %v3875_v3 = vld [vmem:[%s6643_s4 + $0xb8] sm:$0xff] }
 0x1f3   :  { %3723 = vmatprep.subr.bf16.mxu0 %v4576_v4  ;;  %3809 = vmatprep.subr.bf16.mxu1 %v4578_v5  ;;  %v3906_v4 = vld [vmem:[%s6643_s4 + $0x1b0] sm:$0xff]  ;;  %v3907_v5 = vld [vmem:[%s6643_s4 + $0x1b8] sm:$0xff]  ;;  %v4691_v8 = vpack.c.bf16 %v3875_v3, %v3874_v2  ;;  %v4709_v3 = vpack.c.bf16 %v3867_v0, %v3866_v39 }
 0x1f6   :  { %3724 = vmatpush1.bf16.msra.mxu0 %v4575_v11  ;;  %3810 = vmatpush1.bf16.msra.mxu1 %v4577_v12  ;;  %v3859_v11 = vld [vmem:[%s6643_s4 + $0x38] sm:$0xff]  ;;  %v3890_v12 = vld [vmem:[%s6643_s4 + $0x130] sm:$0xff] }
 0x1f7   :  { %3725 = vmatprep.subr.bf16.mxu0 %v4584_v13  ;;  %3811 = vmatprep.subr.bf16.mxu1 %v4586_v14  ;;  %v4723_v13 = vpack.c.bf16 %v3907_v5, %v3906_v4  ;;  %v3891_v14 = vld [vmem:[%s6643_s4 + $0x138] sm:$0xff]  ;;  %v3898_v4 = vld [vmem:[%s6643_s4 + $0x170] sm:$0xff] }
 0x1f8   :  { %v3899_v5 = vld [vmem:[%s6643_s4 + $0x178] sm:$0xff] }
 0x1fa   :  { %3726 = vmatpush1.bf16.msra.mxu0 %v4583_v21  ;;  %3812 = vmatpush1.bf16.msra.mxu1 %v4585_v22  ;;  %v4693_v21 = vpack.c.bf16 %v3859_v11, %v3858_v9  ;;  %v4725_v22 = vpack.c.bf16 %v3891_v14, %v3890_v12 }
 0x1fb   :  { %3727 = vmatprep.subr.bf16.mxu0 %v4592_v23  ;;  %3813 = vmatprep.subr.bf16.mxu1 %v4594_v24  ;;  %v4695_v23 = vpack.c.bf16 %v3877_v16, %v3876_v15  ;;  %v3860_v24 = vld [vmem:[%s6643_s4 + $0x40] sm:$0xff] }
 0x1fc   :  { %v4697_v34 = vpack.c.bf16 %v3861_v25, %v3860_v24 }
 0x1fe   :  { %3728 = vmatpush1.bf16.msra.mxu0 %v4591_v30  ;;  %3814 = vmatpush1.bf16.msra.mxu1 %v4593_v31  ;;  %v3878_v30 = vld [vmem:[%s6643_s4 + $0xd0] sm:$0xff]  ;;  %v3879_v31 = vld [vmem:[%s6643_s4 + $0xd8] sm:$0xff] }
 0x1ff   :  { %3729 = vmatprep.subr.bf16.mxu0 %v4600_v32  ;;  %3815 = vmatprep.subr.bf16.mxu1 %v4602_v33  ;;  %v3910_v32 = vld [vmem:[%s6643_s4 + $0x1d0] sm:$0xff]  ;;  %v3911_v33 = vld [vmem:[%s6643_s4 + $0x1d8] sm:$0xff]  ;;  %v4699_v38 = vpack.c.bf16 %v3879_v31, %v3878_v30 }
 0x202   :  { %3730 = vmatpush1.bf16.msra.mxu0 %v4599_v10  ;;  %3816 = vmatpush1.bf16.msra.mxu1 %v4601_v41  ;;  %v3863_v10 = vld [vmem:[%s6643_s4 + $0x58] sm:$0xff]  ;;  %v3894_v41 = vld [vmem:[%s6643_s4 + $0x150] sm:$0xff] }
 0x203   :  { %4680 = vmatprep.subr.bf16.mxu0 %v4679_v42  ;;  %4712 = vmatprep.subr.bf16.mxu1 %v4711_v44  ;;  %v4731_v42 = vpack.c.bf16 %v3911_v33, %v3910_v32  ;;  %v3912_v44 = vld [vmem:[%s6643_s4 + $0x1e0] sm:$0xff]  ;;  %v4701_v46 = vpack.c.bf16 %v3863_v10, %v3862_v40  ;;  %v4733_v19 = vpack.c.bf16 %v3895_v17, %v3894_v41 }
 0x204   :  { %v4735_v48 = vpack.c.bf16 %v3913_v45, %v3912_v44  ;;  %v4067_v44 = vlaneseq }
 0x205   :  { %3732 = vmatmul.mubr.bf16.vlgmr.msra.gmra.mrb[4].mxu0 %v6063_v37  ;;  %3818 = vmatmul.mubr.bf16.vlgmr.msra.gmra.mrb[4].mxu1 %v6063_v37  ;;  %v4719_v37 = vpack.c.bf16 %v3905_v35, %v3904_v59  ;;  %v3883_v59 = vld [vmem:[%s6643_s4 + $0xf8] sm:$0xff]  ;;  %v3914_v35 = vld [vmem:[%s6643_s4 + $0x1f0] sm:$0xff] }
 0x206   :  { %4682 = vmatpush3.bf16.msra.mxu0 %v4681_v49  ;;  %4714 = vmatpush3.bf16.msra.mxu1 %v4713_v50  ;;  %v3864_v49 = vld [vmem:[%s6643_s4 + $0x60] sm:$0xff]  ;;  %v3865_v50 = vld [vmem:[%s6643_s4 + $0x68] sm:$0xff]  ;;  %v4739_v2 = vpack.c.bf16 %v3915_v63, %v3914_v35 }
 0x207   :  { %4684 = vmatprep.subr.bf16.mxu0 %v4683_v51  ;;  %4716 = vmatprep.subr.bf16.mxu1 %v4715_v55  ;;  %v3896_v51 = vld [vmem:[%s6643_s4 + $0x160] sm:$0xff]  ;;  %v4705_v52 = vpack.c.bf16 %v3865_v50, %v3864_v49 }
 0x208   :  { %v4737_v55 = vpack.c.bf16 %v3897_v53, %v3896_v51 }
 0x20a   :  { %4686 = vmatpush3.bf16.msra.mxu0 %v4685_v60  ;;  %4718 = vmatpush3.bf16.msra.mxu1 %v4717_v61 }
 0x20b   :  { %4688 = vmatprep.subr.bf16.mxu0 %v4687_v62  ;;  %4720 = vmatprep.subr.bf16.mxu1 %v4719_v37  ;;  %v4707_v62 = vpack.c.bf16 %v3883_v59, %v3882_v58 }
 0x20e   :  { %4690 = vmatpush3.bf16.msra.mxu0 %v4689_v6  ;;  %4722 = vmatpush3.bf16.msra.mxu1 %v4721_v7  ;;  %v4741_v7 = vpack.c.bf16 %v3899_v5, %v3898_v4 }
 0x20f   :  { %4692 = vmatprep.subr.bf16.mxu0 %v4691_v8  ;;  %4724 = vmatprep.subr.bf16.mxu1 %v4723_v13 }
 0x212   :  { %4694 = vmatpush3.bf16.msra.mxu0 %v4693_v21  ;;  %4726 = vmatpush3.bf16.msra.mxu1 %v4725_v22 }
 0x213   :  { %4696 = vmatprep.subr.bf16.mxu0 %v4695_v23  ;;  %4728 = vmatprep.subr.bf16.mxu1 %v4727_v27 }
 0x216   :  { %4698 = vmatpush3.bf16.msra.mxu0 %v4697_v34  ;;  %4730 = vmatpush3.bf16.msra.mxu1 %v4729_v36 }
 0x217   :  { %4700 = vmatprep.subr.bf16.mxu0 %v4699_v38  ;;  %4732 = vmatprep.subr.bf16.mxu1 %v4731_v42 }
 0x21a   :  { %4702 = vmatpush3.bf16.msra.mxu0 %v4701_v46  ;;  %4734 = vmatpush3.bf16.msra.mxu1 %v4733_v19  ;;  %v4068_v46 = vshrl.u32 %v4067_v44, 7 }
 0x21b   :  { %4704 = vmatprep.subr.bf16.mxu0 %v4703_v47  ;;  %4736 = vmatprep.subr.bf16.mxu1 %v4735_v48 }
 0x21e   :  { %4706 = vmatpush3.bf16.msra.mxu0 %v4705_v52  ;;  %4738 = vmatpush3.bf16.msra.mxu1 %v4737_v55  ;;  %v4069_v52 = vadd.s32 8, %v4068_v46 }
 0x21f   :  { %4708 = vmatprep.subr.bf16.mxu0 %v4707_v62  ;;  %4740 = vmatprep.subr.bf16.mxu1 %v4739_v2 }
 0x220   :  { %vm4074_vm0 = vcmp.lt.s32.totalorder %v4069_v52, 9 }
 0x222   :  { %4710 = vmatpush3.bf16.msra.mxu0 %v4709_v3  ;;  %4742 = vmatpush3.bf16.msra.mxu1 %v4741_v7 }
 0x258   :  { %v3561_v54 = vpop.f32.mrb[0].mxu0  ;;  %v3647_v57 = vpop.f32.mrb[0].mxu1 }
 0x259   :  { %v3563_v29 = vpop.f32.mrb[1].mxu0  ;;  %v3649_v60 = vpop.f32.mrb[1].mxu1  ;;  %v3828_v8 = vmul.f32 %v3561_v54, %v3561_v54  ;;  %v3830_v11 = vmul.f32 %v3647_v57, %v3647_v57 }
 0x25a   :  { %v3565_v61 = vpop.f32.mrb[2].mxu0  ;;  %v3651_v37 = vpop.f32.mrb[2].mxu1  ;;  %v3829_v12 = vmul.f32 %v3563_v29, %v3563_v29  ;;  %v3831_v13 = vmul.f32 %v3649_v60, %v3649_v60 }
 0x25b   :  { %v3567_v1 = vpop.f32.mrb[3].mxu0  ;;  %v3653_v6 = vpop.f32.mrb[3].mxu1  ;;  %v3832_v18 = vmul.f32 %v3565_v61, %v3565_v61  ;;  %v3834_v20 = vmul.f32 %v3651_v37, %v3651_v37 }
 0x25c   :  { %v3833_v25 = vmul.f32 %v3567_v1, %v3567_v1  ;;  %v3835_v40 = vmul.f32 %v3653_v6, %v3653_v6 }
 0x2d8   :  { %v3733_v9 = vpop.f32.mrb[4].mxu0  ;;  %v3819_v15 = vpop.f32.mrb[4].mxu1 }
 0x2d9   :  { %v3836_v14 = vmul.f32 %v3733_v9, %v3733_v9  ;;  %v3735_v16 = vpop.f32.mrb[5].mxu0  ;;  %v3838_v21 = vmul.f32 %v3819_v15, %v3819_v15  ;;  %v3821_v23 = vpop.f32.mrb[5].mxu1 }
 0x2da   :  { %v3837_v22 = vmul.f32 %v3735_v16, %v3735_v16  ;;  %v3737_v24 = vpop.f32.mrb[6].mxu0  ;;  %v3839_v27 = vmul.f32 %v3821_v23, %v3821_v23  ;;  %v3823_v30 = vpop.f32.mrb[6].mxu1 }
 0x2db   :  { %v3844_v26 = vadd.f32 %v3836_v14, %v3828_v8  ;;  %v3840_v28 = vmul.f32 %v3737_v24, %v3737_v24  ;;  %v3739_v31 = vpop.f32.mrb[7].mxu0  ;;  %v3846_v32 = vadd.f32 %v3838_v21, %v3830_v11  ;;  %v3842_v34 = vmul.f32 %v3823_v30, %v3823_v30  ;;  %v3825_v38 = vpop.f32.mrb[7].mxu1 }
 0x2dc   :  { %v3845_v33 = vadd.f32 %v3837_v22, %v3829_v12  ;;  %v3841_v36 = vmul.f32 %v3739_v31, %v3739_v31  ;;  %v3847_v10 = vadd.f32 %v3839_v27, %v3831_v13  ;;  %v3843_v42 = vmul.f32 %v3825_v38, %v3825_v38 }
 0x2dd   :  { %v3848_v41 = vadd.f32 %v3840_v28, %v3832_v18  ;;  %v3850_v17 = vadd.f32 %v3842_v34, %v3834_v20 }
 0x2de   :  { %v3849_v56 = vadd.f32 %v3841_v36, %v3833_v25  ;;  %3980 = vmatprep.mubr.f32.mxu0 %v3845_v33  ;;  %v3851_v43 = vadd.f32 %v3843_v42, %v3835_v40  ;;  %4055 = vmatprep.mubr.f32.mxu1 %v3847_v10 }
 0x2df   :  { %3981 = vmatmul.mubr.f32.vlgmr.msra.gmra.mrb[8].mxu0 %v3844_v26  ;;  %4056 = vmatmul.mubr.f32.vlgmr.msra.gmra.mrb[8].mxu1 %v3846_v32 }
 0x2e0   :  { %3985 = vmatprep.mubr.f32.mxu0 %v3849_v56  ;;  %4060 = vmatprep.mubr.f32.mxu1 %v3851_v43 }
 0x2e3   :  { %3986 = vmatmul.mubr.f32.gmra.mrb[10].mxu0 %v3848_v41  ;;  %4061 = vmatmul.mubr.f32.gmra.mrb[10].mxu1 %v3850_v17 }
 0x3b2   :  { %v4635_v45 = vpop.f32.mrb[8].mxu0  ;;  %v4673_v19 = vpop.f32.mrb[8].mxu1 }
 0x3b3   :  { %v4636_v47 = vpop.f32.mrb[9].mxu0  ;;  %v4674_v49 = vpop.f32.mrb[9].mxu1 }
 0x3b4   :  { %v4637_v48 = vadd.f32 %v4636_v47, %v4635_v45  ;;  %v4675_v50 = vadd.f32 %v4674_v49, %v4673_v19 }
 0x3b6   :  { %v4638_v51 = vpop.f32.mrb[10].mxu0  ;;  %v4058_v53 = vadd.f32 %v4675_v50, %v4637_v48  ;;  %v4676_v54 = vpop.f32.mrb[10].mxu1 }
 0x3b7   :  { %v4639_v55 = vpop.f32.mrb[11].mxu0  ;;  %v4677_v29 = vpop.f32.mrb[11].mxu1 }
 0x3b8   :  { %v4640_v57 = vadd.f32 %v4639_v55, %v4638_v51  ;;  %4077 = vst [vmem:[%s6644_s5] sm:$0xff] %v4058_v53  ;;  %v4678_v58 = vadd.f32 %v4677_v29, %v4676_v54 }
 0x3ba   :  { %v4063_v59 = vadd.f32 %v4678_v58, %v4640_v57 }
 0x3bc   :  { %v4076_v35 = vsel %vm4074_vm0, %v4063_v59, 0.0 }
 0x3bd   :  { %4078 = vst [vmem:[%s6644_s5 + $0x8] sm:$0xff] %v4076_v35 }

</bundles_post_ra>
